<compile_context>
chip_gen: v5e
topology: v5e:2x2
jax: 0.10.0
libtpu: 0.0.40
codegen_flags: <defaults>
</compile_context>

<pallas_src>
import functools

import jax
import jax.numpy as jnp
from jax.experimental import pallas as pl
from jax.experimental.pallas import tpu as pltpu


# ------------------------------ fused LSTM kernel ------------------------------
def _lstm_mm_kernel(*refs, n_layers, seq_len, batch, hid_dim, out_dim):
    # ref layout:
    #   inputs : x(L*B,Cin), [wih(Fin,4H), whh(H,4H), bih(1,4H), bhh(1,4H)] * n_layers,
    #            wfc ((1,H) if O==1 else (H,O)), bfc(1,O)
    #   outputs: o(L*B,O)
    idx = 0
    x_ref = refs[idx]; idx += 1
    layers = []
    for _ in range(n_layers):
        layers.append(refs[idx:idx + 4]); idx += 4
    wfc_ref, bfc_ref = refs[idx], refs[idx + 1]; idx += 2
    o_ref = refs[idx]

    L, B, H = seq_len, batch, hid_dim

    # ---- layer 0: hoisted input->hidden projection, both biases folded in ----
    wih0_r, whh0_r, bih0_r, bhh0_r = layers[0]
    x = x_ref[...]                                   # (L*B, Cin)
    wih0 = wih0_r[...]                               # (Cin, 4H)
    if x.shape[1] == 1:
        gi0 = x * wih0                               # K=1: VPU broadcast-mul, skip MXU
    else:
        gi0 = jnp.dot(x, wih0, preferred_element_type=jnp.float32)
    gi0 = gi0 + (bih0_r[...] + bhh0_r[...])          # (L*B, 4H), biases folded once

    # Hoisted per-layer weights / folded biases (layers >= 1).
    whh = [layers[l][1][...] for l in range(n_layers)]                       # (H, 4H)
    wih = [None] + [layers[l][0][...] for l in range(1, n_layers)]           # (H, 4H)
    bii = [None] + [layers[l][2][...] + layers[l][3][...]
                    for l in range(1, n_layers)]                             # (1, 4H)

    def lstm_cell(gates, c_prev):
        # One sigmoid EUP push over the whole (B, 4H) slab; tanh only on g slice.
        sg = jax.nn.sigmoid(gates)
        i_g = sg[:, 0:H]
        f_g = sg[:, H:2 * H]
        o_g = sg[:, 3 * H:4 * H]
        g_g = jnp.tanh(gates[:, 2 * H:3 * H])
        c_new = f_g * c_prev + i_g * g_g
        h_new = o_g * jnp.tanh(c_new)
        return h_new, c_new

    # Fully unrolled recurrences, all SSA (no scratch round-trips).  Layer l
    # step t depends only on layer l-1 step t and layer l step t-1, so the LLO
    # scheduler can pipeline the layers' serial chains against each other.
    prev_out = None
    for lyr in range(n_layers):
        h = jnp.zeros((B, H), jnp.float32)
        c = jnp.zeros((B, H), jnp.float32)
        outs = []
        for t in range(L):
            if lyr == 0:
                gi_t = gi0[t * B:(t + 1) * B, :]     # static sublane slice, off the chain
            else:
                # per-step input projection keeps the cross-layer dep fine-grained
                gi_t = jnp.dot(prev_out[t], wih[lyr],
                               preferred_element_type=jnp.float32) + bii[lyr]
            gates = gi_t + jnp.dot(h, whh[lyr],
                                   preferred_element_type=jnp.float32)   # (B, 4H)
            h, c = lstm_cell(gates, c)
            outs.append(h)
        prev_out = outs
        # inter-layer dropout (p=0.75) is train-only -> identity in eval mode

    y = jnp.concatenate(prev_out, axis=0)            # (L*B, H), materialized once

    # ---- final Linear ----
    wfc = wfc_ref[...]
    bfc = bfc_ref[...]
    if out_dim == 1:
        # O=1: VPU multiply + XLU lane reduce instead of an N=1 MXU matmul.
        o = jnp.sum(y * wfc, axis=1, keepdims=True) + bfc
    else:
        o = jnp.dot(y, wfc, preferred_element_type=jnp.float32) + bfc
    o_ref[...] = o.astype(o_ref.dtype)               # single store


# ---------------------------------- wrapper -------------------------------------
def lstm_mm_forward(src, params):
    # src: (B, C_in, L)  ->  (B, output_dim, L)
    B, C, L = src.shape
    hid_dim = params["lstm"][0][1].shape[0]          # whh: (H, 4H)
    n_layers = len(params["lstm"])
    O = params["fc_w"].shape[1]

    # (B, C, L) -> (L, B, C) -> (L*B, C): seq-major, features on lanes
    x = jnp.transpose(src, (2, 0, 1)).reshape(L * B, C)

    # For O==1 pass the fc weight as a (1, H) row so the kernel can take the
    # VPU/XLU path; otherwise pass (H, O) for the MXU path.
    fc_w = params["fc_w"].T if O == 1 else params["fc_w"]

    inputs = [x]
    for layer in params["lstm"]:
        inputs.extend(layer)
    inputs.extend([fc_w, params["fc_b"]])

    kernel = functools.partial(_lstm_mm_kernel, n_layers=n_layers,
                               seq_len=L, batch=B, hid_dim=hid_dim, out_dim=O)

    in_specs = [pl.BlockSpec(a.shape, lambda i, nd=a.ndim: (0,) * nd)
                for a in inputs]

    out_flat = pl.pallas_call(
        kernel,
        out_shape=jax.ShapeDtypeStruct((L * B, O), jnp.float32),
        grid=(1,),
        in_specs=in_specs,
        out_specs=pl.BlockSpec((L * B, O), lambda i: (0, 0)),
        compiler_params=pltpu.CompilerParams(dimension_semantics=("arbitrary",)),
    )(*inputs)

    return jnp.transpose(out_flat.reshape(L, B, O), (1, 2, 0))   # (B, O, L)


# ------------------------------- pure-JAX reference ------------------------------
def lstm_mm_reference(src, params):
    B, C, L = src.shape
    H = params["lstm"][0][1].shape[0]
    x = jnp.transpose(src, (2, 0, 1))                # (L, B, C)
    h_in = x
    for (wih, whh, bih, bhh) in params["lstm"]:
        h = jnp.zeros((B, H), jnp.float32)
        c = jnp.zeros((B, H), jnp.float32)
        ys = []
        for t in range(L):
            gates = h_in[t] @ wih + bih + h @ whh + bhh
            i = jax.nn.sigmoid(gates[:, 0:H])
            f = jax.nn.sigmoid(gates[:, H:2 * H])
            g = jnp.tanh(gates[:, 2 * H:3 * H])
            o = jax.nn.sigmoid(gates[:, 3 * H:4 * H])
            c = f * c + i * g
            h = o * jnp.tanh(c)
            ys.append(h)
        h_in = jnp.stack(ys, axis=0)                 # (L, B, H)
    out = h_in @ params["fc_w"] + params["fc_b"]
    return jnp.transpose(out, (1, 2, 0))


# ----------------------------------- params --------------------------------------
def init_params(key, input_dim, hid_dim, output_dim, n_layers):
    ks = jax.random.split(key, 4 * n_layers + 2)
    ki = iter(ks)

    def uni(k, shape, bound):
        return jax.random.uniform(k, shape, jnp.float32, -bound, bound)

    bound = 1.0 / jnp.sqrt(float(hid_dim))
    lstm = []
    for lyr in range(n_layers):
        fin = input_dim if lyr == 0 else hid_dim
        # NOTE: stored transposed vs PyTorch checkpoints ((Fin,4H)/(H,4H));
        # gate order i,f,g,o must be preserved when importing real weights.
        wih = uni(next(ki), (fin, 4 * hid_dim), bound)
        whh = uni(next(ki), (hid_dim, 4 * hid_dim), bound)
        bih = uni(next(ki), (1, 4 * hid_dim), bound)
        bhh = uni(next(ki), (1, 4 * hid_dim), bound)
        lstm.append((wih, whh, bih, bhh))
    params = {
        "lstm": lstm,
        "fc_w": uni(next(ki), (hid_dim, output_dim), bound),
        "fc_b": uni(next(ki), (1, output_dim), bound),
    }
    return params


if __name__ == "__main__":
    B, INPUT_DIM, L = 2, 1, 16
    HID_DIM, OUT_DIM, N_LAYERS = 32, 1, 2

    key = jax.random.PRNGKey(0)
    k_in, k_par = jax.random.split(key)
    src = jax.random.normal(k_in, (B, INPUT_DIM, L), jnp.float32)  # (Batch, channel, seq)
    params = init_params(k_par, INPUT_DIM, HID_DIM, OUT_DIM, N_LAYERS)

    out = lstm_mm_forward(src, params)
    out = jax.block_until_ready(out)
    assert out.shape == (B, OUT_DIM, L), out.shape
    assert bool(jnp.all(jnp.isfinite(out)))

    ref = lstm_mm_reference(src, params)
    assert bool(jnp.allclose(out, ref, atol=1e-4, rtol=1e-4)), "mismatch vs reference"

    print("KERNEL_OK")
</pallas_src>

<mosaic_0001>
module attributes {stable_mosaic.version = 11 : i64} {
  func.func @_lstm_mm_kernel(%arg0: i32, %arg1: memref<32x1xf32, #tpu.memory_space<vmem>>, %arg2: memref<1x128xf32, #tpu.memory_space<vmem>>, %arg3: memref<32x128xf32, #tpu.memory_space<vmem>>, %arg4: memref<1x128xf32, #tpu.memory_space<vmem>>, %arg5: memref<1x128xf32, #tpu.memory_space<vmem>>, %arg6: memref<32x128xf32, #tpu.memory_space<vmem>>, %arg7: memref<32x128xf32, #tpu.memory_space<vmem>>, %arg8: memref<1x128xf32, #tpu.memory_space<vmem>>, %arg9: memref<1x128xf32, #tpu.memory_space<vmem>>, %arg10: memref<1x32xf32, #tpu.memory_space<vmem>>, %arg11: memref<1x1xf32, #tpu.memory_space<vmem>>, %arg12: memref<32x1xf32, #tpu.memory_space<vmem>>) attributes {dimension_semantics = [#tpu.dimension_semantics<arbitrary>], iteration_bounds = array<i64: 1>, scalar_prefetch = 0 : i64, scratch_operands = 0 : i64, tpu.core_type = #tpu.core_type<tc>, window_params = [{pipeline_mode = #tpu.pipeline_mode<synchronous>, transform_indices = @transform_0, window_bounds = array<i64: 32, 1>}, {pipeline_mode = #tpu.pipeline_mode<synchronous>, transform_indices = @transform_1, window_bounds = array<i64: 1, 128>}, {pipeline_mode = #tpu.pipeline_mode<synchronous>, transform_indices = @transform_2, window_bounds = array<i64: 32, 128>}, {pipeline_mode = #tpu.pipeline_mode<synchronous>, transform_indices = @transform_3, window_bounds = array<i64: 1, 128>}, {pipeline_mode = #tpu.pipeline_mode<synchronous>, transform_indices = @transform_4, window_bounds = array<i64: 1, 128>}, {pipeline_mode = #tpu.pipeline_mode<synchronous>, transform_indices = @transform_5, window_bounds = array<i64: 32, 128>}, {pipeline_mode = #tpu.pipeline_mode<synchronous>, transform_indices = @transform_6, window_bounds = array<i64: 32, 128>}, {pipeline_mode = #tpu.pipeline_mode<synchronous>, transform_indices = @transform_7, window_bounds = array<i64: 1, 128>}, {pipeline_mode = #tpu.pipeline_mode<synchronous>, transform_indices = @transform_8, window_bounds = array<i64: 1, 128>}, {pipeline_mode = #tpu.pipeline_mode<synchronous>, transform_indices = @transform_9, window_bounds = array<i64: 1, 32>}, {pipeline_mode = #tpu.pipeline_mode<synchronous>, transform_indices = @transform_10, window_bounds = array<i64: 1, 1>}, {pipeline_mode = #tpu.pipeline_mode<synchronous>, transform_indices = @transform_11, window_bounds = array<i64: 32, 1>}]} {
    %c0 = arith.constant 0 : index
    %c0_0 = arith.constant 0 : index
    %0 = vector.load %arg1[%c0, %c0_0] : memref<32x1xf32, #tpu.memory_space<vmem>>, vector<32x1xf32>
    %c0_1 = arith.constant 0 : index
    %c0_2 = arith.constant 0 : index
    %1 = vector.load %arg2[%c0_1, %c0_2] : memref<1x128xf32, #tpu.memory_space<vmem>>, vector<1x128xf32>
    %2 = vector.broadcast %0 : vector<32x1xf32> to vector<32x128xf32>
    %3 = vector.broadcast %1 : vector<1x128xf32> to vector<32x128xf32>
    %4 = arith.mulf %2, %3 : vector<32x128xf32>
    %c0_3 = arith.constant 0 : index
    %c0_4 = arith.constant 0 : index
    %5 = vector.load %arg4[%c0_3, %c0_4] : memref<1x128xf32, #tpu.memory_space<vmem>>, vector<1x128xf32>
    %c0_5 = arith.constant 0 : index
    %c0_6 = arith.constant 0 : index
    %6 = vector.load %arg5[%c0_5, %c0_6] : memref<1x128xf32, #tpu.memory_space<vmem>>, vector<1x128xf32>
    %7 = arith.addf %5, %6 : vector<1x128xf32>
    %8 = vector.broadcast %7 : vector<1x128xf32> to vector<32x128xf32>
    %9 = arith.addf %4, %8 : vector<32x128xf32>
    %c0_7 = arith.constant 0 : index
    %c0_8 = arith.constant 0 : index
    %10 = vector.load %arg3[%c0_7, %c0_8] : memref<32x128xf32, #tpu.memory_space<vmem>>, vector<32x128xf32>
    %c0_9 = arith.constant 0 : index
    %c0_10 = arith.constant 0 : index
    %11 = vector.load %arg7[%c0_9, %c0_10] : memref<32x128xf32, #tpu.memory_space<vmem>>, vector<32x128xf32>
    %c0_11 = arith.constant 0 : index
    %c0_12 = arith.constant 0 : index
    %12 = vector.load %arg6[%c0_11, %c0_12] : memref<32x128xf32, #tpu.memory_space<vmem>>, vector<32x128xf32>
    %c0_13 = arith.constant 0 : index
    %c0_14 = arith.constant 0 : index
    %13 = vector.load %arg8[%c0_13, %c0_14] : memref<1x128xf32, #tpu.memory_space<vmem>>, vector<1x128xf32>
    %c0_15 = arith.constant 0 : index
    %c0_16 = arith.constant 0 : index
    %14 = vector.load %arg9[%c0_15, %c0_16] : memref<1x128xf32, #tpu.memory_space<vmem>>, vector<1x128xf32>
    %15 = arith.addf %13, %14 : vector<1x128xf32>
    %cst = arith.constant 0.000000e+00 : f32
    %16 = vector.broadcast %cst : f32 to vector<2x32xf32>
    %cst_17 = arith.constant 0.000000e+00 : f32
    %17 = vector.broadcast %cst_17 : f32 to vector<2x32xf32>
    %18 = vector.extract_strided_slice %9 {offsets = [0, 0], sizes = [2, 128], strides = [1, 1]} : vector<32x128xf32> to vector<2x128xf32>
    %cst_18 = arith.constant dense<0.000000e+00> : vector<2x128xf32>
    %19 = tpu.matmul %16, %10, %cst_18 {dimension_numbers = #tpu.dot_dimension_numbers<[1], [0], [0], [1], [0, 0, 1, 1], [], []>} : vector<2x32xf32>, vector<32x128xf32>, vector<2x128xf32> -> vector<2x128xf32>
    %20 = arith.addf %18, %19 : vector<2x128xf32>
    %21 = arith.negf %20 : vector<2x128xf32>
    %22 = math.exp %21 : vector<2x128xf32>
    %cst_19 = arith.constant 1.000000e+00 : f32
    %23 = vector.broadcast %cst_19 : f32 to vector<2x128xf32>
    %24 = arith.addf %23, %22 : vector<2x128xf32>
    %25 = arith.divf %23, %24 : vector<2x128xf32>
    %26 = vector.extract_strided_slice %25 {offsets = [0, 0], sizes = [2, 32], strides = [1, 1]} : vector<2x128xf32> to vector<2x32xf32>
    %27 = vector.extract_strided_slice %25 {offsets = [0, 32], sizes = [2, 32], strides = [1, 1]} : vector<2x128xf32> to vector<2x32xf32>
    %28 = vector.extract_strided_slice %25 {offsets = [0, 96], sizes = [2, 32], strides = [1, 1]} : vector<2x128xf32> to vector<2x32xf32>
    %29 = vector.extract_strided_slice %20 {offsets = [0, 64], sizes = [2, 32], strides = [1, 1]} : vector<2x128xf32> to vector<2x32xf32>
    %30 = math.tanh %29 : vector<2x32xf32>
    %31 = arith.mulf %27, %17 : vector<2x32xf32>
    %32 = arith.mulf %26, %30 : vector<2x32xf32>
    %33 = arith.addf %31, %32 : vector<2x32xf32>
    %34 = math.tanh %33 : vector<2x32xf32>
    %35 = arith.mulf %28, %34 : vector<2x32xf32>
    %36 = vector.extract_strided_slice %9 {offsets = [2, 0], sizes = [2, 128], strides = [1, 1]} : vector<32x128xf32> to vector<2x128xf32>
    %cst_20 = arith.constant dense<0.000000e+00> : vector<2x128xf32>
    %37 = tpu.matmul %35, %10, %cst_20 {dimension_numbers = #tpu.dot_dimension_numbers<[1], [0], [0], [1], [0, 0, 1, 1], [], []>} : vector<2x32xf32>, vector<32x128xf32>, vector<2x128xf32> -> vector<2x128xf32>
    %38 = arith.addf %36, %37 : vector<2x128xf32>
    %39 = arith.negf %38 : vector<2x128xf32>
    %40 = math.exp %39 : vector<2x128xf32>
    %cst_21 = arith.constant 1.000000e+00 : f32
    %41 = vector.broadcast %cst_21 : f32 to vector<2x128xf32>
    %42 = arith.addf %41, %40 : vector<2x128xf32>
    %43 = arith.divf %41, %42 : vector<2x128xf32>
    %44 = vector.extract_strided_slice %43 {offsets = [0, 0], sizes = [2, 32], strides = [1, 1]} : vector<2x128xf32> to vector<2x32xf32>
    %45 = vector.extract_strided_slice %43 {offsets = [0, 32], sizes = [2, 32], strides = [1, 1]} : vector<2x128xf32> to vector<2x32xf32>
    %46 = vector.extract_strided_slice %43 {offsets = [0, 96], sizes = [2, 32], strides = [1, 1]} : vector<2x128xf32> to vector<2x32xf32>
    %47 = vector.extract_strided_slice %38 {offsets = [0, 64], sizes = [2, 32], strides = [1, 1]} : vector<2x128xf32> to vector<2x32xf32>
    %48 = math.tanh %47 : vector<2x32xf32>
    %49 = arith.mulf %45, %33 : vector<2x32xf32>
    %50 = arith.mulf %44, %48 : vector<2x32xf32>
    %51 = arith.addf %49, %50 : vector<2x32xf32>
    %52 = math.tanh %51 : vector<2x32xf32>
    %53 = arith.mulf %46, %52 : vector<2x32xf32>
    %54 = vector.extract_strided_slice %9 {offsets = [4, 0], sizes = [2, 128], strides = [1, 1]} : vector<32x128xf32> to vector<2x128xf32>
    %cst_22 = arith.constant dense<0.000000e+00> : vector<2x128xf32>
    %55 = tpu.matmul %53, %10, %cst_22 {dimension_numbers = #tpu.dot_dimension_numbers<[1], [0], [0], [1], [0, 0, 1, 1], [], []>} : vector<2x32xf32>, vector<32x128xf32>, vector<2x128xf32> -> vector<2x128xf32>
    %56 = arith.addf %54, %55 : vector<2x128xf32>
    %57 = arith.negf %56 : vector<2x128xf32>
    %58 = math.exp %57 : vector<2x128xf32>
    %cst_23 = arith.constant 1.000000e+00 : f32
    %59 = vector.broadcast %cst_23 : f32 to vector<2x128xf32>
    %60 = arith.addf %59, %58 : vector<2x128xf32>
    %61 = arith.divf %59, %60 : vector<2x128xf32>
    %62 = vector.extract_strided_slice %61 {offsets = [0, 0], sizes = [2, 32], strides = [1, 1]} : vector<2x128xf32> to vector<2x32xf32>
    %63 = vector.extract_strided_slice %61 {offsets = [0, 32], sizes = [2, 32], strides = [1, 1]} : vector<2x128xf32> to vector<2x32xf32>
    %64 = vector.extract_strided_slice %61 {offsets = [0, 96], sizes = [2, 32], strides = [1, 1]} : vector<2x128xf32> to vector<2x32xf32>
    %65 = vector.extract_strided_slice %56 {offsets = [0, 64], sizes = [2, 32], strides = [1, 1]} : vector<2x128xf32> to vector<2x32xf32>
    %66 = math.tanh %65 : vector<2x32xf32>
    %67 = arith.mulf %63, %51 : vector<2x32xf32>
    %68 = arith.mulf %62, %66 : vector<2x32xf32>
    %69 = arith.addf %67, %68 : vector<2x32xf32>
    %70 = math.tanh %69 : vector<2x32xf32>
    %71 = arith.mulf %64, %70 : vector<2x32xf32>
    %72 = vector.extract_strided_slice %9 {offsets = [6, 0], sizes = [2, 128], strides = [1, 1]} : vector<32x128xf32> to vector<2x128xf32>
    %cst_24 = arith.constant dense<0.000000e+00> : vector<2x128xf32>
    %73 = tpu.matmul %71, %10, %cst_24 {dimension_numbers = #tpu.dot_dimension_numbers<[1], [0], [0], [1], [0, 0, 1, 1], [], []>} : vector<2x32xf32>, vector<32x128xf32>, vector<2x128xf32> -> vector<2x128xf32>
    %74 = arith.addf %72, %73 : vector<2x128xf32>
    %75 = arith.negf %74 : vector<2x128xf32>
    %76 = math.exp %75 : vector<2x128xf32>
    %cst_25 = arith.constant 1.000000e+00 : f32
    %77 = vector.broadcast %cst_25 : f32 to vector<2x128xf32>
    %78 = arith.addf %77, %76 : vector<2x128xf32>
    %79 = arith.divf %77, %78 : vector<2x128xf32>
    %80 = vector.extract_strided_slice %79 {offsets = [0, 0], sizes = [2, 32], strides = [1, 1]} : vector<2x128xf32> to vector<2x32xf32>
    %81 = vector.extract_strided_slice %79 {offsets = [0, 32], sizes = [2, 32], strides = [1, 1]} : vector<2x128xf32> to vector<2x32xf32>
    %82 = vector.extract_strided_slice %79 {offsets = [0, 96], sizes = [2, 32], strides = [1, 1]} : vector<2x128xf32> to vector<2x32xf32>
    %83 = vector.extract_strided_slice %74 {offsets = [0, 64], sizes = [2, 32], strides = [1, 1]} : vector<2x128xf32> to vector<2x32xf32>
    %84 = math.tanh %83 : vector<2x32xf32>
    %85 = arith.mulf %81, %69 : vector<2x32xf32>
    %86 = arith.mulf %80, %84 : vector<2x32xf32>
    %87 = arith.addf %85, %86 : vector<2x32xf32>
    %88 = math.tanh %87 : vector<2x32xf32>
    %89 = arith.mulf %82, %88 : vector<2x32xf32>
    %90 = vector.extract_strided_slice %9 {offsets = [8, 0], sizes = [2, 128], strides = [1, 1]} : vector<32x128xf32> to vector<2x128xf32>
    %cst_26 = arith.constant dense<0.000000e+00> : vector<2x128xf32>
    %91 = tpu.matmul %89, %10, %cst_26 {dimension_numbers = #tpu.dot_dimension_numbers<[1], [0], [0], [1], [0, 0, 1, 1], [], []>} : vector<2x32xf32>, vector<32x128xf32>, vector<2x128xf32> -> vector<2x128xf32>
    %92 = arith.addf %90, %91 : vector<2x128xf32>
    %93 = arith.negf %92 : vector<2x128xf32>
    %94 = math.exp %93 : vector<2x128xf32>
    %cst_27 = arith.constant 1.000000e+00 : f32
    %95 = vector.broadcast %cst_27 : f32 to vector<2x128xf32>
    %96 = arith.addf %95, %94 : vector<2x128xf32>
    %97 = arith.divf %95, %96 : vector<2x128xf32>
    %98 = vector.extract_strided_slice %97 {offsets = [0, 0], sizes = [2, 32], strides = [1, 1]} : vector<2x128xf32> to vector<2x32xf32>
    %99 = vector.extract_strided_slice %97 {offsets = [0, 32], sizes = [2, 32], strides = [1, 1]} : vector<2x128xf32> to vector<2x32xf32>
    %100 = vector.extract_strided_slice %97 {offsets = [0, 96], sizes = [2, 32], strides = [1, 1]} : vector<2x128xf32> to vector<2x32xf32>
    %101 = vector.extract_strided_slice %92 {offsets = [0, 64], sizes = [2, 32], strides = [1, 1]} : vector<2x128xf32> to vector<2x32xf32>
    %102 = math.tanh %101 : vector<2x32xf32>
    %103 = arith.mulf %99, %87 : vector<2x32xf32>
    %104 = arith.mulf %98, %102 : vector<2x32xf32>
    %105 = arith.addf %103, %104 : vector<2x32xf32>
    %106 = math.tanh %105 : vector<2x32xf32>
    %107 = arith.mulf %100, %106 : vector<2x32xf32>
    %108 = vector.extract_strided_slice %9 {offsets = [10, 0], sizes = [2, 128], strides = [1, 1]} : vector<32x128xf32> to vector<2x128xf32>
    %cst_28 = arith.constant dense<0.000000e+00> : vector<2x128xf32>
    %109 = tpu.matmul %107, %10, %cst_28 {dimension_numbers = #tpu.dot_dimension_numbers<[1], [0], [0], [1], [0, 0, 1, 1], [], []>} : vector<2x32xf32>, vector<32x128xf32>, vector<2x128xf32> -> vector<2x128xf32>
    %110 = arith.addf %108, %109 : vector<2x128xf32>
    %111 = arith.negf %110 : vector<2x128xf32>
    %112 = math.exp %111 : vector<2x128xf32>
    %cst_29 = arith.constant 1.000000e+00 : f32
    %113 = vector.broadcast %cst_29 : f32 to vector<2x128xf32>
    %114 = arith.addf %113, %112 : vector<2x128xf32>
    %115 = arith.divf %113, %114 : vector<2x128xf32>
    %116 = vector.extract_strided_slice %115 {offsets = [0, 0], sizes = [2, 32], strides = [1, 1]} : vector<2x128xf32> to vector<2x32xf32>
    %117 = vector.extract_strided_slice %115 {offsets = [0, 32], sizes = [2, 32], strides = [1, 1]} : vector<2x128xf32> to vector<2x32xf32>
    %118 = vector.extract_strided_slice %115 {offsets = [0, 96], sizes = [2, 32], strides = [1, 1]} : vector<2x128xf32> to vector<2x32xf32>
    %119 = vector.extract_strided_slice %110 {offsets = [0, 64], sizes = [2, 32], strides = [1, 1]} : vector<2x128xf32> to vector<2x32xf32>
    %120 = math.tanh %119 : vector<2x32xf32>
    %121 = arith.mulf %117, %105 : vector<2x32xf32>
    %122 = arith.mulf %116, %120 : vector<2x32xf32>
    %123 = arith.addf %121, %122 : vector<2x32xf32>
    %124 = math.tanh %123 : vector<2x32xf32>
    %125 = arith.mulf %118, %124 : vector<2x32xf32>
    %126 = vector.extract_strided_slice %9 {offsets = [12, 0], sizes = [2, 128], strides = [1, 1]} : vector<32x128xf32> to vector<2x128xf32>
    %cst_30 = arith.constant dense<0.000000e+00> : vector<2x128xf32>
    %127 = tpu.matmul %125, %10, %cst_30 {dimension_numbers = #tpu.dot_dimension_numbers<[1], [0], [0], [1], [0, 0, 1, 1], [], []>} : vector<2x32xf32>, vector<32x128xf32>, vector<2x128xf32> -> vector<2x128xf32>
    %128 = arith.addf %126, %127 : vector<2x128xf32>
    %129 = arith.negf %128 : vector<2x128xf32>
    %130 = math.exp %129 : vector<2x128xf32>
    %cst_31 = arith.constant 1.000000e+00 : f32
    %131 = vector.broadcast %cst_31 : f32 to vector<2x128xf32>
    %132 = arith.addf %131, %130 : vector<2x128xf32>
    %133 = arith.divf %131, %132 : vector<2x128xf32>
    %134 = vector.extract_strided_slice %133 {offsets = [0, 0], sizes = [2, 32], strides = [1, 1]} : vector<2x128xf32> to vector<2x32xf32>
    %135 = vector.extract_strided_slice %133 {offsets = [0, 32], sizes = [2, 32], strides = [1, 1]} : vector<2x128xf32> to vector<2x32xf32>
    %136 = vector.extract_strided_slice %133 {offsets = [0, 96], sizes = [2, 32], strides = [1, 1]} : vector<2x128xf32> to vector<2x32xf32>
    %137 = vector.extract_strided_slice %128 {offsets = [0, 64], sizes = [2, 32], strides = [1, 1]} : vector<2x128xf32> to vector<2x32xf32>
    %138 = math.tanh %137 : vector<2x32xf32>
    %139 = arith.mulf %135, %123 : vector<2x32xf32>
    %140 = arith.mulf %134, %138 : vector<2x32xf32>
    %141 = arith.addf %139, %140 : vector<2x32xf32>
    %142 = math.tanh %141 : vector<2x32xf32>
    %143 = arith.mulf %136, %142 : vector<2x32xf32>
    %144 = vector.extract_strided_slice %9 {offsets = [14, 0], sizes = [2, 128], strides = [1, 1]} : vector<32x128xf32> to vector<2x128xf32>
    %cst_32 = arith.constant dense<0.000000e+00> : vector<2x128xf32>
    %145 = tpu.matmul %143, %10, %cst_32 {dimension_numbers = #tpu.dot_dimension_numbers<[1], [0], [0], [1], [0, 0, 1, 1], [], []>} : vector<2x32xf32>, vector<32x128xf32>, vector<2x128xf32> -> vector<2x128xf32>
    %146 = arith.addf %144, %145 : vector<2x128xf32>
    %147 = arith.negf %146 : vector<2x128xf32>
    %148 = math.exp %147 : vector<2x128xf32>
    %cst_33 = arith.constant 1.000000e+00 : f32
    %149 = vector.broadcast %cst_33 : f32 to vector<2x128xf32>
    %150 = arith.addf %149, %148 : vector<2x128xf32>
    %151 = arith.divf %149, %150 : vector<2x128xf32>
    %152 = vector.extract_strided_slice %151 {offsets = [0, 0], sizes = [2, 32], strides = [1, 1]} : vector<2x128xf32> to vector<2x32xf32>
    %153 = vector.extract_strided_slice %151 {offsets = [0, 32], sizes = [2, 32], strides = [1, 1]} : vector<2x128xf32> to vector<2x32xf32>
    %154 = vector.extract_strided_slice %151 {offsets = [0, 96], sizes = [2, 32], strides = [1, 1]} : vector<2x128xf32> to vector<2x32xf32>
    %155 = vector.extract_strided_slice %146 {offsets = [0, 64], sizes = [2, 32], strides = [1, 1]} : vector<2x128xf32> to vector<2x32xf32>
    %156 = math.tanh %155 : vector<2x32xf32>
    %157 = arith.mulf %153, %141 : vector<2x32xf32>
    %158 = arith.mulf %152, %156 : vector<2x32xf32>
    %159 = arith.addf %157, %158 : vector<2x32xf32>
    %160 = math.tanh %159 : vector<2x32xf32>
    %161 = arith.mulf %154, %160 : vector<2x32xf32>
    %162 = vector.extract_strided_slice %9 {offsets = [16, 0], sizes = [2, 128], strides = [1, 1]} : vector<32x128xf32> to vector<2x128xf32>
    %cst_34 = arith.constant dense<0.000000e+00> : vector<2x128xf32>
    %163 = tpu.matmul %161, %10, %cst_34 {dimension_numbers = #tpu.dot_dimension_numbers<[1], [0], [0], [1], [0, 0, 1, 1], [], []>} : vector<2x32xf32>, vector<32x128xf32>, vector<2x128xf32> -> vector<2x128xf32>
    %164 = arith.addf %162, %163 : vector<2x128xf32>
    %165 = arith.negf %164 : vector<2x128xf32>
    %166 = math.exp %165 : vector<2x128xf32>
    %cst_35 = arith.constant 1.000000e+00 : f32
    %167 = vector.broadcast %cst_35 : f32 to vector<2x128xf32>
    %168 = arith.addf %167, %166 : vector<2x128xf32>
    %169 = arith.divf %167, %168 : vector<2x128xf32>
    %170 = vector.extract_strided_slice %169 {offsets = [0, 0], sizes = [2, 32], strides = [1, 1]} : vector<2x128xf32> to vector<2x32xf32>
    %171 = vector.extract_strided_slice %169 {offsets = [0, 32], sizes = [2, 32], strides = [1, 1]} : vector<2x128xf32> to vector<2x32xf32>
    %172 = vector.extract_strided_slice %169 {offsets = [0, 96], sizes = [2, 32], strides = [1, 1]} : vector<2x128xf32> to vector<2x32xf32>
    %173 = vector.extract_strided_slice %164 {offsets = [0, 64], sizes = [2, 32], strides = [1, 1]} : vector<2x128xf32> to vector<2x32xf32>
    %174 = math.tanh %173 : vector<2x32xf32>
    %175 = arith.mulf %171, %159 : vector<2x32xf32>
    %176 = arith.mulf %170, %174 : vector<2x32xf32>
    %177 = arith.addf %175, %176 : vector<2x32xf32>
    %178 = math.tanh %177 : vector<2x32xf32>
    %179 = arith.mulf %172, %178 : vector<2x32xf32>
    %180 = vector.extract_strided_slice %9 {offsets = [18, 0], sizes = [2, 128], strides = [1, 1]} : vector<32x128xf32> to vector<2x128xf32>
    %cst_36 = arith.constant dense<0.000000e+00> : vector<2x128xf32>
    %181 = tpu.matmul %179, %10, %cst_36 {dimension_numbers = #tpu.dot_dimension_numbers<[1], [0], [0], [1], [0, 0, 1, 1], [], []>} : vector<2x32xf32>, vector<32x128xf32>, vector<2x128xf32> -> vector<2x128xf32>
    %182 = arith.addf %180, %181 : vector<2x128xf32>
    %183 = arith.negf %182 : vector<2x128xf32>
    %184 = math.exp %183 : vector<2x128xf32>
    %cst_37 = arith.constant 1.000000e+00 : f32
    %185 = vector.broadcast %cst_37 : f32 to vector<2x128xf32>
    %186 = arith.addf %185, %184 : vector<2x128xf32>
    %187 = arith.divf %185, %186 : vector<2x128xf32>
    %188 = vector.extract_strided_slice %187 {offsets = [0, 0], sizes = [2, 32], strides = [1, 1]} : vector<2x128xf32> to vector<2x32xf32>
    %189 = vector.extract_strided_slice %187 {offsets = [0, 32], sizes = [2, 32], strides = [1, 1]} : vector<2x128xf32> to vector<2x32xf32>
    %190 = vector.extract_strided_slice %187 {offsets = [0, 96], sizes = [2, 32], strides = [1, 1]} : vector<2x128xf32> to vector<2x32xf32>
    %191 = vector.extract_strided_slice %182 {offsets = [0, 64], sizes = [2, 32], strides = [1, 1]} : vector<2x128xf32> to vector<2x32xf32>
    %192 = math.tanh %191 : vector<2x32xf32>
    %193 = arith.mulf %189, %177 : vector<2x32xf32>
    %194 = arith.mulf %188, %192 : vector<2x32xf32>
    %195 = arith.addf %193, %194 : vector<2x32xf32>
    %196 = math.tanh %195 : vector<2x32xf32>
    %197 = arith.mulf %190, %196 : vector<2x32xf32>
    %198 = vector.extract_strided_slice %9 {offsets = [20, 0], sizes = [2, 128], strides = [1, 1]} : vector<32x128xf32> to vector<2x128xf32>
    %cst_38 = arith.constant dense<0.000000e+00> : vector<2x128xf32>
    %199 = tpu.matmul %197, %10, %cst_38 {dimension_numbers = #tpu.dot_dimension_numbers<[1], [0], [0], [1], [0, 0, 1, 1], [], []>} : vector<2x32xf32>, vector<32x128xf32>, vector<2x128xf32> -> vector<2x128xf32>
    %200 = arith.addf %198, %199 : vector<2x128xf32>
    %201 = arith.negf %200 : vector<2x128xf32>
    %202 = math.exp %201 : vector<2x128xf32>
    %cst_39 = arith.constant 1.000000e+00 : f32
    %203 = vector.broadcast %cst_39 : f32 to vector<2x128xf32>
    %204 = arith.addf %203, %202 : vector<2x128xf32>
    %205 = arith.divf %203, %204 : vector<2x128xf32>
    %206 = vector.extract_strided_slice %205 {offsets = [0, 0], sizes = [2, 32], strides = [1, 1]} : vector<2x128xf32> to vector<2x32xf32>
    %207 = vector.extract_strided_slice %205 {offsets = [0, 32], sizes = [2, 32], strides = [1, 1]} : vector<2x128xf32> to vector<2x32xf32>
    %208 = vector.extract_strided_slice %205 {offsets = [0, 96], sizes = [2, 32], strides = [1, 1]} : vector<2x128xf32> to vector<2x32xf32>
    %209 = vector.extract_strided_slice %200 {offsets = [0, 64], sizes = [2, 32], strides = [1, 1]} : vector<2x128xf32> to vector<2x32xf32>
    %210 = math.tanh %209 : vector<2x32xf32>
    %211 = arith.mulf %207, %195 : vector<2x32xf32>
    %212 = arith.mulf %206, %210 : vector<2x32xf32>
    %213 = arith.addf %211, %212 : vector<2x32xf32>
    %214 = math.tanh %213 : vector<2x32xf32>
    %215 = arith.mulf %208, %214 : vector<2x32xf32>
    %216 = vector.extract_strided_slice %9 {offsets = [22, 0], sizes = [2, 128], strides = [1, 1]} : vector<32x128xf32> to vector<2x128xf32>
    %cst_40 = arith.constant dense<0.000000e+00> : vector<2x128xf32>
    %217 = tpu.matmul %215, %10, %cst_40 {dimension_numbers = #tpu.dot_dimension_numbers<[1], [0], [0], [1], [0, 0, 1, 1], [], []>} : vector<2x32xf32>, vector<32x128xf32>, vector<2x128xf32> -> vector<2x128xf32>
    %218 = arith.addf %216, %217 : vector<2x128xf32>
    %219 = arith.negf %218 : vector<2x128xf32>
    %220 = math.exp %219 : vector<2x128xf32>
    %cst_41 = arith.constant 1.000000e+00 : f32
    %221 = vector.broadcast %cst_41 : f32 to vector<2x128xf32>
    %222 = arith.addf %221, %220 : vector<2x128xf32>
    %223 = arith.divf %221, %222 : vector<2x128xf32>
    %224 = vector.extract_strided_slice %223 {offsets = [0, 0], sizes = [2, 32], strides = [1, 1]} : vector<2x128xf32> to vector<2x32xf32>
    %225 = vector.extract_strided_slice %223 {offsets = [0, 32], sizes = [2, 32], strides = [1, 1]} : vector<2x128xf32> to vector<2x32xf32>
    %226 = vector.extract_strided_slice %223 {offsets = [0, 96], sizes = [2, 32], strides = [1, 1]} : vector<2x128xf32> to vector<2x32xf32>
    %227 = vector.extract_strided_slice %218 {offsets = [0, 64], sizes = [2, 32], strides = [1, 1]} : vector<2x128xf32> to vector<2x32xf32>
    %228 = math.tanh %227 : vector<2x32xf32>
    %229 = arith.mulf %225, %213 : vector<2x32xf32>
    %230 = arith.mulf %224, %228 : vector<2x32xf32>
    %231 = arith.addf %229, %230 : vector<2x32xf32>
    %232 = math.tanh %231 : vector<2x32xf32>
    %233 = arith.mulf %226, %232 : vector<2x32xf32>
    %234 = vector.extract_strided_slice %9 {offsets = [24, 0], sizes = [2, 128], strides = [1, 1]} : vector<32x128xf32> to vector<2x128xf32>
    %cst_42 = arith.constant dense<0.000000e+00> : vector<2x128xf32>
    %235 = tpu.matmul %233, %10, %cst_42 {dimension_numbers = #tpu.dot_dimension_numbers<[1], [0], [0], [1], [0, 0, 1, 1], [], []>} : vector<2x32xf32>, vector<32x128xf32>, vector<2x128xf32> -> vector<2x128xf32>
    %236 = arith.addf %234, %235 : vector<2x128xf32>
    %237 = arith.negf %236 : vector<2x128xf32>
    %238 = math.exp %237 : vector<2x128xf32>
    %cst_43 = arith.constant 1.000000e+00 : f32
    %239 = vector.broadcast %cst_43 : f32 to vector<2x128xf32>
    %240 = arith.addf %239, %238 : vector<2x128xf32>
    %241 = arith.divf %239, %240 : vector<2x128xf32>
    %242 = vector.extract_strided_slice %241 {offsets = [0, 0], sizes = [2, 32], strides = [1, 1]} : vector<2x128xf32> to vector<2x32xf32>
    %243 = vector.extract_strided_slice %241 {offsets = [0, 32], sizes = [2, 32], strides = [1, 1]} : vector<2x128xf32> to vector<2x32xf32>
    %244 = vector.extract_strided_slice %241 {offsets = [0, 96], sizes = [2, 32], strides = [1, 1]} : vector<2x128xf32> to vector<2x32xf32>
    %245 = vector.extract_strided_slice %236 {offsets = [0, 64], sizes = [2, 32], strides = [1, 1]} : vector<2x128xf32> to vector<2x32xf32>
    %246 = math.tanh %245 : vector<2x32xf32>
    %247 = arith.mulf %243, %231 : vector<2x32xf32>
    %248 = arith.mulf %242, %246 : vector<2x32xf32>
    %249 = arith.addf %247, %248 : vector<2x32xf32>
    %250 = math.tanh %249 : vector<2x32xf32>
    %251 = arith.mulf %244, %250 : vector<2x32xf32>
    %252 = vector.extract_strided_slice %9 {offsets = [26, 0], sizes = [2, 128], strides = [1, 1]} : vector<32x128xf32> to vector<2x128xf32>
    %cst_44 = arith.constant dense<0.000000e+00> : vector<2x128xf32>
    %253 = tpu.matmul %251, %10, %cst_44 {dimension_numbers = #tpu.dot_dimension_numbers<[1], [0], [0], [1], [0, 0, 1, 1], [], []>} : vector<2x32xf32>, vector<32x128xf32>, vector<2x128xf32> -> vector<2x128xf32>
    %254 = arith.addf %252, %253 : vector<2x128xf32>
    %255 = arith.negf %254 : vector<2x128xf32>
    %256 = math.exp %255 : vector<2x128xf32>
    %cst_45 = arith.constant 1.000000e+00 : f32
    %257 = vector.broadcast %cst_45 : f32 to vector<2x128xf32>
    %258 = arith.addf %257, %256 : vector<2x128xf32>
    %259 = arith.divf %257, %258 : vector<2x128xf32>
    %260 = vector.extract_strided_slice %259 {offsets = [0, 0], sizes = [2, 32], strides = [1, 1]} : vector<2x128xf32> to vector<2x32xf32>
    %261 = vector.extract_strided_slice %259 {offsets = [0, 32], sizes = [2, 32], strides = [1, 1]} : vector<2x128xf32> to vector<2x32xf32>
    %262 = vector.extract_strided_slice %259 {offsets = [0, 96], sizes = [2, 32], strides = [1, 1]} : vector<2x128xf32> to vector<2x32xf32>
    %263 = vector.extract_strided_slice %254 {offsets = [0, 64], sizes = [2, 32], strides = [1, 1]} : vector<2x128xf32> to vector<2x32xf32>
    %264 = math.tanh %263 : vector<2x32xf32>
    %265 = arith.mulf %261, %249 : vector<2x32xf32>
    %266 = arith.mulf %260, %264 : vector<2x32xf32>
    %267 = arith.addf %265, %266 : vector<2x32xf32>
    %268 = math.tanh %267 : vector<2x32xf32>
    %269 = arith.mulf %262, %268 : vector<2x32xf32>
    %270 = vector.extract_strided_slice %9 {offsets = [28, 0], sizes = [2, 128], strides = [1, 1]} : vector<32x128xf32> to vector<2x128xf32>
    %cst_46 = arith.constant dense<0.000000e+00> : vector<2x128xf32>
    %271 = tpu.matmul %269, %10, %cst_46 {dimension_numbers = #tpu.dot_dimension_numbers<[1], [0], [0], [1], [0, 0, 1, 1], [], []>} : vector<2x32xf32>, vector<32x128xf32>, vector<2x128xf32> -> vector<2x128xf32>
    %272 = arith.addf %270, %271 : vector<2x128xf32>
    %273 = arith.negf %272 : vector<2x128xf32>
    %274 = math.exp %273 : vector<2x128xf32>
    %cst_47 = arith.constant 1.000000e+00 : f32
    %275 = vector.broadcast %cst_47 : f32 to vector<2x128xf32>
    %276 = arith.addf %275, %274 : vector<2x128xf32>
    %277 = arith.divf %275, %276 : vector<2x128xf32>
    %278 = vector.extract_strided_slice %277 {offsets = [0, 0], sizes = [2, 32], strides = [1, 1]} : vector<2x128xf32> to vector<2x32xf32>
    %279 = vector.extract_strided_slice %277 {offsets = [0, 32], sizes = [2, 32], strides = [1, 1]} : vector<2x128xf32> to vector<2x32xf32>
    %280 = vector.extract_strided_slice %277 {offsets = [0, 96], sizes = [2, 32], strides = [1, 1]} : vector<2x128xf32> to vector<2x32xf32>
    %281 = vector.extract_strided_slice %272 {offsets = [0, 64], sizes = [2, 32], strides = [1, 1]} : vector<2x128xf32> to vector<2x32xf32>
    %282 = math.tanh %281 : vector<2x32xf32>
    %283 = arith.mulf %279, %267 : vector<2x32xf32>
    %284 = arith.mulf %278, %282 : vector<2x32xf32>
    %285 = arith.addf %283, %284 : vector<2x32xf32>
    %286 = math.tanh %285 : vector<2x32xf32>
    %287 = arith.mulf %280, %286 : vector<2x32xf32>
    %288 = vector.extract_strided_slice %9 {offsets = [30, 0], sizes = [2, 128], strides = [1, 1]} : vector<32x128xf32> to vector<2x128xf32>
    %cst_48 = arith.constant dense<0.000000e+00> : vector<2x128xf32>
    %289 = tpu.matmul %287, %10, %cst_48 {dimension_numbers = #tpu.dot_dimension_numbers<[1], [0], [0], [1], [0, 0, 1, 1], [], []>} : vector<2x32xf32>, vector<32x128xf32>, vector<2x128xf32> -> vector<2x128xf32>
    %290 = arith.addf %288, %289 : vector<2x128xf32>
    %291 = arith.negf %290 : vector<2x128xf32>
    %292 = math.exp %291 : vector<2x128xf32>
    %cst_49 = arith.constant 1.000000e+00 : f32
    %293 = vector.broadcast %cst_49 : f32 to vector<2x128xf32>
    %294 = arith.addf %293, %292 : vector<2x128xf32>
    %295 = arith.divf %293, %294 : vector<2x128xf32>
    %296 = vector.extract_strided_slice %295 {offsets = [0, 0], sizes = [2, 32], strides = [1, 1]} : vector<2x128xf32> to vector<2x32xf32>
    %297 = vector.extract_strided_slice %295 {offsets = [0, 32], sizes = [2, 32], strides = [1, 1]} : vector<2x128xf32> to vector<2x32xf32>
    %298 = vector.extract_strided_slice %295 {offsets = [0, 96], sizes = [2, 32], strides = [1, 1]} : vector<2x128xf32> to vector<2x32xf32>
    %299 = vector.extract_strided_slice %290 {offsets = [0, 64], sizes = [2, 32], strides = [1, 1]} : vector<2x128xf32> to vector<2x32xf32>
    %300 = math.tanh %299 : vector<2x32xf32>
    %301 = arith.mulf %297, %285 : vector<2x32xf32>
    %302 = arith.mulf %296, %300 : vector<2x32xf32>
    %303 = arith.addf %301, %302 : vector<2x32xf32>
    %304 = math.tanh %303 : vector<2x32xf32>
    %305 = arith.mulf %298, %304 : vector<2x32xf32>
    %cst_50 = arith.constant 0.000000e+00 : f32
    %306 = vector.broadcast %cst_50 : f32 to vector<2x32xf32>
    %cst_51 = arith.constant 0.000000e+00 : f32
    %307 = vector.broadcast %cst_51 : f32 to vector<2x32xf32>
    %cst_52 = arith.constant dense<0.000000e+00> : vector<2x128xf32>
    %308 = tpu.matmul %35, %12, %cst_52 {dimension_numbers = #tpu.dot_dimension_numbers<[1], [0], [0], [1], [0, 0, 1, 1], [], []>} : vector<2x32xf32>, vector<32x128xf32>, vector<2x128xf32> -> vector<2x128xf32>
    %309 = vector.broadcast %15 : vector<1x128xf32> to vector<2x128xf32>
    %310 = arith.addf %308, %309 : vector<2x128xf32>
    %cst_53 = arith.constant dense<0.000000e+00> : vector<2x128xf32>
    %311 = tpu.matmul %306, %11, %cst_53 {dimension_numbers = #tpu.dot_dimension_numbers<[1], [0], [0], [1], [0, 0, 1, 1], [], []>} : vector<2x32xf32>, vector<32x128xf32>, vector<2x128xf32> -> vector<2x128xf32>
    %312 = arith.addf %310, %311 : vector<2x128xf32>
    %313 = arith.negf %312 : vector<2x128xf32>
    %314 = math.exp %313 : vector<2x128xf32>
    %cst_54 = arith.constant 1.000000e+00 : f32
    %315 = vector.broadcast %cst_54 : f32 to vector<2x128xf32>
    %316 = arith.addf %315, %314 : vector<2x128xf32>
    %317 = arith.divf %315, %316 : vector<2x128xf32>
    %318 = vector.extract_strided_slice %317 {offsets = [0, 0], sizes = [2, 32], strides = [1, 1]} : vector<2x128xf32> to vector<2x32xf32>
    %319 = vector.extract_strided_slice %317 {offsets = [0, 32], sizes = [2, 32], strides = [1, 1]} : vector<2x128xf32> to vector<2x32xf32>
    %320 = vector.extract_strided_slice %317 {offsets = [0, 96], sizes = [2, 32], strides = [1, 1]} : vector<2x128xf32> to vector<2x32xf32>
    %321 = vector.extract_strided_slice %312 {offsets = [0, 64], sizes = [2, 32], strides = [1, 1]} : vector<2x128xf32> to vector<2x32xf32>
    %322 = math.tanh %321 : vector<2x32xf32>
    %323 = arith.mulf %319, %307 : vector<2x32xf32>
    %324 = arith.mulf %318, %322 : vector<2x32xf32>
    %325 = arith.addf %323, %324 : vector<2x32xf32>
    %326 = math.tanh %325 : vector<2x32xf32>
    %327 = arith.mulf %320, %326 : vector<2x32xf32>
    %cst_55 = arith.constant dense<0.000000e+00> : vector<2x128xf32>
    %328 = tpu.matmul %53, %12, %cst_55 {dimension_numbers = #tpu.dot_dimension_numbers<[1], [0], [0], [1], [0, 0, 1, 1], [], []>} : vector<2x32xf32>, vector<32x128xf32>, vector<2x128xf32> -> vector<2x128xf32>
    %329 = vector.broadcast %15 : vector<1x128xf32> to vector<2x128xf32>
    %330 = arith.addf %328, %329 : vector<2x128xf32>
    %cst_56 = arith.constant dense<0.000000e+00> : vector<2x128xf32>
    %331 = tpu.matmul %327, %11, %cst_56 {dimension_numbers = #tpu.dot_dimension_numbers<[1], [0], [0], [1], [0, 0, 1, 1], [], []>} : vector<2x32xf32>, vector<32x128xf32>, vector<2x128xf32> -> vector<2x128xf32>
    %332 = arith.addf %330, %331 : vector<2x128xf32>
    %333 = arith.negf %332 : vector<2x128xf32>
    %334 = math.exp %333 : vector<2x128xf32>
    %cst_57 = arith.constant 1.000000e+00 : f32
    %335 = vector.broadcast %cst_57 : f32 to vector<2x128xf32>
    %336 = arith.addf %335, %334 : vector<2x128xf32>
    %337 = arith.divf %335, %336 : vector<2x128xf32>
    %338 = vector.extract_strided_slice %337 {offsets = [0, 0], sizes = [2, 32], strides = [1, 1]} : vector<2x128xf32> to vector<2x32xf32>
    %339 = vector.extract_strided_slice %337 {offsets = [0, 32], sizes = [2, 32], strides = [1, 1]} : vector<2x128xf32> to vector<2x32xf32>
    %340 = vector.extract_strided_slice %337 {offsets = [0, 96], sizes = [2, 32], strides = [1, 1]} : vector<2x128xf32> to vector<2x32xf32>
    %341 = vector.extract_strided_slice %332 {offsets = [0, 64], sizes = [2, 32], strides = [1, 1]} : vector<2x128xf32> to vector<2x32xf32>
    %342 = math.tanh %341 : vector<2x32xf32>
    %343 = arith.mulf %339, %325 : vector<2x32xf32>
    %344 = arith.mulf %338, %342 : vector<2x32xf32>
    %345 = arith.addf %343, %344 : vector<2x32xf32>
    %346 = math.tanh %345 : vector<2x32xf32>
    %347 = arith.mulf %340, %346 : vector<2x32xf32>
    %cst_58 = arith.constant dense<0.000000e+00> : vector<2x128xf32>
    %348 = tpu.matmul %71, %12, %cst_58 {dimension_numbers = #tpu.dot_dimension_numbers<[1], [0], [0], [1], [0, 0, 1, 1], [], []>} : vector<2x32xf32>, vector<32x128xf32>, vector<2x128xf32> -> vector<2x128xf32>
    %349 = vector.broadcast %15 : vector<1x128xf32> to vector<2x128xf32>
    %350 = arith.addf %348, %349 : vector<2x128xf32>
    %cst_59 = arith.constant dense<0.000000e+00> : vector<2x128xf32>
    %351 = tpu.matmul %347, %11, %cst_59 {dimension_numbers = #tpu.dot_dimension_numbers<[1], [0], [0], [1], [0, 0, 1, 1], [], []>} : vector<2x32xf32>, vector<32x128xf32>, vector<2x128xf32> -> vector<2x128xf32>
    %352 = arith.addf %350, %351 : vector<2x128xf32>
    %353 = arith.negf %352 : vector<2x128xf32>
    %354 = math.exp %353 : vector<2x128xf32>
    %cst_60 = arith.constant 1.000000e+00 : f32
    %355 = vector.broadcast %cst_60 : f32 to vector<2x128xf32>
    %356 = arith.addf %355, %354 : vector<2x128xf32>
    %357 = arith.divf %355, %356 : vector<2x128xf32>
    %358 = vector.extract_strided_slice %357 {offsets = [0, 0], sizes = [2, 32], strides = [1, 1]} : vector<2x128xf32> to vector<2x32xf32>
    %359 = vector.extract_strided_slice %357 {offsets = [0, 32], sizes = [2, 32], strides = [1, 1]} : vector<2x128xf32> to vector<2x32xf32>
    %360 = vector.extract_strided_slice %357 {offsets = [0, 96], sizes = [2, 32], strides = [1, 1]} : vector<2x128xf32> to vector<2x32xf32>
    %361 = vector.extract_strided_slice %352 {offsets = [0, 64], sizes = [2, 32], strides = [1, 1]} : vector<2x128xf32> to vector<2x32xf32>
    %362 = math.tanh %361 : vector<2x32xf32>
    %363 = arith.mulf %359, %345 : vector<2x32xf32>
    %364 = arith.mulf %358, %362 : vector<2x32xf32>
    %365 = arith.addf %363, %364 : vector<2x32xf32>
    %366 = math.tanh %365 : vector<2x32xf32>
    %367 = arith.mulf %360, %366 : vector<2x32xf32>
    %cst_61 = arith.constant dense<0.000000e+00> : vector<2x128xf32>
    %368 = tpu.matmul %89, %12, %cst_61 {dimension_numbers = #tpu.dot_dimension_numbers<[1], [0], [0], [1], [0, 0, 1, 1], [], []>} : vector<2x32xf32>, vector<32x128xf32>, vector<2x128xf32> -> vector<2x128xf32>
    %369 = vector.broadcast %15 : vector<1x128xf32> to vector<2x128xf32>
    %370 = arith.addf %368, %369 : vector<2x128xf32>
    %cst_62 = arith.constant dense<0.000000e+00> : vector<2x128xf32>
    %371 = tpu.matmul %367, %11, %cst_62 {dimension_numbers = #tpu.dot_dimension_numbers<[1], [0], [0], [1], [0, 0, 1, 1], [], []>} : vector<2x32xf32>, vector<32x128xf32>, vector<2x128xf32> -> vector<2x128xf32>
    %372 = arith.addf %370, %371 : vector<2x128xf32>
    %373 = arith.negf %372 : vector<2x128xf32>
    %374 = math.exp %373 : vector<2x128xf32>
    %cst_63 = arith.constant 1.000000e+00 : f32
    %375 = vector.broadcast %cst_63 : f32 to vector<2x128xf32>
    %376 = arith.addf %375, %374 : vector<2x128xf32>
    %377 = arith.divf %375, %376 : vector<2x128xf32>
    %378 = vector.extract_strided_slice %377 {offsets = [0, 0], sizes = [2, 32], strides = [1, 1]} : vector<2x128xf32> to vector<2x32xf32>
    %379 = vector.extract_strided_slice %377 {offsets = [0, 32], sizes = [2, 32], strides = [1, 1]} : vector<2x128xf32> to vector<2x32xf32>
    %380 = vector.extract_strided_slice %377 {offsets = [0, 96], sizes = [2, 32], strides = [1, 1]} : vector<2x128xf32> to vector<2x32xf32>
    %381 = vector.extract_strided_slice %372 {offsets = [0, 64], sizes = [2, 32], strides = [1, 1]} : vector<2x128xf32> to vector<2x32xf32>
    %382 = math.tanh %381 : vector<2x32xf32>
    %383 = arith.mulf %379, %365 : vector<2x32xf32>
    %384 = arith.mulf %378, %382 : vector<2x32xf32>
    %385 = arith.addf %383, %384 : vector<2x32xf32>
    %386 = math.tanh %385 : vector<2x32xf32>
    %387 = arith.mulf %380, %386 : vector<2x32xf32>
    %cst_64 = arith.constant dense<0.000000e+00> : vector<2x128xf32>
    %388 = tpu.matmul %107, %12, %cst_64 {dimension_numbers = #tpu.dot_dimension_numbers<[1], [0], [0], [1], [0, 0, 1, 1], [], []>} : vector<2x32xf32>, vector<32x128xf32>, vector<2x128xf32> -> vector<2x128xf32>
    %389 = vector.broadcast %15 : vector<1x128xf32> to vector<2x128xf32>
    %390 = arith.addf %388, %389 : vector<2x128xf32>
    %cst_65 = arith.constant dense<0.000000e+00> : vector<2x128xf32>
    %391 = tpu.matmul %387, %11, %cst_65 {dimension_numbers = #tpu.dot_dimension_numbers<[1], [0], [0], [1], [0, 0, 1, 1], [], []>} : vector<2x32xf32>, vector<32x128xf32>, vector<2x128xf32> -> vector<2x128xf32>
    %392 = arith.addf %390, %391 : vector<2x128xf32>
    %393 = arith.negf %392 : vector<2x128xf32>
    %394 = math.exp %393 : vector<2x128xf32>
    %cst_66 = arith.constant 1.000000e+00 : f32
    %395 = vector.broadcast %cst_66 : f32 to vector<2x128xf32>
    %396 = arith.addf %395, %394 : vector<2x128xf32>
    %397 = arith.divf %395, %396 : vector<2x128xf32>
    %398 = vector.extract_strided_slice %397 {offsets = [0, 0], sizes = [2, 32], strides = [1, 1]} : vector<2x128xf32> to vector<2x32xf32>
    %399 = vector.extract_strided_slice %397 {offsets = [0, 32], sizes = [2, 32], strides = [1, 1]} : vector<2x128xf32> to vector<2x32xf32>
    %400 = vector.extract_strided_slice %397 {offsets = [0, 96], sizes = [2, 32], strides = [1, 1]} : vector<2x128xf32> to vector<2x32xf32>
    %401 = vector.extract_strided_slice %392 {offsets = [0, 64], sizes = [2, 32], strides = [1, 1]} : vector<2x128xf32> to vector<2x32xf32>
    %402 = math.tanh %401 : vector<2x32xf32>
    %403 = arith.mulf %399, %385 : vector<2x32xf32>
    %404 = arith.mulf %398, %402 : vector<2x32xf32>
    %405 = arith.addf %403, %404 : vector<2x32xf32>
    %406 = math.tanh %405 : vector<2x32xf32>
    %407 = arith.mulf %400, %406 : vector<2x32xf32>
    %cst_67 = arith.constant dense<0.000000e+00> : vector<2x128xf32>
    %408 = tpu.matmul %125, %12, %cst_67 {dimension_numbers = #tpu.dot_dimension_numbers<[1], [0], [0], [1], [0, 0, 1, 1], [], []>} : vector<2x32xf32>, vector<32x128xf32>, vector<2x128xf32> -> vector<2x128xf32>
    %409 = vector.broadcast %15 : vector<1x128xf32> to vector<2x128xf32>
    %410 = arith.addf %408, %409 : vector<2x128xf32>
    %cst_68 = arith.constant dense<0.000000e+00> : vector<2x128xf32>
    %411 = tpu.matmul %407, %11, %cst_68 {dimension_numbers = #tpu.dot_dimension_numbers<[1], [0], [0], [1], [0, 0, 1, 1], [], []>} : vector<2x32xf32>, vector<32x128xf32>, vector<2x128xf32> -> vector<2x128xf32>
    %412 = arith.addf %410, %411 : vector<2x128xf32>
    %413 = arith.negf %412 : vector<2x128xf32>
    %414 = math.exp %413 : vector<2x128xf32>
    %cst_69 = arith.constant 1.000000e+00 : f32
    %415 = vector.broadcast %cst_69 : f32 to vector<2x128xf32>
    %416 = arith.addf %415, %414 : vector<2x128xf32>
    %417 = arith.divf %415, %416 : vector<2x128xf32>
    %418 = vector.extract_strided_slice %417 {offsets = [0, 0], sizes = [2, 32], strides = [1, 1]} : vector<2x128xf32> to vector<2x32xf32>
    %419 = vector.extract_strided_slice %417 {offsets = [0, 32], sizes = [2, 32], strides = [1, 1]} : vector<2x128xf32> to vector<2x32xf32>
    %420 = vector.extract_strided_slice %417 {offsets = [0, 96], sizes = [2, 32], strides = [1, 1]} : vector<2x128xf32> to vector<2x32xf32>
    %421 = vector.extract_strided_slice %412 {offsets = [0, 64], sizes = [2, 32], strides = [1, 1]} : vector<2x128xf32> to vector<2x32xf32>
    %422 = math.tanh %421 : vector<2x32xf32>
    %423 = arith.mulf %419, %405 : vector<2x32xf32>
    %424 = arith.mulf %418, %422 : vector<2x32xf32>
    %425 = arith.addf %423, %424 : vector<2x32xf32>
    %426 = math.tanh %425 : vector<2x32xf32>
    %427 = arith.mulf %420, %426 : vector<2x32xf32>
    %cst_70 = arith.constant dense<0.000000e+00> : vector<2x128xf32>
    %428 = tpu.matmul %143, %12, %cst_70 {dimension_numbers = #tpu.dot_dimension_numbers<[1], [0], [0], [1], [0, 0, 1, 1], [], []>} : vector<2x32xf32>, vector<32x128xf32>, vector<2x128xf32> -> vector<2x128xf32>
    %429 = vector.broadcast %15 : vector<1x128xf32> to vector<2x128xf32>
    %430 = arith.addf %428, %429 : vector<2x128xf32>
    %cst_71 = arith.constant dense<0.000000e+00> : vector<2x128xf32>
    %431 = tpu.matmul %427, %11, %cst_71 {dimension_numbers = #tpu.dot_dimension_numbers<[1], [0], [0], [1], [0, 0, 1, 1], [], []>} : vector<2x32xf32>, vector<32x128xf32>, vector<2x128xf32> -> vector<2x128xf32>
    %432 = arith.addf %430, %431 : vector<2x128xf32>
    %433 = arith.negf %432 : vector<2x128xf32>
    %434 = math.exp %433 : vector<2x128xf32>
    %cst_72 = arith.constant 1.000000e+00 : f32
    %435 = vector.broadcast %cst_72 : f32 to vector<2x128xf32>
    %436 = arith.addf %435, %434 : vector<2x128xf32>
    %437 = arith.divf %435, %436 : vector<2x128xf32>
    %438 = vector.extract_strided_slice %437 {offsets = [0, 0], sizes = [2, 32], strides = [1, 1]} : vector<2x128xf32> to vector<2x32xf32>
    %439 = vector.extract_strided_slice %437 {offsets = [0, 32], sizes = [2, 32], strides = [1, 1]} : vector<2x128xf32> to vector<2x32xf32>
    %440 = vector.extract_strided_slice %437 {offsets = [0, 96], sizes = [2, 32], strides = [1, 1]} : vector<2x128xf32> to vector<2x32xf32>
    %441 = vector.extract_strided_slice %432 {offsets = [0, 64], sizes = [2, 32], strides = [1, 1]} : vector<2x128xf32> to vector<2x32xf32>
    %442 = math.tanh %441 : vector<2x32xf32>
    %443 = arith.mulf %439, %425 : vector<2x32xf32>
    %444 = arith.mulf %438, %442 : vector<2x32xf32>
    %445 = arith.addf %443, %444 : vector<2x32xf32>
    %446 = math.tanh %445 : vector<2x32xf32>
    %447 = arith.mulf %440, %446 : vector<2x32xf32>
    %cst_73 = arith.constant dense<0.000000e+00> : vector<2x128xf32>
    %448 = tpu.matmul %161, %12, %cst_73 {dimension_numbers = #tpu.dot_dimension_numbers<[1], [0], [0], [1], [0, 0, 1, 1], [], []>} : vector<2x32xf32>, vector<32x128xf32>, vector<2x128xf32> -> vector<2x128xf32>
    %449 = vector.broadcast %15 : vector<1x128xf32> to vector<2x128xf32>
    %450 = arith.addf %448, %449 : vector<2x128xf32>
    %cst_74 = arith.constant dense<0.000000e+00> : vector<2x128xf32>
    %451 = tpu.matmul %447, %11, %cst_74 {dimension_numbers = #tpu.dot_dimension_numbers<[1], [0], [0], [1], [0, 0, 1, 1], [], []>} : vector<2x32xf32>, vector<32x128xf32>, vector<2x128xf32> -> vector<2x128xf32>
    %452 = arith.addf %450, %451 : vector<2x128xf32>
    %453 = arith.negf %452 : vector<2x128xf32>
    %454 = math.exp %453 : vector<2x128xf32>
    %cst_75 = arith.constant 1.000000e+00 : f32
    %455 = vector.broadcast %cst_75 : f32 to vector<2x128xf32>
    %456 = arith.addf %455, %454 : vector<2x128xf32>
    %457 = arith.divf %455, %456 : vector<2x128xf32>
    %458 = vector.extract_strided_slice %457 {offsets = [0, 0], sizes = [2, 32], strides = [1, 1]} : vector<2x128xf32> to vector<2x32xf32>
    %459 = vector.extract_strided_slice %457 {offsets = [0, 32], sizes = [2, 32], strides = [1, 1]} : vector<2x128xf32> to vector<2x32xf32>
    %460 = vector.extract_strided_slice %457 {offsets = [0, 96], sizes = [2, 32], strides = [1, 1]} : vector<2x128xf32> to vector<2x32xf32>
    %461 = vector.extract_strided_slice %452 {offsets = [0, 64], sizes = [2, 32], strides = [1, 1]} : vector<2x128xf32> to vector<2x32xf32>
    %462 = math.tanh %461 : vector<2x32xf32>
    %463 = arith.mulf %459, %445 : vector<2x32xf32>
    %464 = arith.mulf %458, %462 : vector<2x32xf32>
    %465 = arith.addf %463, %464 : vector<2x32xf32>
    %466 = math.tanh %465 : vector<2x32xf32>
    %467 = arith.mulf %460, %466 : vector<2x32xf32>
    %cst_76 = arith.constant dense<0.000000e+00> : vector<2x128xf32>
    %468 = tpu.matmul %179, %12, %cst_76 {dimension_numbers = #tpu.dot_dimension_numbers<[1], [0], [0], [1], [0, 0, 1, 1], [], []>} : vector<2x32xf32>, vector<32x128xf32>, vector<2x128xf32> -> vector<2x128xf32>
    %469 = vector.broadcast %15 : vector<1x128xf32> to vector<2x128xf32>
    %470 = arith.addf %468, %469 : vector<2x128xf32>
    %cst_77 = arith.constant dense<0.000000e+00> : vector<2x128xf32>
    %471 = tpu.matmul %467, %11, %cst_77 {dimension_numbers = #tpu.dot_dimension_numbers<[1], [0], [0], [1], [0, 0, 1, 1], [], []>} : vector<2x32xf32>, vector<32x128xf32>, vector<2x128xf32> -> vector<2x128xf32>
    %472 = arith.addf %470, %471 : vector<2x128xf32>
    %473 = arith.negf %472 : vector<2x128xf32>
    %474 = math.exp %473 : vector<2x128xf32>
    %cst_78 = arith.constant 1.000000e+00 : f32
    %475 = vector.broadcast %cst_78 : f32 to vector<2x128xf32>
    %476 = arith.addf %475, %474 : vector<2x128xf32>
    %477 = arith.divf %475, %476 : vector<2x128xf32>
    %478 = vector.extract_strided_slice %477 {offsets = [0, 0], sizes = [2, 32], strides = [1, 1]} : vector<2x128xf32> to vector<2x32xf32>
    %479 = vector.extract_strided_slice %477 {offsets = [0, 32], sizes = [2, 32], strides = [1, 1]} : vector<2x128xf32> to vector<2x32xf32>
    %480 = vector.extract_strided_slice %477 {offsets = [0, 96], sizes = [2, 32], strides = [1, 1]} : vector<2x128xf32> to vector<2x32xf32>
    %481 = vector.extract_strided_slice %472 {offsets = [0, 64], sizes = [2, 32], strides = [1, 1]} : vector<2x128xf32> to vector<2x32xf32>
    %482 = math.tanh %481 : vector<2x32xf32>
    %483 = arith.mulf %479, %465 : vector<2x32xf32>
    %484 = arith.mulf %478, %482 : vector<2x32xf32>
    %485 = arith.addf %483, %484 : vector<2x32xf32>
    %486 = math.tanh %485 : vector<2x32xf32>
    %487 = arith.mulf %480, %486 : vector<2x32xf32>
    %cst_79 = arith.constant dense<0.000000e+00> : vector<2x128xf32>
    %488 = tpu.matmul %197, %12, %cst_79 {dimension_numbers = #tpu.dot_dimension_numbers<[1], [0], [0], [1], [0, 0, 1, 1], [], []>} : vector<2x32xf32>, vector<32x128xf32>, vector<2x128xf32> -> vector<2x128xf32>
    %489 = vector.broadcast %15 : vector<1x128xf32> to vector<2x128xf32>
    %490 = arith.addf %488, %489 : vector<2x128xf32>
    %cst_80 = arith.constant dense<0.000000e+00> : vector<2x128xf32>
    %491 = tpu.matmul %487, %11, %cst_80 {dimension_numbers = #tpu.dot_dimension_numbers<[1], [0], [0], [1], [0, 0, 1, 1], [], []>} : vector<2x32xf32>, vector<32x128xf32>, vector<2x128xf32> -> vector<2x128xf32>
    %492 = arith.addf %490, %491 : vector<2x128xf32>
    %493 = arith.negf %492 : vector<2x128xf32>
    %494 = math.exp %493 : vector<2x128xf32>
    %cst_81 = arith.constant 1.000000e+00 : f32
    %495 = vector.broadcast %cst_81 : f32 to vector<2x128xf32>
    %496 = arith.addf %495, %494 : vector<2x128xf32>
    %497 = arith.divf %495, %496 : vector<2x128xf32>
    %498 = vector.extract_strided_slice %497 {offsets = [0, 0], sizes = [2, 32], strides = [1, 1]} : vector<2x128xf32> to vector<2x32xf32>
    %499 = vector.extract_strided_slice %497 {offsets = [0, 32], sizes = [2, 32], strides = [1, 1]} : vector<2x128xf32> to vector<2x32xf32>
    %500 = vector.extract_strided_slice %497 {offsets = [0, 96], sizes = [2, 32], strides = [1, 1]} : vector<2x128xf32> to vector<2x32xf32>
    %501 = vector.extract_strided_slice %492 {offsets = [0, 64], sizes = [2, 32], strides = [1, 1]} : vector<2x128xf32> to vector<2x32xf32>
    %502 = math.tanh %501 : vector<2x32xf32>
    %503 = arith.mulf %499, %485 : vector<2x32xf32>
    %504 = arith.mulf %498, %502 : vector<2x32xf32>
    %505 = arith.addf %503, %504 : vector<2x32xf32>
    %506 = math.tanh %505 : vector<2x32xf32>
    %507 = arith.mulf %500, %506 : vector<2x32xf32>
    %cst_82 = arith.constant dense<0.000000e+00> : vector<2x128xf32>
    %508 = tpu.matmul %215, %12, %cst_82 {dimension_numbers = #tpu.dot_dimension_numbers<[1], [0], [0], [1], [0, 0, 1, 1], [], []>} : vector<2x32xf32>, vector<32x128xf32>, vector<2x128xf32> -> vector<2x128xf32>
    %509 = vector.broadcast %15 : vector<1x128xf32> to vector<2x128xf32>
    %510 = arith.addf %508, %509 : vector<2x128xf32>
    %cst_83 = arith.constant dense<0.000000e+00> : vector<2x128xf32>
    %511 = tpu.matmul %507, %11, %cst_83 {dimension_numbers = #tpu.dot_dimension_numbers<[1], [0], [0], [1], [0, 0, 1, 1], [], []>} : vector<2x32xf32>, vector<32x128xf32>, vector<2x128xf32> -> vector<2x128xf32>
    %512 = arith.addf %510, %511 : vector<2x128xf32>
    %513 = arith.negf %512 : vector<2x128xf32>
    %514 = math.exp %513 : vector<2x128xf32>
    %cst_84 = arith.constant 1.000000e+00 : f32
    %515 = vector.broadcast %cst_84 : f32 to vector<2x128xf32>
    %516 = arith.addf %515, %514 : vector<2x128xf32>
    %517 = arith.divf %515, %516 : vector<2x128xf32>
    %518 = vector.extract_strided_slice %517 {offsets = [0, 0], sizes = [2, 32], strides = [1, 1]} : vector<2x128xf32> to vector<2x32xf32>
    %519 = vector.extract_strided_slice %517 {offsets = [0, 32], sizes = [2, 32], strides = [1, 1]} : vector<2x128xf32> to vector<2x32xf32>
    %520 = vector.extract_strided_slice %517 {offsets = [0, 96], sizes = [2, 32], strides = [1, 1]} : vector<2x128xf32> to vector<2x32xf32>
    %521 = vector.extract_strided_slice %512 {offsets = [0, 64], sizes = [2, 32], strides = [1, 1]} : vector<2x128xf32> to vector<2x32xf32>
    %522 = math.tanh %521 : vector<2x32xf32>
    %523 = arith.mulf %519, %505 : vector<2x32xf32>
    %524 = arith.mulf %518, %522 : vector<2x32xf32>
    %525 = arith.addf %523, %524 : vector<2x32xf32>
    %526 = math.tanh %525 : vector<2x32xf32>
    %527 = arith.mulf %520, %526 : vector<2x32xf32>
    %cst_85 = arith.constant dense<0.000000e+00> : vector<2x128xf32>
    %528 = tpu.matmul %233, %12, %cst_85 {dimension_numbers = #tpu.dot_dimension_numbers<[1], [0], [0], [1], [0, 0, 1, 1], [], []>} : vector<2x32xf32>, vector<32x128xf32>, vector<2x128xf32> -> vector<2x128xf32>
    %529 = vector.broadcast %15 : vector<1x128xf32> to vector<2x128xf32>
    %530 = arith.addf %528, %529 : vector<2x128xf32>
    %cst_86 = arith.constant dense<0.000000e+00> : vector<2x128xf32>
    %531 = tpu.matmul %527, %11, %cst_86 {dimension_numbers = #tpu.dot_dimension_numbers<[1], [0], [0], [1], [0, 0, 1, 1], [], []>} : vector<2x32xf32>, vector<32x128xf32>, vector<2x128xf32> -> vector<2x128xf32>
    %532 = arith.addf %530, %531 : vector<2x128xf32>
    %533 = arith.negf %532 : vector<2x128xf32>
    %534 = math.exp %533 : vector<2x128xf32>
    %cst_87 = arith.constant 1.000000e+00 : f32
    %535 = vector.broadcast %cst_87 : f32 to vector<2x128xf32>
    %536 = arith.addf %535, %534 : vector<2x128xf32>
    %537 = arith.divf %535, %536 : vector<2x128xf32>
    %538 = vector.extract_strided_slice %537 {offsets = [0, 0], sizes = [2, 32], strides = [1, 1]} : vector<2x128xf32> to vector<2x32xf32>
    %539 = vector.extract_strided_slice %537 {offsets = [0, 32], sizes = [2, 32], strides = [1, 1]} : vector<2x128xf32> to vector<2x32xf32>
    %540 = vector.extract_strided_slice %537 {offsets = [0, 96], sizes = [2, 32], strides = [1, 1]} : vector<2x128xf32> to vector<2x32xf32>
    %541 = vector.extract_strided_slice %532 {offsets = [0, 64], sizes = [2, 32], strides = [1, 1]} : vector<2x128xf32> to vector<2x32xf32>
    %542 = math.tanh %541 : vector<2x32xf32>
    %543 = arith.mulf %539, %525 : vector<2x32xf32>
    %544 = arith.mulf %538, %542 : vector<2x32xf32>
    %545 = arith.addf %543, %544 : vector<2x32xf32>
    %546 = math.tanh %545 : vector<2x32xf32>
    %547 = arith.mulf %540, %546 : vector<2x32xf32>
    %cst_88 = arith.constant dense<0.000000e+00> : vector<2x128xf32>
    %548 = tpu.matmul %251, %12, %cst_88 {dimension_numbers = #tpu.dot_dimension_numbers<[1], [0], [0], [1], [0, 0, 1, 1], [], []>} : vector<2x32xf32>, vector<32x128xf32>, vector<2x128xf32> -> vector<2x128xf32>
    %549 = vector.broadcast %15 : vector<1x128xf32> to vector<2x128xf32>
    %550 = arith.addf %548, %549 : vector<2x128xf32>
    %cst_89 = arith.constant dense<0.000000e+00> : vector<2x128xf32>
    %551 = tpu.matmul %547, %11, %cst_89 {dimension_numbers = #tpu.dot_dimension_numbers<[1], [0], [0], [1], [0, 0, 1, 1], [], []>} : vector<2x32xf32>, vector<32x128xf32>, vector<2x128xf32> -> vector<2x128xf32>
    %552 = arith.addf %550, %551 : vector<2x128xf32>
    %553 = arith.negf %552 : vector<2x128xf32>
    %554 = math.exp %553 : vector<2x128xf32>
    %cst_90 = arith.constant 1.000000e+00 : f32
    %555 = vector.broadcast %cst_90 : f32 to vector<2x128xf32>
    %556 = arith.addf %555, %554 : vector<2x128xf32>
    %557 = arith.divf %555, %556 : vector<2x128xf32>
    %558 = vector.extract_strided_slice %557 {offsets = [0, 0], sizes = [2, 32], strides = [1, 1]} : vector<2x128xf32> to vector<2x32xf32>
    %559 = vector.extract_strided_slice %557 {offsets = [0, 32], sizes = [2, 32], strides = [1, 1]} : vector<2x128xf32> to vector<2x32xf32>
    %560 = vector.extract_strided_slice %557 {offsets = [0, 96], sizes = [2, 32], strides = [1, 1]} : vector<2x128xf32> to vector<2x32xf32>
    %561 = vector.extract_strided_slice %552 {offsets = [0, 64], sizes = [2, 32], strides = [1, 1]} : vector<2x128xf32> to vector<2x32xf32>
    %562 = math.tanh %561 : vector<2x32xf32>
    %563 = arith.mulf %559, %545 : vector<2x32xf32>
    %564 = arith.mulf %558, %562 : vector<2x32xf32>
    %565 = arith.addf %563, %564 : vector<2x32xf32>
    %566 = math.tanh %565 : vector<2x32xf32>
    %567 = arith.mulf %560, %566 : vector<2x32xf32>
    %cst_91 = arith.constant dense<0.000000e+00> : vector<2x128xf32>
    %568 = tpu.matmul %269, %12, %cst_91 {dimension_numbers = #tpu.dot_dimension_numbers<[1], [0], [0], [1], [0, 0, 1, 1], [], []>} : vector<2x32xf32>, vector<32x128xf32>, vector<2x128xf32> -> vector<2x128xf32>
    %569 = vector.broadcast %15 : vector<1x128xf32> to vector<2x128xf32>
    %570 = arith.addf %568, %569 : vector<2x128xf32>
    %cst_92 = arith.constant dense<0.000000e+00> : vector<2x128xf32>
    %571 = tpu.matmul %567, %11, %cst_92 {dimension_numbers = #tpu.dot_dimension_numbers<[1], [0], [0], [1], [0, 0, 1, 1], [], []>} : vector<2x32xf32>, vector<32x128xf32>, vector<2x128xf32> -> vector<2x128xf32>
    %572 = arith.addf %570, %571 : vector<2x128xf32>
    %573 = arith.negf %572 : vector<2x128xf32>
    %574 = math.exp %573 : vector<2x128xf32>
    %cst_93 = arith.constant 1.000000e+00 : f32
    %575 = vector.broadcast %cst_93 : f32 to vector<2x128xf32>
    %576 = arith.addf %575, %574 : vector<2x128xf32>
    %577 = arith.divf %575, %576 : vector<2x128xf32>
    %578 = vector.extract_strided_slice %577 {offsets = [0, 0], sizes = [2, 32], strides = [1, 1]} : vector<2x128xf32> to vector<2x32xf32>
    %579 = vector.extract_strided_slice %577 {offsets = [0, 32], sizes = [2, 32], strides = [1, 1]} : vector<2x128xf32> to vector<2x32xf32>
    %580 = vector.extract_strided_slice %577 {offsets = [0, 96], sizes = [2, 32], strides = [1, 1]} : vector<2x128xf32> to vector<2x32xf32>
    %581 = vector.extract_strided_slice %572 {offsets = [0, 64], sizes = [2, 32], strides = [1, 1]} : vector<2x128xf32> to vector<2x32xf32>
    %582 = math.tanh %581 : vector<2x32xf32>
    %583 = arith.mulf %579, %565 : vector<2x32xf32>
    %584 = arith.mulf %578, %582 : vector<2x32xf32>
    %585 = arith.addf %583, %584 : vector<2x32xf32>
    %586 = math.tanh %585 : vector<2x32xf32>
    %587 = arith.mulf %580, %586 : vector<2x32xf32>
    %cst_94 = arith.constant dense<0.000000e+00> : vector<2x128xf32>
    %588 = tpu.matmul %287, %12, %cst_94 {dimension_numbers = #tpu.dot_dimension_numbers<[1], [0], [0], [1], [0, 0, 1, 1], [], []>} : vector<2x32xf32>, vector<32x128xf32>, vector<2x128xf32> -> vector<2x128xf32>
    %589 = vector.broadcast %15 : vector<1x128xf32> to vector<2x128xf32>
    %590 = arith.addf %588, %589 : vector<2x128xf32>
    %cst_95 = arith.constant dense<0.000000e+00> : vector<2x128xf32>
    %591 = tpu.matmul %587, %11, %cst_95 {dimension_numbers = #tpu.dot_dimension_numbers<[1], [0], [0], [1], [0, 0, 1, 1], [], []>} : vector<2x32xf32>, vector<32x128xf32>, vector<2x128xf32> -> vector<2x128xf32>
    %592 = arith.addf %590, %591 : vector<2x128xf32>
    %593 = arith.negf %592 : vector<2x128xf32>
    %594 = math.exp %593 : vector<2x128xf32>
    %cst_96 = arith.constant 1.000000e+00 : f32
    %595 = vector.broadcast %cst_96 : f32 to vector<2x128xf32>
    %596 = arith.addf %595, %594 : vector<2x128xf32>
    %597 = arith.divf %595, %596 : vector<2x128xf32>
    %598 = vector.extract_strided_slice %597 {offsets = [0, 0], sizes = [2, 32], strides = [1, 1]} : vector<2x128xf32> to vector<2x32xf32>
    %599 = vector.extract_strided_slice %597 {offsets = [0, 32], sizes = [2, 32], strides = [1, 1]} : vector<2x128xf32> to vector<2x32xf32>
    %600 = vector.extract_strided_slice %597 {offsets = [0, 96], sizes = [2, 32], strides = [1, 1]} : vector<2x128xf32> to vector<2x32xf32>
    %601 = vector.extract_strided_slice %592 {offsets = [0, 64], sizes = [2, 32], strides = [1, 1]} : vector<2x128xf32> to vector<2x32xf32>
    %602 = math.tanh %601 : vector<2x32xf32>
    %603 = arith.mulf %599, %585 : vector<2x32xf32>
    %604 = arith.mulf %598, %602 : vector<2x32xf32>
    %605 = arith.addf %603, %604 : vector<2x32xf32>
    %606 = math.tanh %605 : vector<2x32xf32>
    %607 = arith.mulf %600, %606 : vector<2x32xf32>
    %cst_97 = arith.constant dense<0.000000e+00> : vector<2x128xf32>
    %608 = tpu.matmul %305, %12, %cst_97 {dimension_numbers = #tpu.dot_dimension_numbers<[1], [0], [0], [1], [0, 0, 1, 1], [], []>} : vector<2x32xf32>, vector<32x128xf32>, vector<2x128xf32> -> vector<2x128xf32>
    %609 = vector.broadcast %15 : vector<1x128xf32> to vector<2x128xf32>
    %610 = arith.addf %608, %609 : vector<2x128xf32>
    %cst_98 = arith.constant dense<0.000000e+00> : vector<2x128xf32>
    %611 = tpu.matmul %607, %11, %cst_98 {dimension_numbers = #tpu.dot_dimension_numbers<[1], [0], [0], [1], [0, 0, 1, 1], [], []>} : vector<2x32xf32>, vector<32x128xf32>, vector<2x128xf32> -> vector<2x128xf32>
    %612 = arith.addf %610, %611 : vector<2x128xf32>
    %613 = arith.negf %612 : vector<2x128xf32>
    %614 = math.exp %613 : vector<2x128xf32>
    %cst_99 = arith.constant 1.000000e+00 : f32
    %615 = vector.broadcast %cst_99 : f32 to vector<2x128xf32>
    %616 = arith.addf %615, %614 : vector<2x128xf32>
    %617 = arith.divf %615, %616 : vector<2x128xf32>
    %618 = vector.extract_strided_slice %617 {offsets = [0, 0], sizes = [2, 32], strides = [1, 1]} : vector<2x128xf32> to vector<2x32xf32>
    %619 = vector.extract_strided_slice %617 {offsets = [0, 32], sizes = [2, 32], strides = [1, 1]} : vector<2x128xf32> to vector<2x32xf32>
    %620 = vector.extract_strided_slice %617 {offsets = [0, 96], sizes = [2, 32], strides = [1, 1]} : vector<2x128xf32> to vector<2x32xf32>
    %621 = vector.extract_strided_slice %612 {offsets = [0, 64], sizes = [2, 32], strides = [1, 1]} : vector<2x128xf32> to vector<2x32xf32>
    %622 = math.tanh %621 : vector<2x32xf32>
    %623 = arith.mulf %619, %605 : vector<2x32xf32>
    %624 = arith.mulf %618, %622 : vector<2x32xf32>
    %625 = arith.addf %623, %624 : vector<2x32xf32>
    %626 = math.tanh %625 : vector<2x32xf32>
    %627 = arith.mulf %620, %626 : vector<2x32xf32>
    %628 = tpu.concatenate %327, %347, %367, %387, %407, %427, %447, %467, %487, %507, %527, %547, %567, %587, %607, %627 in 0 : vector<2x32xf32>, vector<2x32xf32>, vector<2x32xf32>, vector<2x32xf32>, vector<2x32xf32>, vector<2x32xf32>, vector<2x32xf32>, vector<2x32xf32>, vector<2x32xf32>, vector<2x32xf32>, vector<2x32xf32>, vector<2x32xf32>, vector<2x32xf32>, vector<2x32xf32>, vector<2x32xf32>, vector<2x32xf32> -> vector<32x32xf32>
    %c0_100 = arith.constant 0 : index
    %c0_101 = arith.constant 0 : index
    %629 = vector.load %arg10[%c0_100, %c0_101] : memref<1x32xf32, #tpu.memory_space<vmem>>, vector<1x32xf32>
    %c0_102 = arith.constant 0 : index
    %c0_103 = arith.constant 0 : index
    %630 = vector.load %arg11[%c0_102, %c0_103] : memref<1x1xf32, #tpu.memory_space<vmem>>, vector<1x1xf32>
    %631 = vector.broadcast %629 : vector<1x32xf32> to vector<32x32xf32>
    %632 = arith.mulf %628, %631 : vector<32x32xf32>
    %cst_104 = arith.constant dense<0.000000e+00> : vector<32xf32>
    %633 = vector.multi_reduction <add>, %632, %cst_104 [1] : vector<32x32xf32> to vector<32xf32>
    %634 = vector.shape_cast %633 : vector<32xf32> to vector<32x1xf32>
    %635 = vector.broadcast %630 : vector<1x1xf32> to vector<32x1xf32>
    %636 = arith.addf %634, %635 : vector<32x1xf32>
    %c0_105 = arith.constant 0 : index
    %c0_106 = arith.constant 0 : index
    %637 = vector.load %arg12[%c0_105, %c0_106] : memref<32x1xf32, #tpu.memory_space<vmem>>, vector<32x1xf32>
    tpu.vector_store %arg12[%c0_105, %c0_106], %636 {strides = array<i32>} : memref<32x1xf32, #tpu.memory_space<vmem>>, vector<32x1xf32>,
    return
  }
  func.func @transform_0(%arg0: i32) -> (i32, i32) {
    %c0_i32 = arith.constant 0 : i32
    %c0_i32_0 = arith.constant 0 : i32
    %c0_i32_1 = arith.constant 0 : i32
    return %c0_i32, %c0_i32_0 : i32, i32
  }
  func.func @transform_1(%arg0: i32) -> (i32, i32) {
    %c0_i32 = arith.constant 0 : i32
    %c0_i32_0 = arith.constant 0 : i32
    %c0_i32_1 = arith.constant 0 : i32
    return %c0_i32, %c0_i32_0 : i32, i32
  }
  func.func @transform_2(%arg0: i32) -> (i32, i32) {
    %c0_i32 = arith.constant 0 : i32
    %c0_i32_0 = arith.constant 0 : i32
    %c0_i32_1 = arith.constant 0 : i32
    return %c0_i32, %c0_i32_0 : i32, i32
  }
  func.func @transform_3(%arg0: i32) -> (i32, i32) {
    %c0_i32 = arith.constant 0 : i32
    %c0_i32_0 = arith.constant 0 : i32
    %c0_i32_1 = arith.constant 0 : i32
    return %c0_i32, %c0_i32_0 : i32, i32
  }
  func.func @transform_4(%arg0: i32) -> (i32, i32) {
    %c0_i32 = arith.constant 0 : i32
    %c0_i32_0 = arith.constant 0 : i32
    %c0_i32_1 = arith.constant 0 : i32
    return %c0_i32, %c0_i32_0 : i32, i32
  }
  func.func @transform_5(%arg0: i32) -> (i32, i32) {
    %c0_i32 = arith.constant 0 : i32
    %c0_i32_0 = arith.constant 0 : i32
    %c0_i32_1 = arith.constant 0 : i32
    return %c0_i32, %c0_i32_0 : i32, i32
  }
  func.func @transform_6(%arg0: i32) -> (i32, i32) {
    %c0_i32 = arith.constant 0 : i32
    %c0_i32_0 = arith.constant 0 : i32
    %c0_i32_1 = arith.constant 0 : i32
    return %c0_i32, %c0_i32_0 : i32, i32
  }
  func.func @transform_7(%arg0: i32) -> (i32, i32) {
    %c0_i32 = arith.constant 0 : i32
    %c0_i32_0 = arith.constant 0 : i32
    %c0_i32_1 = arith.constant 0 : i32
    return %c0_i32, %c0_i32_0 : i32, i32
  }
  func.func @transform_8(%arg0: i32) -> (i32, i32) {
    %c0_i32 = arith.constant 0 : i32
    %c0_i32_0 = arith.constant 0 : i32
    %c0_i32_1 = arith.constant 0 : i32
    return %c0_i32, %c0_i32_0 : i32, i32
  }
  func.func @transform_9(%arg0: i32) -> (i32, i32) {
    %c0_i32 = arith.constant 0 : i32
    %c0_i32_0 = arith.constant 0 : i32
    %c0_i32_1 = arith.constant 0 : i32
    return %c0_i32, %c0_i32_0 : i32, i32
  }
  func.func @transform_10(%arg0: i32) -> (i32, i32) {
    %c0_i32 = arith.constant 0 : i32
    %c0_i32_0 = arith.constant 0 : i32
    %c0_i32_1 = arith.constant 0 : i32
    return %c0_i32, %c0_i32_0 : i32, i32
  }
  func.func @transform_11(%arg0: i32) -> (i32, i32) {
    %c0_i32 = arith.constant 0 : i32
    %c0_i32_0 = arith.constant 0 : i32
    %c0_i32_1 = arith.constant 0 : i32
    return %c0_i32, %c0_i32_0 : i32, i32
  }
}

</mosaic_0001>

<bundles_post_ra>
// kernel: tpu_custom_call.1
= control target key start
LH: loop header
LB: loop body
LE: loop exit
PB: predicated region body
PF: predicated region fallthrough
CT: control target
= control target key end

     0   :  { %s3770_s0 = inlined_call_operand.vmem [shape: f32[32,1], index: 0, kind: input, shape index: {}]   ;;  %s3771_s1 = inlined_call_operand.vmem [shape: f32[1,128], index: 1, kind: input, shape index: {}]   ;;  %s3772_s2 = inlined_call_operand.vmem [shape: f32[32,128], index: 2, kind: input, shape index: {}]   ;;  %s3773_s3 = inlined_call_operand.vmem [shape: f32[1,128], index: 3, kind: input, shape index: {}]   ;;  %s3774_s4 = inlined_call_operand.vmem [shape: f32[1,128], index: 4, kind: input, shape index: {}]   ;;  %s3775_s5 = inlined_call_operand.hbm [shape: f32[32,128], index: 5, kind: input, shape index: {}]   ;;  %s3776_s6 = inlined_call_operand.hbm [shape: f32[32,128], index: 6, kind: input, shape index: {}]   ;;  %s3777_s7 = inlined_call_operand.vmem [shape: f32[1,128], index: 7, kind: input, shape index: {}]   ;;  %s3778_s8 = inlined_call_operand.vmem [shape: f32[1,128], index: 8, kind: input, shape index: {}]   ;;  %s3779_s9 = inlined_call_operand.vmem [shape: f32[1,32], index: 9, kind: input, shape index: {}]   ;;  %s3780_s10 = inlined_call_operand.<no memory space> [shape: f32[1,1], index: 10, kind: input, shape index: {}]   ;;  %s3781_s11 = inlined_call_operand.vmem [shape: f32[32,1], index: 11, kind: output, shape index: {}]  }
   0x1   :  { %v16_v0 = vstv %s3780_s10 }
   0x2   :  { %17 = vst [vmem:[#allocation2] sm:$0x1] %v16_v0 }
   0x3   :  { %18 = vsyncpa [#allocation4], 0  ;;  %s34_s21 = sshll.u32 %s3775_s5, 4  ;;  %s35_s21 = int_to_ptr.hbm [resolvable:$true] %s34_s21 }
   0x4   :  { %19 = vsyncpa [#allocation6], 0  ;;  %s3063_s22 = smov [#allocation3]   ;;  %s47_s26 = sshll.u32 %s3776_s6, 4  ;;  %s48_s26 = int_to_ptr.hbm [resolvable:$true] %s47_s26 }
   0x5   :  { %s36_s23 = sshll.u32 %s3063_s22, 4  ;;  %s3064_s27 = smov 128   ;;  %s37_s23 = int_to_ptr.vmem [resolvable:$true] %s36_s23 }
   0x6   :  { %s3065_s28 = smov 8   ;;  %s3066_s10 = smov [#allocation5]  }
   0x7   :  { %42 = dma.hbm_to_vmem [thread:$0]  %s35_s21, 512, %s37_s23, [#allocation4], %s3064_s27, %s3064_s27, %s3065_s28  }
   0x8   :  { %s49_s29 = sshll.u32 %s3066_s10, 4  ;;  %s50_s29 = int_to_ptr.vmem [resolvable:$true] %s49_s29 }
   0x9   :  { %55 = dma.hbm_to_vmem [thread:$0]  %s48_s26, 512, %s50_s29, [#allocation6], %s3064_s27, %s3064_s27, %s3065_s28  }
   0xa   :  { %3059 = dma.done.wait [#allocation4], 512  }
   0xb   :  { %3060 = vsyncadd [#allocation4], 4294966784 }
   0xc   :  { %3061 = dma.done.wait [#allocation6], 512  }
   0xd   :  { %3062 = vsyncadd [#allocation6], 4294966784  ;;  %v3067_v1 = vmov 0   ;;  %v3144_v2 = vld [vmem:[%s3772_s2 + $0x18] sm:$0xff]  ;;  %v3149_v3 = vld [vmem:[%s3772_s2 + $0x10] sm:$0xff]  ;;  %v3068_v7 = vmov 0.0  }
   0xe   :  { %2744 = vset.pattern.permute.xlu0 %v3067_v1  ;;  %2745 = vset.pattern.permute.xlu2 %v3067_v1  ;;  %v72_v4 = vld [vmem:[%s3770_s0] sm:$0xff]  ;;  %v3159_v5 = vld [vmem:[%s3772_s2 + $0x8] sm:$0xff]  ;;  %vm129_vm4 = vcmask 261120   ;;  %s3071_s12 = smov 96  }
   0xf   :  { %2746 = vset.pattern.permute.xlu1 %v3067_v1  ;;  %145 = vmatpush.msra.mxu0 %v3144_v2  ;;  %v3167_v6 = vld [vmem:[%s3772_s2] sm:$0xff] }
  0x10   :  { %208 = vmatpush.msra.mxu1 %v3144_v2  ;;  %79 = vperm.xlu0 %2744, %v72_v4   ;;  %v104_v8 = vld [vmem:[%s3773_s3] sm:$0x1]  ;;  %s3069_s3 = smov 64  }
  0x11   :  { %278 = vmatpush.msra.mxu2 %v3144_v2  ;;  %146 = vmatpush.msra.mxu0 %v3149_v3  ;;  %v105_v9 = vld [vmem:[%s3774_s4] sm:$0x1]  ;;  %s3070_s4 = smov 32  }
  0x12   :  { %209 = vmatpush.msra.mxu1 %v3149_v3  ;;  %348 = vmatpush.msra.mxu3 %v3144_v2  ;;  %v3210_v10 = vld [vmem:[%s3771_s1] ss:$0 sm:$0xff]  ;;  %v106_v11 = vadd.f32 %v105_v9, %v104_v8 }
  0x13   :  { %279 = vmatpush.msra.mxu2 %v3149_v3  ;;  %147 = vmatpush.msra.mxu0 %v3159_v5 }
  0x14   :  { %210 = vmatpush.msra.mxu1 %v3159_v5  ;;  %349 = vmatpush.msra.mxu3 %v3149_v3  ;;  %v3212_v13 = vperm.slane %v106_v11, 0 }
  0x15   :  { %280 = vmatpush.msra.mxu2 %v3159_v5  ;;  %148 = vmatpush.msra.mxu0 %v3167_v6 }
  0x16   :  { %211 = vmatpush.msra.mxu1 %v3167_v6  ;;  %149 = vmatmul.f32.vlgmr.msra.gmra.mxu0 %v3068_v7 }
  0x17   :  { %281 = vmatpush.msra.mxu2 %v3167_v6  ;;  %350 = vmatpush.msra.mxu3 %v3159_v5 }
  0x18   :  { %418 = vmatpush.msrb.mxu0 %v3144_v2  ;;  %484 = vmatpush.msrb.mxu1 %v3144_v2 }
  0x19   :  { %554 = vmatpush.msrb.mxu2 %v3144_v2  ;;  %351 = vmatpush.msra.mxu3 %v3167_v6 }
  0x1a   :  { %419 = vmatpush.msrb.mxu0 %v3149_v3  ;;  %485 = vmatpush.msrb.mxu1 %v3149_v3 }
  0x1b   :  { %555 = vmatpush.msrb.mxu2 %v3149_v3  ;;  %624 = vmatpush.msrb.mxu3 %v3144_v2 }
  0x1c   :  { %420 = vmatpush.msrb.mxu0 %v3159_v5  ;;  %486 = vmatpush.msrb.mxu1 %v3159_v5 }
  0x1d   :  { %556 = vmatpush.msrb.mxu2 %v3159_v5  ;;  %625 = vmatpush.msrb.mxu3 %v3149_v3 }
  0x1e   :  { %421 = vmatpush.msrb.mxu0 %v3167_v6  ;;  %487 = vmatpush.msrb.mxu1 %v3167_v6 }
  0x1f   :  { %557 = vmatpush.msrb.mxu2 %v3167_v6  ;;  %626 = vmatpush.msrb.mxu3 %v3159_v5 }
  0x20   :  { %694 = vmatpush.msra.mxu0 %v3144_v2 }
  0x21   :  { %627 = vmatpush.msrb.mxu3 %v3167_v6 }
  0x22   :  { %695 = vmatpush.msra.mxu0 %v3149_v3 }
  0x24   :  { %696 = vmatpush.msra.mxu0 %v3159_v5 }
  0x26   :  { %697 = vmatpush.msra.mxu0 %v3167_v6 }
  0x82   :  { %v80_v12 = vpop.permute.xlu0 %79 }
  0x83   :  { %v100_v14 = vmul.f32 %v3210_v10, %v80_v12 }
  0x85   :  { %v3216_v15 = vadd.f32 %v3212_v13, %v100_v14 }
  0x93   :  { %v150_v16 = vpop.f32.mrf.mxu0 }
  0x94   :  { %v153_v17 = vadd.f32 %v150_v16, %v3216_v15 }
  0x96   :  { %2750 = vtanh.f32 %v153_v17  ;;  %v2657_v19 = vmul.f32 -1.442695, %v153_v17 }
  0x98   :  { %2752 = vpow2.f32 %v2657_v19 }
  0x9c   :  { %v2751_v18 = vpop.eup %2750 }
  0x9d   :  { %176 = vrot.lane.b32.xlu0 %v2751_v18, %s3069_s3 }
  0x9e   :  { %v2753_v20 = vpop.eup %2752 }
  0x9f   :  { %v157_v21 = vadd.f32 1.0, %v2753_v20 }
  0xa1   :  { %2754 = vrcp.f32 %v157_v21  ;;  %v169_v27 = vand.u32 2147483648, %v157_v21  ;;  %vm163_vm1 = vweird.f32 %v157_v21  ;;  %v167_v28 = vand.u32 2147483647, %v157_v21 }
  0xa3   :  { %v170_v30 = vor.u32 1.1754944e-38, %v169_v27  ;;  %vm168_vm3 = vcmp.eq.f32.partialorder %v167_v28, 8.507059e+37 }
  0xa7   :  { %v2755_v22 = vpop.eup %2754 }
  0xa8   :  { %v159_v23 = vmul.f32 %v2755_v22, %v157_v21  ;;  %vm164_vm0 = vweird.f32 %v2755_v22 }
  0xa9   :  { %vm165_vm2 = vmor %vm163_vm1, %vm164_vm0 }
  0xaa   :  { %v160_v24 = vsub.f32 1.0, %v159_v23 }
  0xac   :  { %v161_v25 = vmul.f32 %v2755_v22, %v160_v24 }
  0xae   :  { %v162_v26 = vadd.f32 %v2755_v22, %v161_v25 }
  0xb0   :  { %v166_v29 = vsel %vm165_vm2, %v2755_v22, %v162_v26 }
  0xb1   :  { %v171_v32 = vsel %vm168_vm3, %v170_v30, %v166_v29 }
  0xb2   :  { %v174_v34 = vmul.f32 0.0, %v171_v32 }
 0x10f   :  { %v177_v31 = vpop.permute.xlu0 %176 }
 0x110   :  { %v179_v33 = vmul.f32 %v177_v31, %v171_v32 }
 0x112   :  { %181 = vrot.lane.b32.xlu1 %v179_v33, %s3070_s4 }
 0x184   :  { %v182_v35 = vpop.permute.xlu1 %181 }
 0x185   :  { %v184_v36 = vadd.f32 %v182_v35, %v174_v34 }
 0x187   :  { %2756 = vtanh.f32 %v184_v36  ;;  %v241_v60 = vrot.slane %v184_v36, 6 }
 0x18d   :  { %v2757_v37 = vpop.eup %2756 }
 0x18e   :  { %187 = vrot.lane.b32.xlu1 %v2757_v37, %s3069_s3 }
 0x200   :  { %v188_v38 = vpop.permute.xlu1 %187 }
 0x201   :  { %v190_v39 = vmul.f32 %v188_v38, %v171_v32 }
 0x203   :  { %192 = vrot.lane.b32.xlu2 %v190_v39, %s3070_s4 }
 0x25d   :  { %v3223_v40 = vpop.permute.xlu2 %192 }
 0x25e   :  { %2658 = vmatmul.msk.f32.vlgmr.msra.gmra.mxu1 %vm129_vm4, %v3223_v40 }
 0x25f   :  { %760 = vmatpush.msra.mxu1 %v3144_v2 }
 0x261   :  { %761 = vmatpush.msra.mxu1 %v3149_v3 }
 0x263   :  { %762 = vmatpush.msra.mxu1 %v3159_v5 }
 0x265   :  { %763 = vmatpush.msra.mxu1 %v3167_v6 }
 0x2db   :  { %v213_v41 = vpop.f32.mrf.mxu1 }
 0x2dc   :  { %v217_v42 = vrot.slane %v213_v41, 6 }
 0x2de   :  { %v219_v43 = vadd.f32 %v217_v42, %v3216_v15 }
 0x2e0   :  { %2758 = vtanh.f32 %v219_v43  ;;  %v2659_v45 = vmul.f32 -1.442695, %v219_v43 }
 0x2e2   :  { %2760 = vpow2.f32 %v2659_v45 }
 0x2e6   :  { %v2759_v44 = vpop.eup %2758 }
 0x2e7   :  { %245 = vrot.lane.b32.xlu2 %v2759_v44, %s3069_s3 }
 0x2e8   :  { %v2761_v46 = vpop.eup %2760 }
 0x2e9   :  { %v223_v47 = vadd.f32 1.0, %v2761_v46 }
 0x2eb   :  { %2762 = vrcp.f32 %v223_v47  ;;  %v235_v53 = vand.u32 2147483648, %v223_v47  ;;  %vm229_vm6 = vweird.f32 %v223_v47  ;;  %v233_v54 = vand.u32 2147483647, %v223_v47 }
 0x2ed   :  { %v236_v56 = vor.u32 1.1754944e-38, %v235_v53  ;;  %vm234_vm8 = vcmp.eq.f32.partialorder %v233_v54, 8.507059e+37 }
 0x2f1   :  { %v2763_v48 = vpop.eup %2762 }
 0x2f2   :  { %v225_v49 = vmul.f32 %v2763_v48, %v223_v47  ;;  %vm230_vm5 = vweird.f32 %v2763_v48 }
 0x2f3   :  { %vm231_vm7 = vmor %vm229_vm6, %vm230_vm5 }
 0x2f4   :  { %v226_v50 = vsub.f32 1.0, %v225_v49 }
 0x2f6   :  { %v227_v51 = vmul.f32 %v2763_v48, %v226_v50 }
 0x2f8   :  { %v228_v52 = vadd.f32 %v2763_v48, %v227_v51 }
 0x2fa   :  { %v232_v55 = vsel %vm231_vm7, %v2763_v48, %v228_v52 }
 0x2fb   :  { %v237_v58 = vsel %vm234_vm8, %v236_v56, %v232_v55 }
 0x2fc   :  { %v243_v61 = vmul.f32 %v241_v60, %v237_v58 }
 0x341   :  { %v246_v57 = vpop.permute.xlu2 %245 }
 0x342   :  { %v248_v59 = vmul.f32 %v246_v57, %v237_v58 }
 0x344   :  { %250 = vrot.lane.b32.xlu0 %v248_v59, %s3070_s4 }
 0x3b6   :  { %v251_v62 = vpop.permute.xlu0 %250 }
 0x3b7   :  { %v253_v63 = vadd.f32 %v251_v62, %v243_v61 }
 0x3b9   :  { %2764 = vtanh.f32 %v253_v63  ;;  %v311_v32 = vrot.slane %v253_v63, 6 }
 0x3bf   :  { %v2765_v0 = vpop.eup %2764 }
 0x3c0   :  { %256 = vrot.lane.b32.xlu1 %v2765_v0, %s3069_s3 }
 0x432   :  { %v257_v1 = vpop.permute.xlu1 %256 }
 0x433   :  { %v259_v4 = vmul.f32 %v257_v1, %v237_v58 }
 0x435   :  { %v261_v8 = vrot.slane %v259_v4, 2 }
 0x437   :  { %262 = vrot.lane.b32.xlu2 %v261_v8, %s3070_s4 }
 0x491   :  { %v3236_v9 = vpop.permute.xlu2 %262 }
 0x492   :  { %2660 = vmatmul.msk.f32.vlgmr.msra.gmra.mxu2 %vm129_vm4, %v3236_v9 }
 0x493   :  { %830 = vmatpush.msra.mxu2 %v3144_v2 }
 0x495   :  { %831 = vmatpush.msra.mxu2 %v3149_v3 }
 0x497   :  { %832 = vmatpush.msra.mxu2 %v3159_v5 }
 0x499   :  { %833 = vmatpush.msra.mxu2 %v3167_v6 }
 0x515   :  { %v283_v11 = vpop.f32.mrf.mxu2 }
 0x516   :  { %v287_v12 = vrot.slane %v283_v11, 4  ;;  %v73_v11 = vld [vmem:[%s3770_s0 + $0x8] sm:$0xff] }
 0x518   :  { %v289_v14 = vadd.f32 %v287_v12, %v3216_v15 }
 0x51a   :  { %2766 = vtanh.f32 %v289_v14  ;;  %v2661_v17 = vmul.f32 -1.442695, %v289_v14 }
 0x51c   :  { %2768 = vpow2.f32 %v2661_v17 }
 0x520   :  { %v2767_v16 = vpop.eup %2766 }
 0x521   :  { %315 = vrot.lane.b32.xlu0 %v2767_v16, %s3069_s3 }
 0x522   :  { %v2769_v18 = vpop.eup %2768 }
 0x523   :  { %v293_v19 = vadd.f32 1.0, %v2769_v18 }
 0x525   :  { %2770 = vrcp.f32 %v293_v19  ;;  %v305_v25 = vand.u32 2147483648, %v293_v19  ;;  %vm299_vm10 = vweird.f32 %v293_v19  ;;  %v303_v26 = vand.u32 2147483647, %v293_v19 }
 0x527   :  { %v306_v28 = vor.u32 1.1754944e-38, %v305_v25  ;;  %vm304_vm12 = vcmp.eq.f32.partialorder %v303_v26, 8.507059e+37 }
 0x52b   :  { %v2771_v20 = vpop.eup %2770 }
 0x52c   :  { %v295_v21 = vmul.f32 %v2771_v20, %v293_v19  ;;  %vm300_vm9 = vweird.f32 %v2771_v20 }
 0x52d   :  { %vm301_vm11 = vmor %vm299_vm10, %vm300_vm9 }
 0x52e   :  { %v296_v22 = vsub.f32 1.0, %v295_v21 }
 0x530   :  { %v297_v23 = vmul.f32 %v2771_v20, %v296_v22 }
 0x532   :  { %v298_v24 = vadd.f32 %v2771_v20, %v297_v23 }
 0x534   :  { %v302_v27 = vsel %vm301_vm11, %v2771_v20, %v298_v24 }
 0x535   :  { %v307_v30 = vsel %vm304_vm12, %v306_v28, %v302_v27 }
 0x536   :  { %v313_v33 = vmul.f32 %v311_v32, %v307_v30 }
 0x593   :  { %v316_v29 = vpop.permute.xlu0 %315 }
 0x594   :  { %v318_v31 = vmul.f32 %v316_v29, %v307_v30 }
 0x596   :  { %320 = vrot.lane.b32.xlu1 %v318_v31, %s3070_s4 }
 0x608   :  { %v321_v34 = vpop.permute.xlu1 %320 }
 0x609   :  { %v323_v35 = vadd.f32 %v321_v34, %v313_v33 }
 0x60b   :  { %2772 = vtanh.f32 %v323_v35  ;;  %v381_v60 = vrot.slane %v323_v35, 6 }
 0x611   :  { %v2773_v36 = vpop.eup %2772 }
 0x612   :  { %326 = vrot.lane.b32.xlu2 %v2773_v36, %s3069_s3 }
 0x66c   :  { %v327_v37 = vpop.permute.xlu2 %326 }
 0x66d   :  { %v329_v38 = vmul.f32 %v327_v37, %v307_v30 }
 0x66f   :  { %v331_v39 = vrot.slane %v329_v38, 4 }
 0x671   :  { %332 = vrot.lane.b32.xlu0 %v331_v39, %s3070_s4 }
 0x6e3   :  { %v3249_v41 = vpop.permute.xlu0 %332 }
 0x6e4   :  { %2662 = vmatmul.msk.f32.vlgmr.msra.gmra.mxu3 %vm129_vm4, %v3249_v41 }
 0x6e5   :  { %900 = vmatpush.msra.mxu3 %v3144_v2 }
 0x6e7   :  { %901 = vmatpush.msra.mxu3 %v3149_v3 }
 0x6e9   :  { %902 = vmatpush.msra.mxu3 %v3159_v5 }
 0x6eb   :  { %903 = vmatpush.msra.mxu3 %v3167_v6 }
 0x767   :  { %v353_v42 = vpop.f32.mrf.mxu3 }
 0x768   :  { %v357_v43 = vrot.slane %v353_v42, 2 }
 0x76a   :  { %v359_v44 = vadd.f32 %v357_v43, %v3216_v15 }
 0x76c   :  { %2774 = vtanh.f32 %v359_v44  ;;  %v2663_v46 = vmul.f32 -1.442695, %v359_v44 }
 0x76e   :  { %2776 = vpow2.f32 %v2663_v46 }
 0x772   :  { %v2775_v45 = vpop.eup %2774 }
 0x773   :  { %385 = vrot.lane.b32.xlu1 %v2775_v45, %s3069_s3 }
 0x774   :  { %v2777_v47 = vpop.eup %2776 }
 0x775   :  { %v363_v48 = vadd.f32 1.0, %v2777_v47 }
 0x777   :  { %2778 = vrcp.f32 %v363_v48  ;;  %v375_v54 = vand.u32 2147483648, %v363_v48  ;;  %vm369_vm14 = vweird.f32 %v363_v48  ;;  %v373_v55 = vand.u32 2147483647, %v363_v48 }
 0x779   :  { %v376_v56 = vor.u32 1.1754944e-38, %v375_v54  ;;  %vm374_vm0 = vcmp.eq.f32.partialorder %v373_v55, 8.507059e+37 }
 0x77d   :  { %v2779_v49 = vpop.eup %2778 }
 0x77e   :  { %v365_v50 = vmul.f32 %v2779_v49, %v363_v48  ;;  %vm370_vm13 = vweird.f32 %v2779_v49 }
 0x77f   :  { %vm371_vm15 = vmor %vm369_vm14, %vm370_vm13 }
 0x780   :  { %v366_v51 = vsub.f32 1.0, %v365_v50 }
 0x782   :  { %v367_v52 = vmul.f32 %v2779_v49, %v366_v51 }
 0x784   :  { %v368_v53 = vadd.f32 %v2779_v49, %v367_v52 }
 0x786   :  { %v372_v15 = vsel %vm371_vm15, %v2779_v49, %v368_v53 }
 0x787   :  { %v377_v58 = vsel %vm374_vm0, %v376_v56, %v372_v15 }
 0x788   :  { %v383_v61 = vmul.f32 %v381_v60, %v377_v58 }
 0x7e5   :  { %v386_v57 = vpop.permute.xlu1 %385 }
 0x7e6   :  { %v388_v59 = vmul.f32 %v386_v57, %v377_v58 }
 0x7e8   :  { %390 = vrot.lane.b32.xlu2 %v388_v59, %s3070_s4 }
 0x7f0   :  { %84 = vperm.xlu2 %2745, %v73_v11  }
 0x842   :  { %v391_v62 = vpop.permute.xlu2 %390 }
 0x843   :  { %v393_v63 = vadd.f32 %v391_v62, %v383_v61 }
 0x845   :  { %2780 = vtanh.f32 %v393_v63  ;;  %v448_v36 = vrot.slane %v393_v63, 6 }
 0x84a   :  { %v85_v14 = vpop.permute.xlu2 %84 }
 0x84b   :  { %v2781_v0 = vpop.eup %2780  ;;  %v101_v16 = vmul.f32 %v3210_v10, %v85_v14 }
 0x84c   :  { %396 = vrot.lane.b32.xlu0 %v2781_v0, %s3069_s3 }
 0x84d   :  { %v3275_v17 = vadd.f32 %v3212_v13, %v101_v16 }
 0x8be   :  { %v397_v1 = vpop.permute.xlu0 %396 }
 0x8bf   :  { %v399_v4 = vmul.f32 %v397_v1, %v377_v58 }
 0x8c1   :  { %v401_v8 = vrot.slane %v399_v4, 6 }
 0x8c3   :  { %402 = vrot.lane.b32.xlu1 %v401_v8, %s3070_s4 }
 0x935   :  { %v3265_v12 = vpop.permute.xlu1 %402 }
 0x936   :  { %2664 = vmatmul.msk.f32.vlgmr.msrb.gmra.mxu0 %vm129_vm4, %v3265_v12 }
 0x937   :  { %970 = vmatpush.msrb.mxu0 %v3144_v2 }
 0x939   :  { %971 = vmatpush.msrb.mxu0 %v3149_v3 }
 0x93b   :  { %972 = vmatpush.msrb.mxu0 %v3159_v5 }
 0x93d   :  { %973 = vmatpush.msrb.mxu0 %v3167_v6 }
 0x9b3   :  { %v423_v18 = vpop.f32.mrf.mxu0 }
 0x9b4   :  { %v426_v19 = vadd.f32 %v423_v18, %v3275_v17 }
 0x9b6   :  { %2782 = vtanh.f32 %v426_v19  ;;  %v2665_v21 = vmul.f32 -1.442695, %v426_v19 }
 0x9b8   :  { %2784 = vpow2.f32 %v2665_v21 }
 0x9bc   :  { %v2783_v20 = vpop.eup %2782 }
 0x9bd   :  { %452 = vrot.lane.b32.xlu0 %v2783_v20, %s3069_s3 }
 0x9be   :  { %v2785_v22 = vpop.eup %2784 }
 0x9bf   :  { %v430_v23 = vadd.f32 1.0, %v2785_v22 }
 0x9c1   :  { %2786 = vrcp.f32 %v430_v23  ;;  %v442_v29 = vand.u32 2147483648, %v430_v23  ;;  %vm436_vm2 = vweird.f32 %v430_v23  ;;  %v440_v30 = vand.u32 2147483647, %v430_v23 }
 0x9c3   :  { %v443_v32 = vor.u32 1.1754944e-38, %v442_v29  ;;  %vm441_vm5 = vcmp.eq.f32.partialorder %v440_v30, 8.507059e+37 }
 0x9c7   :  { %v2787_v24 = vpop.eup %2786 }
 0x9c8   :  { %v432_v25 = vmul.f32 %v2787_v24, %v430_v23  ;;  %vm437_vm1 = vweird.f32 %v2787_v24 }
 0x9c9   :  { %vm438_vm3 = vmor %vm436_vm2, %vm437_vm1 }
 0x9ca   :  { %v433_v26 = vsub.f32 1.0, %v432_v25 }
 0x9cc   :  { %v434_v27 = vmul.f32 %v2787_v24, %v433_v26 }
 0x9ce   :  { %v435_v28 = vadd.f32 %v2787_v24, %v434_v27 }
 0x9d0   :  { %v439_v31 = vsel %vm438_vm3, %v2787_v24, %v435_v28 }
 0x9d1   :  { %v444_v34 = vsel %vm441_vm5, %v443_v32, %v439_v31 }
 0x9d2   :  { %v450_v37 = vmul.f32 %v448_v36, %v444_v34 }
 0xa2f   :  { %v453_v33 = vpop.permute.xlu0 %452 }
 0xa30   :  { %v455_v35 = vmul.f32 %v453_v33, %v444_v34 }
 0xa32   :  { %457 = vrot.lane.b32.xlu1 %v455_v35, %s3070_s4 }
 0xaa4   :  { %v458_v38 = vpop.permute.xlu1 %457 }
 0xaa5   :  { %v460_v39 = vadd.f32 %v458_v38, %v450_v37 }
 0xaa7   :  { %2788 = vtanh.f32 %v460_v39  ;;  %v517_v0 = vrot.slane %v460_v39, 6 }
 0xaad   :  { %v2789_v42 = vpop.eup %2788 }
 0xaae   :  { %463 = vrot.lane.b32.xlu2 %v2789_v42, %s3069_s3 }
 0xb08   :  { %v464_v43 = vpop.permute.xlu2 %463 }
 0xb09   :  { %v466_v44 = vmul.f32 %v464_v43, %v444_v34 }
 0xb0b   :  { %468 = vrot.lane.b32.xlu0 %v466_v44, %s3070_s4 }
 0xb7d   :  { %v3282_v45 = vpop.permute.xlu0 %468 }
 0xb7e   :  { %2666 = vmatmul.msk.f32.vlgmr.msrb.gmra.mxu1 %vm129_vm4, %v3282_v45 }
 0xb7f   :  { %1036 = vmatpush.msrb.mxu1 %v3144_v2 }
 0xb81   :  { %1037 = vmatpush.msrb.mxu1 %v3149_v3 }
 0xb83   :  { %1038 = vmatpush.msrb.mxu1 %v3159_v5 }
 0xb85   :  { %1039 = vmatpush.msrb.mxu1 %v3167_v6 }
 0xbfb   :  { %v489_v46 = vpop.f32.mrf.mxu1 }
 0xbfc   :  { %v493_v47 = vrot.slane %v489_v46, 6 }
 0xbfe   :  { %v495_v48 = vadd.f32 %v493_v47, %v3275_v17 }
 0xc00   :  { %2790 = vtanh.f32 %v495_v48  ;;  %v2667_v50 = vmul.f32 -1.442695, %v495_v48 }
 0xc02   :  { %2792 = vpow2.f32 %v2667_v50 }
 0xc06   :  { %v2791_v49 = vpop.eup %2790 }
 0xc07   :  { %521 = vrot.lane.b32.xlu1 %v2791_v49, %s3069_s3 }
 0xc08   :  { %v2793_v51 = vpop.eup %2792 }
 0xc09   :  { %v499_v52 = vadd.f32 1.0, %v2793_v51 }
 0xc0b   :  { %2794 = vrcp.f32 %v499_v52  ;;  %v511_v57 = vand.u32 2147483648, %v499_v52  ;;  %vm505_vm7 = vweird.f32 %v499_v52  ;;  %v509_v58 = vand.u32 2147483647, %v499_v52 }
 0xc0d   :  { %v512_v60 = vor.u32 1.1754944e-38, %v511_v57  ;;  %vm510_vm9 = vcmp.eq.f32.partialorder %v509_v58, 8.507059e+37 }
 0xc11   :  { %v2795_v53 = vpop.eup %2794 }
 0xc12   :  { %v501_v54 = vmul.f32 %v2795_v53, %v499_v52  ;;  %vm506_vm6 = vweird.f32 %v2795_v53 }
 0xc13   :  { %vm507_vm8 = vmor %vm505_vm7, %vm506_vm6 }
 0xc14   :  { %v502_v55 = vsub.f32 1.0, %v501_v54 }
 0xc16   :  { %v503_v15 = vmul.f32 %v2795_v53, %v502_v55 }
 0xc18   :  { %v504_v56 = vadd.f32 %v2795_v53, %v503_v15 }
 0xc1a   :  { %v508_v59 = vsel %vm507_vm8, %v2795_v53, %v504_v56 }
 0xc1b   :  { %v513_v62 = vsel %vm510_vm9, %v512_v60, %v508_v59 }
 0xc1c   :  { %v519_v1 = vmul.f32 %v517_v0, %v513_v62 }
 0xc79   :  { %v522_v61 = vpop.permute.xlu1 %521 }
 0xc7a   :  { %v524_v63 = vmul.f32 %v522_v61, %v513_v62 }
 0xc7c   :  { %526 = vrot.lane.b32.xlu2 %v524_v63, %s3070_s4 }
 0xcd6   :  { %v527_v4 = vpop.permute.xlu2 %526 }
 0xcd7   :  { %v529_v8 = vadd.f32 %v527_v4, %v519_v1 }
 0xcd9   :  { %2796 = vtanh.f32 %v529_v8  ;;  %v587_v39 = vrot.slane %v529_v8, 6 }
 0xcdf   :  { %v2797_v11 = vpop.eup %2796 }
 0xce0   :  { %532 = vrot.lane.b32.xlu0 %v2797_v11, %s3069_s3 }
 0xd52   :  { %v533_v14 = vpop.permute.xlu0 %532 }
 0xd53   :  { %v535_v16 = vmul.f32 %v533_v14, %v513_v62 }
 0xd55   :  { %v537_v18 = vrot.slane %v535_v16, 2 }
 0xd57   :  { %538 = vrot.lane.b32.xlu1 %v537_v18, %s3070_s4 }
 0xdc9   :  { %v3295_v19 = vpop.permute.xlu1 %538 }
 0xdca   :  { %2668 = vmatmul.msk.f32.vlgmr.msrb.gmra.mxu2 %vm129_vm4, %v3295_v19 }
 0xdcb   :  { %1106 = vmatpush.msrb.mxu2 %v3144_v2 }
 0xdcd   :  { %1107 = vmatpush.msrb.mxu2 %v3149_v3 }
 0xdcf   :  { %1108 = vmatpush.msrb.mxu2 %v3159_v5 }
 0xdd1   :  { %1109 = vmatpush.msrb.mxu2 %v3167_v6 }
 0xe4d   :  { %v559_v20 = vpop.f32.mrf.mxu2 }
 0xe4e   :  { %v563_v21 = vrot.slane %v559_v20, 4  ;;  %v74_v20 = vld [vmem:[%s3770_s0 + $0x10] sm:$0xff] }
 0xe50   :  { %v565_v22 = vadd.f32 %v563_v21, %v3275_v17 }
 0xe52   :  { %2798 = vtanh.f32 %v565_v22  ;;  %v2669_v24 = vmul.f32 -1.442695, %v565_v22 }
 0xe54   :  { %2800 = vpow2.f32 %v2669_v24 }
 0xe58   :  { %v2799_v23 = vpop.eup %2798 }
 0xe59   :  { %591 = vrot.lane.b32.xlu2 %v2799_v23, %s3069_s3 }
 0xe5a   :  { %v2801_v25 = vpop.eup %2800 }
 0xe5b   :  { %v569_v26 = vadd.f32 1.0, %v2801_v25 }
 0xe5d   :  { %2802 = vrcp.f32 %v569_v26  ;;  %v581_v32 = vand.u32 2147483648, %v569_v26  ;;  %vm575_vm11 = vweird.f32 %v569_v26  ;;  %v579_v33 = vand.u32 2147483647, %v569_v26 }
 0xe5f   :  { %v582_v35 = vor.u32 1.1754944e-38, %v581_v32  ;;  %vm580_vm13 = vcmp.eq.f32.partialorder %v579_v33, 8.507059e+37 }
 0xe63   :  { %v2803_v27 = vpop.eup %2802 }
 0xe64   :  { %v571_v28 = vmul.f32 %v2803_v27, %v569_v26  ;;  %vm576_vm10 = vweird.f32 %v2803_v27 }
 0xe65   :  { %vm577_vm12 = vmor %vm575_vm11, %vm576_vm10 }
 0xe66   :  { %v572_v29 = vsub.f32 1.0, %v571_v28 }
 0xe68   :  { %v573_v30 = vmul.f32 %v2803_v27, %v572_v29 }
 0xe6a   :  { %v574_v31 = vadd.f32 %v2803_v27, %v573_v30 }
 0xe6c   :  { %v578_v34 = vsel %vm577_vm12, %v2803_v27, %v574_v31 }
 0xe6d   :  { %v583_v37 = vsel %vm580_vm13, %v582_v35, %v578_v34 }
 0xe6e   :  { %v589_v42 = vmul.f32 %v587_v39, %v583_v37 }
 0xeb3   :  { %v592_v36 = vpop.permute.xlu2 %591 }
 0xeb4   :  { %v594_v38 = vmul.f32 %v592_v36, %v583_v37 }
 0xeb6   :  { %596 = vrot.lane.b32.xlu0 %v594_v38, %s3070_s4 }
 0xf28   :  { %v597_v43 = vpop.permute.xlu0 %596 }
 0xf29   :  { %v599_v44 = vadd.f32 %v597_v43, %v589_v42 }
 0xf2b   :  { %2804 = vtanh.f32 %v599_v44  ;;  %v657_v0 = vrot.slane %v599_v44, 6 }
 0xf31   :  { %v2805_v46 = vpop.eup %2804 }
 0xf32   :  { %602 = vrot.lane.b32.xlu1 %v2805_v46, %s3069_s3 }
 0xfa4   :  { %v603_v47 = vpop.permute.xlu1 %602 }
 0xfa5   :  { %v605_v48 = vmul.f32 %v603_v47, %v583_v37 }
 0xfa7   :  { %v607_v49 = vrot.slane %v605_v48, 4 }
 0xfa9   :  { %608 = vrot.lane.b32.xlu2 %v607_v49, %s3070_s4 }
0x1003   :  { %v3308_v50 = vpop.permute.xlu2 %608 }
0x1004   :  { %2670 = vmatmul.msk.f32.vlgmr.msrb.gmra.mxu3 %vm129_vm4, %v3308_v50 }
0x1005   :  { %1176 = vmatpush.msrb.mxu3 %v3144_v2 }
0x1007   :  { %1177 = vmatpush.msrb.mxu3 %v3149_v3 }
0x1009   :  { %1178 = vmatpush.msrb.mxu3 %v3159_v5 }
0x100b   :  { %1179 = vmatpush.msrb.mxu3 %v3167_v6 }
0x1087   :  { %v629_v51 = vpop.f32.mrf.mxu3 }
0x1088   :  { %v633_v52 = vrot.slane %v629_v51, 2 }
0x108a   :  { %v635_v53 = vadd.f32 %v633_v52, %v3275_v17 }
0x108c   :  { %2806 = vtanh.f32 %v635_v53  ;;  %v2671_v55 = vmul.f32 -1.442695, %v635_v53 }
0x108e   :  { %2808 = vpow2.f32 %v2671_v55 }
0x1092   :  { %v2807_v54 = vpop.eup %2806 }
0x1093   :  { %661 = vrot.lane.b32.xlu0 %v2807_v54, %s3069_s3 }
0x1094   :  { %v2809_v15 = vpop.eup %2808 }
0x1095   :  { %v639_v56 = vadd.f32 1.0, %v2809_v15 }
0x1097   :  { %2810 = vrcp.f32 %v639_v56  ;;  %v651_v6 = vand.u32 2147483648, %v639_v56  ;;  %vm645_vm15 = vweird.f32 %v639_v56  ;;  %v649_v59 = vand.u32 2147483647, %v639_v56 }
0x1099   :  { %v652_v60 = vor.u32 1.1754944e-38, %v651_v6  ;;  %vm650_vm1 = vcmp.eq.f32.partialorder %v649_v59, 8.507059e+37 }
0x109d   :  { %v2811_v2 = vpop.eup %2810 }
0x109e   :  { %v641_v57 = vmul.f32 %v2811_v2, %v639_v56  ;;  %vm646_vm14 = vweird.f32 %v2811_v2 }
0x109f   :  { %vm647_vm0 = vmor %vm645_vm15, %vm646_vm14 }
0x10a0   :  { %v642_v3 = vsub.f32 1.0, %v641_v57 }
0x10a2   :  { %v643_v58 = vmul.f32 %v2811_v2, %v642_v3 }
0x10a4   :  { %v644_v5 = vadd.f32 %v2811_v2, %v643_v58 }
0x10a6   :  { %v648_v17 = vsel %vm647_vm0, %v2811_v2, %v644_v5 }
0x10a7   :  { %v653_v62 = vsel %vm650_vm1, %v652_v60, %v648_v17 }
0x10a8   :  { %v659_v1 = vmul.f32 %v657_v0, %v653_v62 }
0x1105   :  { %v662_v61 = vpop.permute.xlu0 %661 }
0x1106   :  { %v664_v63 = vmul.f32 %v662_v61, %v653_v62 }
0x1108   :  { %666 = vrot.lane.b32.xlu1 %v664_v63, %s3070_s4 }
0x1110   :  { %89 = vperm.xlu1 %2746, %v74_v20  }
0x117a   :  { %v667_v4 = vpop.permute.xlu1 %666 }
0x117b   :  { %v669_v8 = vadd.f32 %v667_v4, %v659_v1 }
0x117d   :  { %2812 = vtanh.f32 %v669_v8  ;;  %v724_v44 = vrot.slane %v669_v8, 6 }
0x1182   :  { %v90_v22 = vpop.permute.xlu1 %89 }
0x1183   :  { %v2813_v11 = vpop.eup %2812  ;;  %v102_v23 = vmul.f32 %v3210_v10, %v90_v22 }
0x1184   :  { %672 = vrot.lane.b32.xlu2 %v2813_v11, %s3069_s3 }
0x1185   :  { %v3330_v24 = vadd.f32 %v3212_v13, %v102_v23 }
0x11de   :  { %v673_v14 = vpop.permute.xlu2 %672 }
0x11df   :  { %v675_v16 = vmul.f32 %v673_v14, %v653_v62 }
0x11e1   :  { %v677_v18 = vrot.slane %v675_v16, 6 }
0x11e3   :  { %678 = vrot.lane.b32.xlu0 %v677_v18, %s3070_s4 }
0x1255   :  { %v3324_v21 = vpop.permute.xlu0 %678 }
0x1256   :  { %2672 = vmatmul.msk.f32.vlgmr.msra.gmra.mxu0 %vm129_vm4, %v3324_v21 }
0x12d3   :  { %v699_v25 = vpop.f32.mrf.mxu0 }
0x12d4   :  { %v702_v26 = vadd.f32 %v699_v25, %v3330_v24 }
0x12d6   :  { %2814 = vtanh.f32 %v702_v26  ;;  %v2673_v28 = vmul.f32 -1.442695, %v702_v26 }
0x12d8   :  { %2816 = vpow2.f32 %v2673_v28 }
0x12dc   :  { %v2815_v27 = vpop.eup %2814 }
0x12dd   :  { %728 = vrot.lane.b32.xlu2 %v2815_v27, %s3069_s3 }
0x12de   :  { %v2817_v29 = vpop.eup %2816 }
0x12df   :  { %v706_v30 = vadd.f32 1.0, %v2817_v29 }
0x12e1   :  { %2818 = vrcp.f32 %v706_v30  ;;  %v718_v35 = vand.u32 2147483648, %v706_v30  ;;  %vm712_vm3 = vweird.f32 %v706_v30  ;;  %v716_v36 = vand.u32 2147483647, %v706_v30 }
0x12e3   :  { %v719_v38 = vor.u32 1.1754944e-38, %v718_v35  ;;  %vm717_vm6 = vcmp.eq.f32.partialorder %v716_v36, 8.507059e+37 }
0x12e7   :  { %v2819_v31 = vpop.eup %2818 }
0x12e8   :  { %v708_v32 = vmul.f32 %v2819_v31, %v706_v30  ;;  %vm713_vm2 = vweird.f32 %v2819_v31 }
0x12e9   :  { %vm714_vm5 = vmor %vm712_vm3, %vm713_vm2 }
0x12ea   :  { %v709_v33 = vsub.f32 1.0, %v708_v32 }
0x12ec   :  { %v710_v34 = vmul.f32 %v2819_v31, %v709_v33 }
0x12ee   :  { %v711_v10 = vadd.f32 %v2819_v31, %v710_v34 }
0x12f0   :  { %v715_v37 = vsel %vm714_vm5, %v2819_v31, %v711_v10 }
0x12f1   :  { %v720_v42 = vsel %vm717_vm6, %v719_v38, %v715_v37 }
0x12f2   :  { %v726_v46 = vmul.f32 %v724_v44, %v720_v42 }
0x1337   :  { %v729_v39 = vpop.permute.xlu2 %728 }
0x1338   :  { %v731_v43 = vmul.f32 %v729_v39, %v720_v42 }
0x133a   :  { %733 = vrot.lane.b32.xlu0 %v731_v43, %s3070_s4 }
0x13ac   :  { %v734_v47 = vpop.permute.xlu0 %733 }
0x13ad   :  { %v736_v48 = vadd.f32 %v734_v47, %v726_v46 }
0x13af   :  { %2820 = vtanh.f32 %v736_v48  ;;  %v793_v8 = vrot.slane %v736_v48, 6 }
0x13b5   :  { %v2821_v49 = vpop.eup %2820 }
0x13b6   :  { %739 = vrot.lane.b32.xlu1 %v2821_v49, %s3069_s3 }
0x1428   :  { %v740_v51 = vpop.permute.xlu1 %739 }
0x1429   :  { %v742_v52 = vmul.f32 %v740_v51, %v720_v42 }
0x142b   :  { %744 = vrot.lane.b32.xlu2 %v742_v52, %s3070_s4 }
0x1485   :  { %v3337_v53 = vpop.permute.xlu2 %744 }
0x1486   :  { %2674 = vmatmul.msk.f32.vlgmr.msra.gmra.mxu1 %vm129_vm4, %v3337_v53 }
0x1503   :  { %v765_v54 = vpop.f32.mrf.mxu1 }
0x1504   :  { %v769_v55 = vrot.slane %v765_v54, 6 }
0x1506   :  { %v771_v15 = vadd.f32 %v769_v55, %v3330_v24 }
0x1508   :  { %2822 = vtanh.f32 %v771_v15  ;;  %v2675_v2 = vmul.f32 -1.442695, %v771_v15 }
0x150a   :  { %2824 = vpow2.f32 %v2675_v2 }
0x150e   :  { %v2823_v56 = vpop.eup %2822 }
0x150f   :  { %797 = vrot.lane.b32.xlu0 %v2823_v56, %s3069_s3 }
0x1510   :  { %v2825_v57 = vpop.eup %2824 }
0x1511   :  { %v775_v3 = vadd.f32 1.0, %v2825_v57 }
0x1513   :  { %2826 = vrcp.f32 %v775_v3  ;;  %v787_v60 = vand.u32 2147483648, %v775_v3  ;;  %vm781_vm8 = vweird.f32 %v775_v3  ;;  %v785_v61 = vand.u32 2147483647, %v775_v3 }
0x1515   :  { %v788_v63 = vor.u32 1.1754944e-38, %v787_v60  ;;  %vm786_vm10 = vcmp.eq.f32.partialorder %v785_v61, 8.507059e+37 }
0x1519   :  { %v2827_v58 = vpop.eup %2826 }
0x151a   :  { %v777_v5 = vmul.f32 %v2827_v58, %v775_v3  ;;  %vm782_vm7 = vweird.f32 %v2827_v58 }
0x151b   :  { %vm783_vm9 = vmor %vm781_vm8, %vm782_vm7 }
0x151c   :  { %v778_v6 = vsub.f32 1.0, %v777_v5 }
0x151e   :  { %v779_v59 = vmul.f32 %v2827_v58, %v778_v6 }
0x1520   :  { %v780_v17 = vadd.f32 %v2827_v58, %v779_v59 }
0x1522   :  { %v784_v62 = vsel %vm783_vm9, %v2827_v58, %v780_v17 }
0x1523   :  { %v789_v1 = vsel %vm786_vm10, %v788_v63, %v784_v62 }
0x1524   :  { %v795_v11 = vmul.f32 %v793_v8, %v789_v1 }
0x1581   :  { %v798_v0 = vpop.permute.xlu0 %797 }
0x1582   :  { %v800_v4 = vmul.f32 %v798_v0, %v789_v1 }
0x1584   :  { %802 = vrot.lane.b32.xlu1 %v800_v4, %s3070_s4 }
0x15f6   :  { %v803_v14 = vpop.permute.xlu1 %802 }
0x15f7   :  { %v805_v16 = vadd.f32 %v803_v14, %v795_v11 }
0x15f9   :  { %2828 = vtanh.f32 %v805_v16  ;;  %v863_v47 = vrot.slane %v805_v16, 6  ;;  %v75_v16 = vld [vmem:[%s3770_s0 + $0x18] sm:$0xff] }
0x15ff   :  { %v2829_v18 = vpop.eup %2828 }
0x1600   :  { %808 = vrot.lane.b32.xlu2 %v2829_v18, %s3069_s3 }
0x165a   :  { %v809_v20 = vpop.permute.xlu2 %808 }
0x165b   :  { %v811_v22 = vmul.f32 %v809_v20, %v789_v1 }
0x165d   :  { %v813_v23 = vrot.slane %v811_v22, 2 }
0x165f   :  { %814 = vrot.lane.b32.xlu0 %v813_v23, %s3070_s4 }
0x16d1   :  { %v3346_v25 = vpop.permute.xlu0 %814 }
0x16d2   :  { %2676 = vmatmul.msk.f32.vlgmr.msra.gmra.mxu2 %vm129_vm4, %v3346_v25 }
0x1755   :  { %v835_v26 = vpop.f32.mrf.mxu2 }
0x1756   :  { %v839_v27 = vrot.slane %v835_v26, 4 }
0x1758   :  { %v841_v28 = vadd.f32 %v839_v27, %v3330_v24 }
0x175a   :  { %2830 = vtanh.f32 %v841_v28  ;;  %v2677_v30 = vmul.f32 -1.442695, %v841_v28 }
0x175c   :  { %2832 = vpow2.f32 %v2677_v30  ;;  %v3370_v30 = vld [vmem:[#allocation3 + $0x18] sm:$0xff] }
0x175d   :  { %1243 = vmatpush.msra.mxu0 %v3370_v30  ;;  %1321 = vmatpush.msra.mxu2 %v3370_v30 }
0x1760   :  { %v2831_v29 = vpop.eup %2830 }
0x1761   :  { %867 = vrot.lane.b32.xlu1 %v2831_v29, %s3069_s3 }
0x1762   :  { %v2833_v31 = vpop.eup %2832 }
0x1763   :  { %v845_v32 = vadd.f32 1.0, %v2833_v31  ;;  %v3372_v31 = vld [vmem:[#allocation3 + $0x10] sm:$0xff] }
0x1764   :  { %1244 = vmatpush.msra.mxu0 %v3372_v31  ;;  %1322 = vmatpush.msra.mxu2 %v3372_v31 }
0x1765   :  { %2834 = vrcp.f32 %v845_v32  ;;  %v857_v37 = vand.u32 2147483648, %v845_v32  ;;  %vm851_vm12 = vweird.f32 %v845_v32  ;;  %v855_v38 = vand.u32 2147483647, %v845_v32 }
0x1767   :  { %v858_v42 = vor.u32 1.1754944e-38, %v857_v37  ;;  %vm856_vm14 = vcmp.eq.f32.partialorder %v855_v38, 8.507059e+37 }
0x176b   :  { %v2835_v33 = vpop.eup %2834 }
0x176c   :  { %v847_v34 = vmul.f32 %v2835_v33, %v845_v32  ;;  %vm852_vm11 = vweird.f32 %v2835_v33  ;;  %v3376_v32 = vld [vmem:[#allocation3 + $0x8] sm:$0xff] }
0x176d   :  { %vm853_vm13 = vmor %vm851_vm12, %vm852_vm11  ;;  %1245 = vmatpush.msra.mxu0 %v3376_v32  ;;  %1323 = vmatpush.msra.mxu2 %v3376_v32 }
0x176e   :  { %v848_v10 = vsub.f32 1.0, %v847_v34 }
0x1770   :  { %v849_v35 = vmul.f32 %v2835_v33, %v848_v10 }
0x1772   :  { %v850_v36 = vadd.f32 %v2835_v33, %v849_v35 }
0x1774   :  { %v854_v39 = vsel %vm853_vm13, %v2835_v33, %v850_v36  ;;  %v3380_v33 = vld [vmem:[#allocation3] sm:$0xff] }
0x1775   :  { %v859_v44 = vsel %vm856_vm14, %v858_v42, %v854_v39  ;;  %1246 = vmatpush.msra.mxu0 %v3380_v33  ;;  %1324 = vmatpush.msra.mxu2 %v3380_v33 }
0x1776   :  { %v865_v48 = vmul.f32 %v863_v47, %v859_v44 }
0x17d3   :  { %v868_v43 = vpop.permute.xlu1 %867 }
0x17d4   :  { %v870_v46 = vmul.f32 %v868_v43, %v859_v44 }
0x17d6   :  { %872 = vrot.lane.b32.xlu2 %v870_v46, %s3070_s4 }
0x1830   :  { %v873_v49 = vpop.permute.xlu2 %872 }
0x1831   :  { %v875_v51 = vadd.f32 %v873_v49, %v865_v48 }
0x1833   :  { %2836 = vtanh.f32 %v875_v51  ;;  %v933_v18 = vrot.slane %v875_v51, 6 }
0x1839   :  { %v2837_v52 = vpop.eup %2836 }
0x183a   :  { %878 = vrot.lane.b32.xlu0 %v2837_v52, %s3069_s3 }
0x18ac   :  { %v879_v54 = vpop.permute.xlu0 %878 }
0x18ad   :  { %v881_v55 = vmul.f32 %v879_v54, %v859_v44 }
0x18af   :  { %v883_v15 = vrot.slane %v881_v55, 4 }
0x18b1   :  { %884 = vrot.lane.b32.xlu1 %v883_v15, %s3070_s4 }
0x1923   :  { %v3355_v56 = vpop.permute.xlu1 %884 }
0x1924   :  { %2678 = vmatmul.msk.f32.vlgmr.msra.gmra.mxu3 %vm129_vm4, %v3355_v56 }
0x19a7   :  { %v905_v2 = vpop.f32.mrf.mxu3 }
0x19a8   :  { %v909_v57 = vrot.slane %v905_v2, 2 }
0x19aa   :  { %v911_v3 = vadd.f32 %v909_v57, %v3330_v24 }
0x19ac   :  { %2838 = vtanh.f32 %v911_v3  ;;  %v2679_v5 = vmul.f32 -1.442695, %v911_v3 }
0x19ae   :  { %2840 = vpow2.f32 %v2679_v5  ;;  %v3445_v5 = vld [vmem:[#allocation5 + $0x18] sm:$0xff] }
0x19af   :  { %1263 = vmatpush.msra.mxu1 %v3445_v5  ;;  %1346 = vmatpush.msra.mxu3 %v3445_v5 }
0x19b2   :  { %v2839_v58 = vpop.eup %2838 }
0x19b3   :  { %937 = vrot.lane.b32.xlu2 %v2839_v58, %s3069_s3 }
0x19b4   :  { %v2841_v6 = vpop.eup %2840 }
0x19b5   :  { %v915_v59 = vadd.f32 1.0, %v2841_v6  ;;  %v3447_v6 = vld [vmem:[#allocation5 + $0x10] sm:$0xff] }
0x19b6   :  { %1264 = vmatpush.msra.mxu1 %v3447_v6  ;;  %1347 = vmatpush.msra.mxu3 %v3447_v6 }
0x19b7   :  { %2842 = vrcp.f32 %v915_v59  ;;  %v927_v0 = vand.u32 2147483648, %v915_v59  ;;  %vm921_vm0 = vweird.f32 %v915_v59  ;;  %v925_v1 = vand.u32 2147483647, %v915_v59 }
0x19b9   :  { %v928_v4 = vor.u32 1.1754944e-38, %v927_v0  ;;  %vm926_vm2 = vcmp.eq.f32.partialorder %v925_v1, 8.507059e+37 }
0x19bd   :  { %v2843_v17 = vpop.eup %2842 }
0x19be   :  { %v917_v60 = vmul.f32 %v2843_v17, %v915_v59  ;;  %vm922_vm15 = vweird.f32 %v2843_v17  ;;  %v3451_v59 = vld [vmem:[#allocation5 + $0x8] sm:$0xff] }
0x19bf   :  { %vm923_vm1 = vmor %vm921_vm0, %vm922_vm15  ;;  %1265 = vmatpush.msra.mxu1 %v3451_v59  ;;  %1348 = vmatpush.msra.mxu3 %v3451_v59 }
0x19c0   :  { %v918_v61 = vsub.f32 1.0, %v917_v60 }
0x19c2   :  { %v919_v62 = vmul.f32 %v2843_v17, %v918_v61 }
0x19c4   :  { %v920_v63 = vadd.f32 %v2843_v17, %v919_v62 }
0x19c6   :  { %v924_v24 = vsel %vm923_vm1, %v2843_v17, %v920_v63  ;;  %v3455_v17 = vld [vmem:[#allocation5] sm:$0xff] }
0x19c7   :  { %v929_v11 = vsel %vm926_vm2, %v928_v4, %v924_v24  ;;  %1266 = vmatpush.msra.mxu1 %v3455_v17  ;;  %1349 = vmatpush.msra.mxu3 %v3455_v17 }
0x19c8   :  { %v935_v20 = vmul.f32 %v933_v18, %v929_v11 }
0x1a0d   :  { %v938_v8 = vpop.permute.xlu2 %937 }
0x1a0e   :  { %v940_v14 = vmul.f32 %v938_v8, %v929_v11 }
0x1a10   :  { %942 = vrot.lane.b32.xlu0 %v940_v14, %s3070_s4 }
0x1a18   :  { %94 = vperm.xlu0 %2744, %v75_v16  }
0x1a82   :  { %v943_v22 = vpop.permute.xlu0 %942 }
0x1a83   :  { %v3365_v23 = vadd.f32 %v943_v22, %v935_v20 }
0x1a85   :  { %2844 = vtanh.f32 %v3365_v23  ;;  %v1000_v55 = vrot.slane %v3365_v23, 6 }
0x1a8b   :  { %v2845_v26 = vpop.eup %2844 }
0x1a8c   :  { %948 = vrot.lane.b32.xlu1 %v2845_v26, %s3069_s3 }
0x1afe   :  { %v949_v27 = vpop.permute.xlu1 %948 }
0x1aff   :  { %v951_v28 = vmul.f32 %v949_v27, %v929_v11 }
0x1b01   :  { %v953_v29 = vrot.slane %v951_v28, 6 }
0x1b03   :  { %954 = vrot.lane.b32.xlu2 %v953_v29, %s3070_s4  ;;  %v126_v29 = vld [vmem:[%s3777_s7] sm:$0x1] }
0x1b5d   :  { %v3386_v34 = vpop.permute.xlu2 %954 }
0x1b5e   :  { %2680 = vmatmul.msk.f32.vlgmr.msrb.gmra.mxu0 %vm129_vm4, %v3386_v34 }
0x1b5f   :  { %1404 = vmatpush.msrb.mxu0 %v3370_v30 }
0x1b61   :  { %1405 = vmatpush.msrb.mxu0 %v3372_v31 }
0x1b63   :  { %1406 = vmatpush.msrb.mxu0 %v3376_v32 }
0x1b65   :  { %1407 = vmatpush.msrb.mxu0 %v3380_v33 }
0x1b66   :  { %2688 = vmatmul.msk.f32.vlgmr.msra.gmra.mxu0 %vm129_vm4, %v3223_v40  ;;  %v95_v40 = vpop.permute.xlu0 %94 }
0x1b67   :  { %1570 = vmatpush.msra.mxu0 %v3370_v30 }
0x1b69   :  { %1571 = vmatpush.msra.mxu0 %v3372_v31 }
0x1b6b   :  { %1572 = vmatpush.msra.mxu0 %v3376_v32 }
0x1b6d   :  { %1573 = vmatpush.msra.mxu0 %v3380_v33 }
0x1b6e   :  { %2693 = vmatmul.msk.f32.vlgmr.msrb.gmra.mxu0 %vm129_vm4, %v3249_v41  ;;  %v3006_v41 = vld [vmem:[%s3771_s1] ss:$0 sm:$0xff] }
0x1b6f   :  { %1736 = vmatpush.msrb.mxu0 %v3370_v30 }
0x1b71   :  { %1737 = vmatpush.msrb.mxu0 %v3372_v31 }
0x1b73   :  { %1738 = vmatpush.msrb.mxu0 %v3376_v32 }
0x1b75   :  { %1739 = vmatpush.msrb.mxu0 %v3380_v33 }
0x1b76   :  { %2699 = vmatmul.msk.f32.vlgmr.msra.gmra.mxu0 %vm129_vm4, %v3282_v45  ;;  %v103_v45 = vmul.f32 %v3006_v41, %v95_v40  ;;  %v127_v40 = vld [vmem:[%s3778_s8] sm:$0x1] }
0x1b77   :  { %1902 = vmatpush.msra.mxu0 %v3370_v30  ;;  %v128_v41 = vadd.f32 %v127_v40, %v126_v29 }
0x1b79   :  { %1903 = vmatpush.msra.mxu0 %v3372_v31 }
0x1b7b   :  { %1904 = vmatpush.msra.mxu0 %v3376_v32 }
0x1b7d   :  { %1905 = vmatpush.msra.mxu0 %v3380_v33 }
0x1b7e   :  { %2705 = vmatmul.msk.f32.vlgmr.msrb.gmra.mxu0 %vm129_vm4, %v3308_v50  ;;  %v3434_v50 = vadd.f32 %v3212_v13, %v103_v45 }
0x1b7f   :  { %2068 = vmatpush.msrb.mxu0 %v3370_v30 }
0x1b81   :  { %2069 = vmatpush.msrb.mxu0 %v3372_v31 }
0x1b83   :  { %2070 = vmatpush.msrb.mxu0 %v3376_v32 }
0x1b85   :  { %2071 = vmatpush.msrb.mxu0 %v3380_v33 }
0x1b86   :  { %2711 = vmatmul.msk.f32.vlgmr.msra.gmra.mxu0 %vm129_vm4, %v3337_v53 }
0x1b87   :  { %2234 = vmatpush.msra.mxu0 %v3370_v30 }
0x1b89   :  { %2235 = vmatpush.msra.mxu0 %v3372_v31 }
0x1b8b   :  { %2236 = vmatpush.msra.mxu0 %v3376_v32 }
0x1b8d   :  { %2237 = vmatpush.msra.mxu0 %v3380_v33 }
0x1b8e   :  { %2717 = vmatmul.msk.f32.vlgmr.msrb.gmra.mxu0 %vm129_vm4, %v3355_v56 }
0x1b8f   :  { %2400 = vmatpush.msrb.mxu0 %v3370_v30 }
0x1b91   :  { %2401 = vmatpush.msrb.mxu0 %v3372_v31 }
0x1b93   :  { %2402 = vmatpush.msrb.mxu0 %v3376_v32 }
0x1b95   :  { %2403 = vmatpush.msrb.mxu0 %v3380_v33 }
0x1bdb   :  { %v975_v53 = vpop.f32.mrf.mxu0 }
0x1bdc   :  { %v978_v10 = vadd.f32 %v975_v53, %v3434_v50 }
0x1bde   :  { %2846 = vtanh.f32 %v978_v10  ;;  %v2681_v36 = vmul.f32 -1.442695, %v978_v10 }
0x1be0   :  { %2848 = vpow2.f32 %v2681_v36 }
0x1be4   :  { %v2847_v35 = vpop.eup %2846 }
0x1be5   :  { %1004 = vrot.lane.b32.xlu1 %v2847_v35, %s3069_s3  ;;  %v3482_v35 = vperm.slane %v128_v41, 0 }
0x1be6   :  { %v2849_v37 = vpop.eup %2848 }
0x1be7   :  { %v982_v38 = vadd.f32 1.0, %v2849_v37  ;;  %v1248_v37 = vpop.f32.mrf.mxu0 }
0x1be9   :  { %2850 = vrcp.f32 %v982_v38  ;;  %v994_v13 = vand.u32 2147483648, %v982_v38  ;;  %vm988_vm5 = vweird.f32 %v982_v38  ;;  %v992_v47 = vand.u32 2147483647, %v982_v38 }
0x1beb   :  { %v995_v49 = vor.u32 1.1754944e-38, %v994_v13  ;;  %vm993_vm7 = vcmp.eq.f32.partialorder %v992_v47, 8.507059e+37 }
0x1bef   :  { %v2851_v39 = vpop.eup %2850 }
0x1bf0   :  { %v984_v42 = vmul.f32 %v2851_v39, %v982_v38  ;;  %vm989_vm3 = vweird.f32 %v2851_v39 }
0x1bf1   :  { %vm990_vm6 = vmor %vm988_vm5, %vm989_vm3 }
0x1bf2   :  { %v985_v43 = vsub.f32 1.0, %v984_v42 }
0x1bf4   :  { %v986_v44 = vmul.f32 %v2851_v39, %v985_v43 }
0x1bf6   :  { %v987_v46 = vadd.f32 %v2851_v39, %v986_v44 }
0x1bf8   :  { %v991_v48 = vsel %vm990_vm6, %v2851_v39, %v987_v46  ;;  %v1249_v39 = vadd.f32 %v1248_v37, %v3482_v35 }
0x1bf9   :  { %v996_v52 = vsel %vm993_vm7, %v995_v49, %v991_v48 }
0x1bfa   :  { %v1002_v15 = vmul.f32 %v1000_v55, %v996_v52 }
0x1c57   :  { %v1005_v51 = vpop.permute.xlu1 %1004 }
0x1c58   :  { %v1007_v54 = vmul.f32 %v1005_v51, %v996_v52 }
0x1c5a   :  { %1009 = vrot.lane.b32.xlu2 %v1007_v54, %s3070_s4 }
0x1cb4   :  { %v1010_v56 = vpop.permute.xlu2 %1009 }
0x1cb5   :  { %v3440_v2 = vadd.f32 %v1010_v56, %v1002_v15 }
0x1cb7   :  { %2852 = vtanh.f32 %v3440_v2  ;;  %v1069_v45 = vrot.slane %v3440_v2, 6 }
0x1cbd   :  { %v2853_v57 = vpop.eup %2852 }
0x1cbe   :  { %1015 = vrot.lane.b32.xlu0 %v2853_v57, %s3069_s3 }
0x1d30   :  { %v1016_v3 = vpop.permute.xlu0 %1015 }
0x1d31   :  { %v1018_v58 = vmul.f32 %v1016_v3, %v996_v52 }
0x1d33   :  { %1020 = vrot.lane.b32.xlu1 %v1018_v58, %s3070_s4 }
0x1da5   :  { %v1021_v60 = vpop.permute.xlu1 %1020 }
0x1da6   :  { %2682 = vmatmul.msk.f32.vlgmr.msrb.gmra.mxu1 %vm129_vm4, %v1021_v60  ;;  %2723 = vmatmul.msk.f32.vlgmr.msra.gmra.mxu0 %vm129_vm4, %v1021_v60 }
0x1da7   :  { %1429 = vmatpush.msrb.mxu1 %v3445_v5 }
0x1da9   :  { %1430 = vmatpush.msrb.mxu1 %v3447_v6 }
0x1dab   :  { %1431 = vmatpush.msrb.mxu1 %v3451_v59 }
0x1dad   :  { %1432 = vmatpush.msrb.mxu1 %v3455_v17 }
0x1dae   :  { %1267 = vmatmul.f32.vlgmr.msra.gmra.mxu1 %v3068_v7 }
0x1daf   :  { %1595 = vmatpush.msra.mxu1 %v3445_v5 }
0x1db1   :  { %1596 = vmatpush.msra.mxu1 %v3447_v6 }
0x1db3   :  { %1597 = vmatpush.msra.mxu1 %v3451_v59 }
0x1db5   :  { %1598 = vmatpush.msra.mxu1 %v3455_v17 }
0x1e23   :  { %v1041_v61 = vpop.f32.mrf.mxu1 }
0x1e24   :  { %v1045_v62 = vrot.slane %v1041_v61, 6 }
0x1e26   :  { %v1047_v63 = vadd.f32 %v1045_v62, %v3434_v50 }
0x1e28   :  { %2854 = vtanh.f32 %v1047_v63  ;;  %v2683_v1 = vmul.f32 -1.442695, %v1047_v63 }
0x1e2a   :  { %2856 = vpow2.f32 %v2683_v1 }
0x1e2b   :  { %v1268_v38 = vpop.f32.mrf.mxu1 }
0x1e2c   :  { %v1271_v42 = vadd.f32 %v1268_v38, %v1249_v39 }
0x1e2e   :  { %v2855_v0 = vpop.eup %2854 }
0x1e2f   :  { %1073 = vrot.lane.b32.xlu2 %v2855_v0, %s3069_s3 }
0x1e30   :  { %v2857_v24 = vpop.eup %2856 }
0x1e31   :  { %v1051_v7 = vadd.f32 1.0, %v2857_v24 }
0x1e33   :  { %2858 = vrcp.f32 %v1051_v7  ;;  %v1063_v18 = vand.u32 2147483648, %v1051_v7  ;;  %vm1057_vm9 = vweird.f32 %v1051_v7  ;;  %v1061_v20 = vand.u32 2147483647, %v1051_v7 }
0x1e35   :  { %v1064_v23 = vor.u32 1.1754944e-38, %v1063_v18  ;;  %vm1062_vm11 = vcmp.eq.f32.partialorder %v1061_v20, 8.507059e+37 }
0x1e39   :  { %v2859_v4 = vpop.eup %2858 }
0x1e3a   :  { %v1053_v8 = vmul.f32 %v2859_v4, %v1051_v7  ;;  %vm1058_vm8 = vweird.f32 %v2859_v4 }
0x1e3b   :  { %vm1059_vm10 = vmor %vm1057_vm9, %vm1058_vm8 }
0x1e3c   :  { %v1054_v11 = vsub.f32 1.0, %v1053_v8 }
0x1e3e   :  { %v1055_v14 = vmul.f32 %v2859_v4, %v1054_v11 }
0x1e40   :  { %v1056_v16 = vadd.f32 %v2859_v4, %v1055_v14 }
0x1e42   :  { %v1060_v22 = vsel %vm1059_vm10, %v2859_v4, %v1056_v16 }
0x1e43   :  { %v1065_v27 = vsel %vm1062_vm11, %v1064_v23, %v1060_v22 }
0x1e44   :  { %v1071_v53 = vmul.f32 %v1069_v45, %v1065_v27 }
0x1e89   :  { %v1074_v26 = vpop.permute.xlu2 %1073 }
0x1e8a   :  { %v1076_v28 = vmul.f32 %v1074_v26, %v1065_v27 }
0x1e8c   :  { %1078 = vrot.lane.b32.xlu0 %v1076_v28, %s3070_s4 }
0x1efe   :  { %v1079_v10 = vpop.permute.xlu0 %1078 }
0x1eff   :  { %v3484_v36 = vadd.f32 %v1079_v10, %v1071_v53 }
0x1f01   :  { %2860 = vtanh.f32 %v3484_v36  ;;  %v1139_v26 = vrot.slane %v3484_v36, 6 }
0x1f02   :  { %2862 = vtanh.f32 %v1271_v42 }
0x1f07   :  { %v2861_v43 = vpop.eup %2860 }
0x1f08   :  { %1084 = vrot.lane.b32.xlu1 %v2861_v43, %s3069_s3  ;;  %v2863_v44 = vpop.eup %2862 }
0x1f10   :  { %1294 = vrot.lane.b32.xlu1 %v2863_v44, %s3069_s3 }
0x1f7a   :  { %v1085_v46 = vpop.permute.xlu1 %1084 }
0x1f7b   :  { %v1087_v13 = vmul.f32 %v1085_v46, %v1065_v27 }
0x1f7d   :  { %v1089_v47 = vrot.slane %v1087_v13, 2 }
0x1f7f   :  { %1090 = vrot.lane.b32.xlu2 %v1089_v47, %s3070_s4 }
0x1f82   :  { %v1295_v56 = vpop.permute.xlu1 %1294 }
0x1fd9   :  { %v1091_v48 = vpop.permute.xlu2 %1090 }
0x1fda   :  { %2684 = vmatmul.msk.f32.vlgmr.msrb.gmra.mxu2 %vm129_vm4, %v1091_v48 }
0x1fdb   :  { %1487 = vmatpush.msrb.mxu2 %v3370_v30 }
0x1fdd   :  { %1488 = vmatpush.msrb.mxu2 %v3372_v31 }
0x1fdf   :  { %1489 = vmatpush.msrb.mxu2 %v3376_v32 }
0x1fe1   :  { %1490 = vmatpush.msrb.mxu2 %v3380_v33 }
0x1fe2   :  { %2690 = vmatmul.msk.f32.vlgmr.msra.gmra.mxu2 %vm129_vm4, %v3236_v9  ;;  %v2689_v9 = vmul.f32 -1.442695, %v1271_v42 }
0x1fe3   :  { %1653 = vmatpush.msra.mxu2 %v3370_v30 }
0x1fe4   :  { %2864 = vpow2.f32 %v2689_v9 }
0x1fe5   :  { %1654 = vmatpush.msra.mxu2 %v3372_v31 }
0x1fe7   :  { %1655 = vmatpush.msra.mxu2 %v3376_v32 }
0x1fe9   :  { %1656 = vmatpush.msra.mxu2 %v3380_v33 }
0x1fea   :  { %2696 = vmatmul.msk.f32.vlgmr.msrb.gmra.mxu2 %vm129_vm4, %v3265_v12  ;;  %v2865_v12 = vpop.eup %2864 }
0x1feb   :  { %1819 = vmatpush.msrb.mxu2 %v3370_v30 }
0x1fed   :  { %1820 = vmatpush.msrb.mxu2 %v3372_v31 }
0x1fef   :  { %1821 = vmatpush.msrb.mxu2 %v3376_v32 }
0x1ff1   :  { %1822 = vmatpush.msrb.mxu2 %v3380_v33 }
0x1ff2   :  { %2702 = vmatmul.msk.f32.vlgmr.msra.gmra.mxu2 %vm129_vm4, %v3295_v19  ;;  %v1275_v19 = vadd.f32 1.0, %v2865_v12 }
0x1ff3   :  { %1985 = vmatpush.msra.mxu2 %v3370_v30 }
0x1ff4   :  { %2866 = vrcp.f32 %v1275_v19  ;;  %vm1281_vm13 = vweird.f32 %v1275_v19  ;;  %v1285_v54 = vand.u32 2147483647, %v1275_v19 }
0x1ff5   :  { %1986 = vmatpush.msra.mxu2 %v3372_v31 }
0x1ff6   :  { %vm1286_vm15 = vcmp.eq.f32.partialorder %v1285_v54, 8.507059e+37 }
0x1ff7   :  { %1987 = vmatpush.msra.mxu2 %v3376_v32 }
0x1ff9   :  { %1988 = vmatpush.msra.mxu2 %v3380_v33 }
0x1ffa   :  { %2708 = vmatmul.msk.f32.vlgmr.msrb.gmra.mxu2 %vm129_vm4, %v3324_v21  ;;  %v2867_v21 = vpop.eup %2866 }
0x1ffb   :  { %2151 = vmatpush.msrb.mxu2 %v3370_v30  ;;  %vm1282_vm12 = vweird.f32 %v2867_v21 }
0x1ffc   :  { %vm1283_vm14 = vmor %vm1281_vm13, %vm1282_vm12  ;;  %vm2585_vm13 = vcmask 1041408  }
0x1ffd   :  { %2152 = vmatpush.msrb.mxu2 %v3372_v31 }
0x1fff   :  { %2153 = vmatpush.msrb.mxu2 %v3376_v32 }
0x2001   :  { %2154 = vmatpush.msrb.mxu2 %v3380_v33 }
0x2002   :  { %2714 = vmatmul.msk.f32.vlgmr.msra.gmra.mxu2 %vm129_vm4, %v3346_v25  ;;  %v1277_v25 = vmul.f32 %v2867_v21, %v1275_v19 }
0x2003   :  { %2317 = vmatpush.msra.mxu2 %v3370_v30 }
0x2005   :  { %2318 = vmatpush.msra.mxu2 %v3372_v31 }
0x2007   :  { %2319 = vmatpush.msra.mxu2 %v3376_v32 }
0x2009   :  { %2320 = vmatpush.msra.mxu2 %v3380_v33 }
0x200a   :  { %2720 = vmatmul.msk.f32.vlgmr.msrb.gmra.mxu2 %vm129_vm4, %v3386_v34  ;;  %v1278_v34 = vsub.f32 1.0, %v1277_v25 }
0x200b   :  { %2489 = vmatpush.msrb.mxu2 %v3370_v30 }
0x200d   :  { %2490 = vmatpush.msrb.mxu2 %v3372_v31  ;;  %v1279_v31 = vmul.f32 %v2867_v21, %v1278_v34 }
0x200f   :  { %2491 = vmatpush.msrb.mxu2 %v3376_v32  ;;  %v1280_v52 = vadd.f32 %v2867_v21, %v1279_v31 }
0x2011   :  { %2492 = vmatpush.msrb.mxu2 %v3380_v33  ;;  %v1287_v33 = vand.u32 2147483648, %v1275_v19  ;;  %v1284_v55 = vsel %vm1283_vm14, %v2867_v21, %v1280_v52  ;;  %vm2587_vm14 = vcmask 1043456  }
0x2012   :  { %2726 = vmatmul.msk.f32.vlgmr.msra.gmra.mxu2 %vm129_vm4, %v1091_v48 }
0x2013   :  { %v1288_v15 = vor.u32 1.1754944e-38, %v1287_v33 }
0x2015   :  { %v1289_v2 = vsel %vm1286_vm15, %v1288_v15, %v1284_v55 }
0x2016   :  { %v1297_v57 = vmul.f32 %v1295_v56, %v1289_v2  ;;  %v1292_v18 = vmul.f32 0.0, %v1289_v2 }
0x205d   :  { %v1111_v49 = vpop.f32.mrf.mxu2 }
0x205e   :  { %v1115_v51 = vrot.slane %v1111_v49, 4 }
0x2060   :  { %v1117_v30 = vadd.f32 %v1115_v51, %v3434_v50 }
0x2062   :  { %2868 = vtanh.f32 %v1117_v30  ;;  %v2685_v3 = vmul.f32 -1.442695, %v1117_v30 }
0x2064   :  { %2870 = vpow2.f32 %v2685_v3 }
0x2065   :  { %v1326_v42 = vpop.f32.mrf.mxu2 }
0x2066   :  { %v1327_v43 = vadd.f32 %v1326_v42, %v3482_v35 }
0x2068   :  { %v2869_v32 = vpop.eup %2868 }
0x2069   :  { %1143 = vrot.lane.b32.xlu0 %v2869_v32, %s3069_s3 }
0x206a   :  { %v2871_v58 = vpop.eup %2870 }
0x206b   :  { %v1121_v60 = vadd.f32 1.0, %v2871_v58  ;;  %v1409_v58 = vpop.f32.mrf.mxu0 }
0x206d   :  { %2872 = vrcp.f32 %v1121_v60  ;;  %v1133_v24 = vand.u32 2147483648, %v1121_v60  ;;  %vm1127_vm1 = vweird.f32 %v1121_v60  ;;  %v1131_v7 = vand.u32 2147483647, %v1121_v60 }
0x206f   :  { %v1134_v8 = vor.u32 1.1754944e-38, %v1133_v24  ;;  %vm1132_vm3 = vcmp.eq.f32.partialorder %v1131_v7, 8.507059e+37 }
0x2071   :  { %1299 = vrot.lane.b32.xlu0 %v1297_v57, %s3070_s4 }
0x2073   :  { %v2873_v61 = vpop.eup %2872 }
0x2074   :  { %v1123_v62 = vmul.f32 %v2873_v61, %v1121_v60  ;;  %vm1128_vm0 = vweird.f32 %v2873_v61  ;;  %v1410_v60 = vadd.f32 %v1409_v58, %v3482_v35 }
0x2075   :  { %vm1129_vm2 = vmor %vm1127_vm1, %vm1128_vm0 }
0x2076   :  { %v1124_v63 = vsub.f32 1.0, %v1123_v62 }
0x2078   :  { %v1125_v0 = vmul.f32 %v2873_v61, %v1124_v63 }
0x207a   :  { %v1126_v1 = vadd.f32 %v2873_v61, %v1125_v0 }
0x207c   :  { %v1130_v4 = vsel %vm1129_vm2, %v2873_v61, %v1126_v1 }
0x207d   :  { %v1135_v14 = vsel %vm1132_vm3, %v1134_v8, %v1130_v4  ;;  %vm2589_vm3 = vcmask 1045504  }
0x207e   :  { %v1141_v27 = vmul.f32 %v1139_v26, %v1135_v14 }
0x20db   :  { %v1144_v11 = vpop.permute.xlu0 %1143 }
0x20dc   :  { %v1146_v16 = vmul.f32 %v1144_v11, %v1135_v14 }
0x20de   :  { %1148 = vrot.lane.b32.xlu2 %v1146_v16, %s3070_s4 }
0x20e3   :  { %v1300_v20 = vpop.permute.xlu0 %1299 }
0x20e4   :  { %v1302_v22 = vadd.f32 %v1300_v20, %v1292_v18 }
0x20e6   :  { %2874 = vtanh.f32 %v1302_v22 }
0x20ec   :  { %v2875_v23 = vpop.eup %2874 }
0x20ed   :  { %1305 = vrot.lane.b32.xlu2 %v2875_v23, %s3069_s3 }
0x2138   :  { %v1149_v28 = vpop.permute.xlu2 %1148 }
0x2139   :  { %v3539_v29 = vadd.f32 %v1149_v28, %v1141_v27 }
0x213b   :  { %2876 = vtanh.f32 %v3539_v29 }
0x2141   :  { %v2877_v40 = vpop.eup %2876 }
0x2142   :  { %1154 = vrot.lane.b32.xlu1 %v2877_v40, %s3069_s3 }
0x2147   :  { %v1306_v41 = vpop.permute.xlu2 %1305 }
0x2148   :  { %v3543_v45 = vmul.f32 %v1306_v41, %v1289_v2 }
0x214a   :  { %1330 = vrot.lane.b32.xlu1 %v3543_v45, %s3070_s4 }
0x21b4   :  { %v1155_v53 = vpop.permute.xlu1 %1154 }
0x21b5   :  { %v1157_v10 = vmul.f32 %v1155_v53, %v1135_v14 }
0x21b7   :  { %v1159_v37 = vrot.slane %v1157_v10, 4 }
0x21b9   :  { %1160 = vrot.lane.b32.xlu0 %v1159_v37, %s3070_s4 }
0x21bc   :  { %v1331_v38 = vpop.permute.xlu1 %1330 }
0x222b   :  { %v1161_v36 = vpop.permute.xlu0 %1160 }
0x222c   :  { %2686 = vmatmul.msk.f32.vlgmr.msrb.gmra.mxu3 %vm129_vm4, %v1161_v36  ;;  %2729 = vmatmul.msk.f32.vlgmr.msrb.gmra.mxu0 %vm129_vm4, %v1161_v36 }
0x222d   :  { %1512 = vmatpush.msrb.mxu3 %v3445_v5 }
0x222f   :  { %1513 = vmatpush.msrb.mxu3 %v3447_v6 }
0x2231   :  { %1514 = vmatpush.msrb.mxu3 %v3451_v59 }
0x2233   :  { %1515 = vmatpush.msrb.mxu3 %v3455_v17 }
0x2234   :  { %2691 = vmatmul.msk.f32.vlgmr.msra.gmra.mxu3 %vm129_vm4, %v1331_v38 }
0x2235   :  { %1678 = vmatpush.msra.mxu3 %v3445_v5 }
0x2237   :  { %1679 = vmatpush.msra.mxu3 %v3447_v6 }
0x2239   :  { %1680 = vmatpush.msra.mxu3 %v3451_v59 }
0x223b   :  { %1681 = vmatpush.msra.mxu3 %v3455_v17 }
0x22af   :  { %v3559_v39 = vpop.f32.mrf.mxu3 }
0x22b7   :  { %v1351_v44 = vpop.f32.mrf.mxu3 }
0x22b8   :  { %v1354_v46 = vadd.f32 %v1351_v44, %v1327_v43 }
0x22ba   :  { %2878 = vtanh.f32 %v1354_v46  ;;  %v2692_v47 = vmul.f32 -1.442695, %v1354_v46  ;;  %v1492_v46 = vpop.f32.mrf.mxu2 }
0x22bc   :  { %2880 = vpow2.f32 %v2692_v47 }
0x22c0   :  { %v2879_v13 = vpop.eup %2878 }
0x22c1   :  { %1377 = vrot.lane.b32.xlu2 %v2879_v13, %s3069_s3  ;;  %v1493_v13 = vadd.f32 %v1492_v46, %v3482_v35 }
0x22c2   :  { %v2881_v48 = vpop.eup %2880  ;;  %v1658_v46 = vpop.f32.mrf.mxu2 }
0x22c3   :  { %v1358_v9 = vadd.f32 1.0, %v2881_v48 }
0x22c5   :  { %2882 = vrcp.f32 %v1358_v9  ;;  %v1370_v51 = vand.u32 2147483648, %v1358_v9  ;;  %vm1364_vm6 = vweird.f32 %v1358_v9  ;;  %v1368_v34 = vand.u32 2147483647, %v1358_v9 }
0x22c7   :  { %v1371_v31 = vor.u32 1.1754944e-38, %v1370_v51  ;;  %vm1369_vm8 = vcmp.eq.f32.partialorder %v1368_v34, 8.507059e+37 }
0x22cb   :  { %v2883_v12 = vpop.eup %2882 }
0x22cc   :  { %v1360_v19 = vmul.f32 %v2883_v12, %v1358_v9  ;;  %vm1365_vm5 = vweird.f32 %v2883_v12 }
0x22cd   :  { %vm1366_vm7 = vmor %vm1364_vm6, %vm1365_vm5 }
0x22ce   :  { %v1361_v21 = vsub.f32 1.0, %v1360_v19 }
0x22d0   :  { %v1362_v25 = vmul.f32 %v2883_v12, %v1361_v21 }
0x22d2   :  { %v1363_v49 = vadd.f32 %v2883_v12, %v1362_v25 }
0x22d4   :  { %v1367_v30 = vsel %vm1366_vm7, %v2883_v12, %v1363_v49 }
0x22d5   :  { %v1372_v32 = vsel %vm1369_vm8, %v1371_v31, %v1367_v30 }
0x22d6   :  { %v1375_v54 = vmul.f32 %v1372_v32, %v1302_v22 }
0x231b   :  { %v1378_v52 = vpop.permute.xlu2 %1377 }
0x231c   :  { %v1380_v33 = vmul.f32 %v1378_v52, %v1372_v32 }
0x231e   :  { %1382 = vrot.lane.b32.xlu0 %v1380_v33, %s3070_s4 }
0x2390   :  { %v1383_v55 = vpop.permute.xlu0 %1382 }
0x2391   :  { %v1385_v15 = vadd.f32 %v1383_v55, %v1375_v54 }
0x2393   :  { %2884 = vtanh.f32 %v1385_v15 }
0x2399   :  { %v2885_v56 = vpop.eup %2884 }
0x239a   :  { %1388 = vrot.lane.b32.xlu1 %v2885_v56, %s3069_s3 }
0x240c   :  { %v1389_v2 = vpop.permute.xlu1 %1388 }
0x240d   :  { %v1391_v57 = vmul.f32 %v1389_v2, %v1372_v32 }
0x240f   :  { %1413 = vrot.lane.b32.xlu2 %v1391_v57, %s3070_s4  ;;  %v2560_v10 = vrot.slane %v1391_v57, 6 }
0x2411   :  { %v2586_v42 = vsel %vm2585_vm13, %v3543_v45, %v2560_v10 }
0x2469   :  { %v1414_v3 = vpop.permute.xlu2 %1413 }
0x246a   :  { %2694 = vmatmul.msk.f32.vlgmr.msrb.gmra.mxu1 %vm129_vm4, %v1414_v3 }
0x246b   :  { %1761 = vmatpush.msrb.mxu1 %v3445_v5 }
0x246d   :  { %1762 = vmatpush.msrb.mxu1 %v3447_v6 }
0x246f   :  { %1763 = vmatpush.msrb.mxu1 %v3451_v59 }
0x2471   :  { %1764 = vmatpush.msrb.mxu1 %v3455_v17 }
0x24e7   :  { %v1434_v61 = vpop.f32.mrf.mxu1 }
0x24e8   :  { %v1437_v62 = vadd.f32 %v1434_v61, %v1410_v60 }
0x24ea   :  { %2886 = vtanh.f32 %v1437_v62  ;;  %v2695_v0 = vmul.f32 -1.442695, %v1437_v62 }
0x24ec   :  { %2888 = vpow2.f32 %v2695_v0 }
0x24f0   :  { %v2887_v63 = vpop.eup %2886 }
0x24f1   :  { %1460 = vrot.lane.b32.xlu0 %v2887_v63, %s3069_s3  ;;  %v1575_v63 = vpop.f32.mrf.mxu0 }
0x24f2   :  { %v2889_v1 = vpop.eup %2888  ;;  %v1576_v0 = vadd.f32 %v1575_v63, %v3482_v35 }
0x24f3   :  { %v1441_v24 = vadd.f32 1.0, %v2889_v1 }
0x24f5   :  { %2890 = vrcp.f32 %v1441_v24  ;;  %v1453_v16 = vand.u32 2147483648, %v1441_v24  ;;  %vm1447_vm10 = vweird.f32 %v1441_v24  ;;  %v1451_v18 = vand.u32 2147483647, %v1441_v24 }
0x24f7   :  { %v1454_v22 = vor.u32 1.1754944e-38, %v1453_v16  ;;  %vm1452_vm12 = vcmp.eq.f32.partialorder %v1451_v18, 8.507059e+37 }
0x24fb   :  { %v2891_v7 = vpop.eup %2890 }
0x24fc   :  { %v1443_v4 = vmul.f32 %v2891_v7, %v1441_v24  ;;  %vm1448_vm9 = vweird.f32 %v2891_v7 }
0x24fd   :  { %vm1449_vm11 = vmor %vm1447_vm10, %vm1448_vm9 }
0x24fe   :  { %v1444_v8 = vsub.f32 1.0, %v1443_v4 }
0x2500   :  { %v1445_v11 = vmul.f32 %v2891_v7, %v1444_v8 }
0x2502   :  { %v1446_v14 = vadd.f32 %v2891_v7, %v1445_v11 }
0x2504   :  { %v1450_v20 = vsel %vm1449_vm11, %v2891_v7, %v1446_v14 }
0x2505   :  { %v1455_v26 = vsel %vm1452_vm12, %v1454_v22, %v1450_v20 }
0x2506   :  { %v1458_v28 = vmul.f32 %v1455_v26, %v1385_v15 }
0x2563   :  { %v1461_v23 = vpop.permute.xlu0 %1460 }
0x2564   :  { %v1463_v27 = vmul.f32 %v1461_v23, %v1455_v26 }
0x2566   :  { %1465 = vrot.lane.b32.xlu1 %v1463_v27, %s3070_s4 }
0x25d8   :  { %v1466_v40 = vpop.permute.xlu1 %1465 }
0x25d9   :  { %v1468_v41 = vadd.f32 %v1466_v40, %v1458_v28 }
0x25db   :  { %2892 = vtanh.f32 %v1468_v41 }
0x25e1   :  { %v2893_v53 = vpop.eup %2892 }
0x25e2   :  { %1471 = vrot.lane.b32.xlu2 %v2893_v53, %s3069_s3 }
0x263c   :  { %v1472_v37 = vpop.permute.xlu2 %1471 }
0x263d   :  { %v1474_v36 = vmul.f32 %v1472_v37, %v1455_v26 }
0x263f   :  { %v2562_v38 = vrot.slane %v1474_v36, 4  ;;  %1496 = vrot.lane.b32.xlu0 %v1474_v36, %s3070_s4 }
0x2641   :  { %v2588_v43 = vsel %vm2587_vm14, %v2586_v42, %v2562_v38 }
0x26b1   :  { %v1497_v44 = vpop.permute.xlu0 %1496 }
0x26b2   :  { %2697 = vmatmul.msk.f32.vlgmr.msrb.gmra.mxu3 %vm129_vm4, %v1497_v44 }
0x26b3   :  { %1844 = vmatpush.msrb.mxu3 %v3445_v5 }
0x26b5   :  { %1845 = vmatpush.msrb.mxu3 %v3447_v6 }
0x26b7   :  { %1846 = vmatpush.msrb.mxu3 %v3451_v59 }
0x26b9   :  { %1847 = vmatpush.msrb.mxu3 %v3455_v17 }
0x2735   :  { %v1517_v47 = vpop.f32.mrf.mxu3 }
0x2736   :  { %v1520_v48 = vadd.f32 %v1517_v47, %v1493_v13  ;;  %v1659_v13 = vadd.f32 %v1658_v46, %v3482_v35 }
0x2738   :  { %2894 = vtanh.f32 %v1520_v48  ;;  %v2698_v9 = vmul.f32 -1.442695, %v1520_v48 }
0x273a   :  { %2896 = vpow2.f32 %v2698_v9 }
0x273e   :  { %v2895_v45 = vpop.eup %2894 }
0x273f   :  { %1543 = vrot.lane.b32.xlu1 %v2895_v45, %s3069_s3 }
0x2740   :  { %v2897_v12 = vpop.eup %2896 }
0x2741   :  { %v1524_v19 = vadd.f32 1.0, %v2897_v12 }
0x2743   :  { %2898 = vrcp.f32 %v1524_v19  ;;  %v1536_v30 = vand.u32 2147483648, %v1524_v19  ;;  %vm1530_vm0 = vweird.f32 %v1524_v19  ;;  %v1534_v31 = vand.u32 2147483647, %v1524_v19 }
0x2745   :  { %v1537_v32 = vor.u32 1.1754944e-38, %v1536_v30  ;;  %vm1535_vm2 = vcmp.eq.f32.partialorder %v1534_v31, 8.507059e+37 }
0x2749   :  { %v2899_v21 = vpop.eup %2898 }
0x274a   :  { %v1526_v25 = vmul.f32 %v2899_v21, %v1524_v19  ;;  %vm1531_vm15 = vweird.f32 %v2899_v21 }
0x274b   :  { %vm1532_vm1 = vmor %vm1530_vm0, %vm1531_vm15 }
0x274c   :  { %v1527_v49 = vsub.f32 1.0, %v1526_v25 }
0x274e   :  { %v1528_v51 = vmul.f32 %v2899_v21, %v1527_v49 }
0x2750   :  { %v1529_v34 = vadd.f32 %v2899_v21, %v1528_v51 }
0x2752   :  { %v1533_v52 = vsel %vm1532_vm1, %v2899_v21, %v1529_v34 }
0x2753   :  { %v1538_v54 = vsel %vm1535_vm2, %v1537_v32, %v1533_v52 }
0x2754   :  { %v1541_v15 = vmul.f32 %v1538_v54, %v1468_v41 }
0x27b1   :  { %v1544_v33 = vpop.permute.xlu1 %1543 }
0x27b2   :  { %v1546_v55 = vmul.f32 %v1544_v33, %v1538_v54 }
0x27b4   :  { %1548 = vrot.lane.b32.xlu2 %v1546_v55, %s3070_s4 }
0x280e   :  { %v1549_v56 = vpop.permute.xlu2 %1548 }
0x280f   :  { %v1551_v2 = vadd.f32 %v1549_v56, %v1541_v15 }
0x2811   :  { %2900 = vtanh.f32 %v1551_v2 }
0x2817   :  { %v2901_v57 = vpop.eup %2900 }
0x2818   :  { %1554 = vrot.lane.b32.xlu0 %v2901_v57, %s3069_s3 }
0x288a   :  { %v1555_v3 = vpop.permute.xlu0 %1554 }
0x288b   :  { %v1557_v58 = vmul.f32 %v1555_v3, %v1538_v54 }
0x288d   :  { %v2564_v60 = vrot.slane %v1557_v58, 2  ;;  %1579 = vrot.lane.b32.xlu1 %v1557_v58, %s3070_s4 }
0x288f   :  { %v3590_v61 = vsel %vm2589_vm3, %v2588_v43, %v2564_v60 }
0x28ff   :  { %v1580_v62 = vpop.permute.xlu1 %1579 }
0x2900   :  { %2700 = vmatmul.msk.f32.vlgmr.msra.gmra.mxu1 %vm129_vm4, %v1580_v62  ;;  %v1741_v62 = vpop.f32.mrf.mxu0 }
0x2901   :  { %1927 = vmatpush.msra.mxu1 %v3445_v5  ;;  %v1742_v63 = vadd.f32 %v1741_v62, %v3482_v35 }
0x2903   :  { %1928 = vmatpush.msra.mxu1 %v3447_v6 }
0x2905   :  { %1929 = vmatpush.msra.mxu1 %v3451_v59 }
0x2907   :  { %1930 = vmatpush.msra.mxu1 %v3455_v17 }
0x297d   :  { %v1600_v1 = vpop.f32.mrf.mxu1 }
0x297e   :  { %v1603_v24 = vadd.f32 %v1600_v1, %v1576_v0 }
0x2980   :  { %2902 = vtanh.f32 %v1603_v24  ;;  %v2701_v4 = vmul.f32 -1.442695, %v1603_v24 }
0x2982   :  { %2904 = vpow2.f32 %v2701_v4 }
0x2986   :  { %v2903_v7 = vpop.eup %2902 }
0x2987   :  { %1626 = vrot.lane.b32.xlu2 %v2903_v7, %s3069_s3 }
0x2988   :  { %v2905_v8 = vpop.eup %2904 }
0x2989   :  { %v1607_v11 = vadd.f32 1.0, %v2905_v8 }
0x298b   :  { %2906 = vrcp.f32 %v1607_v11  ;;  %v1619_v23 = vand.u32 2147483648, %v1607_v11  ;;  %vm1613_vm6 = vweird.f32 %v1607_v11  ;;  %v1617_v26 = vand.u32 2147483647, %v1607_v11 }
0x298d   :  { %v1620_v28 = vor.u32 1.1754944e-38, %v1619_v23  ;;  %vm1618_vm8 = vcmp.eq.f32.partialorder %v1617_v26, 8.507059e+37 }
0x2991   :  { %v2907_v14 = vpop.eup %2906 }
0x2992   :  { %v1609_v16 = vmul.f32 %v2907_v14, %v1607_v11  ;;  %vm1614_vm5 = vweird.f32 %v2907_v14 }
0x2993   :  { %vm1615_vm7 = vmor %vm1613_vm6, %vm1614_vm5 }
0x2994   :  { %v1610_v18 = vsub.f32 1.0, %v1609_v16 }
0x2996   :  { %v1611_v20 = vmul.f32 %v2907_v14, %v1610_v18 }
0x2998   :  { %v1612_v22 = vadd.f32 %v2907_v14, %v1611_v20 }
0x299a   :  { %v1616_v27 = vsel %vm1615_vm7, %v2907_v14, %v1612_v22 }
0x299b   :  { %v1621_v41 = vsel %vm1618_vm8, %v1620_v28, %v1616_v27 }
0x299c   :  { %v1624_v10 = vmul.f32 %v1621_v41, %v1551_v2 }
0x29e1   :  { %v1627_v40 = vpop.permute.xlu2 %1626 }
0x29e2   :  { %v1629_v53 = vmul.f32 %v1627_v40, %v1621_v41 }
0x29e4   :  { %1631 = vrot.lane.b32.xlu0 %v1629_v53, %s3070_s4 }
0x2a56   :  { %v1632_v37 = vpop.permute.xlu0 %1631 }
0x2a57   :  { %v1634_v36 = vadd.f32 %v1632_v37, %v1624_v10 }
0x2a59   :  { %2908 = vtanh.f32 %v1634_v36 }
0x2a5f   :  { %v2909_v38 = vpop.eup %2908 }
0x2a60   :  { %1637 = vrot.lane.b32.xlu1 %v2909_v38, %s3069_s3 }
0x2ad2   :  { %v1638_v42 = vpop.permute.xlu1 %1637 }
0x2ad3   :  { %v3601_v43 = vmul.f32 %v1638_v42, %v1621_v41 }
0x2ad5   :  { %1662 = vrot.lane.b32.xlu2 %v3601_v43, %s3070_s4 }
0x2b2f   :  { %v1663_v44 = vpop.permute.xlu2 %1662 }
0x2b30   :  { %2703 = vmatmul.msk.f32.vlgmr.msra.gmra.mxu3 %vm129_vm4, %v1663_v44 }
0x2b31   :  { %2010 = vmatpush.msra.mxu3 %v3445_v5 }
0x2b33   :  { %2011 = vmatpush.msra.mxu3 %v3447_v6 }
0x2b35   :  { %2012 = vmatpush.msra.mxu3 %v3451_v59 }
0x2b37   :  { %2013 = vmatpush.msra.mxu3 %v3455_v17 }
0x2bb3   :  { %v1683_v47 = vpop.f32.mrf.mxu3 }
0x2bb4   :  { %v1686_v48 = vadd.f32 %v1683_v47, %v1659_v13 }
0x2bb6   :  { %2910 = vtanh.f32 %v1686_v48  ;;  %v2704_v9 = vmul.f32 -1.442695, %v1686_v48 }
0x2bb8   :  { %2912 = vpow2.f32 %v2704_v9 }
0x2bbc   :  { %v2911_v45 = vpop.eup %2910 }
0x2bbd   :  { %1709 = vrot.lane.b32.xlu0 %v2911_v45, %s3069_s3  ;;  %v1824_v45 = vpop.f32.mrf.mxu2 }
0x2bbe   :  { %v2913_v12 = vpop.eup %2912  ;;  %v1825_v9 = vadd.f32 %v1824_v45, %v3482_v35  ;;  %v3664_v45 = vld [vmem:[#allocation5] sm:$0xff] }
0x2bbf   :  { %v1690_v19 = vadd.f32 1.0, %v2913_v12 }
0x2bc1   :  { %2914 = vrcp.f32 %v1690_v19  ;;  %v1702_v30 = vand.u32 2147483648, %v1690_v19  ;;  %vm1696_vm10 = vweird.f32 %v1690_v19  ;;  %v1700_v31 = vand.u32 2147483647, %v1690_v19 }
0x2bc3   :  { %v1703_v32 = vor.u32 1.1754944e-38, %v1702_v30  ;;  %vm1701_vm12 = vcmp.eq.f32.partialorder %v1700_v31, 8.507059e+37 }
0x2bc7   :  { %v2915_v21 = vpop.eup %2914 }
0x2bc8   :  { %v1692_v25 = vmul.f32 %v2915_v21, %v1690_v19  ;;  %vm1697_vm9 = vweird.f32 %v2915_v21 }
0x2bc9   :  { %vm1698_vm11 = vmor %vm1696_vm10, %vm1697_vm9 }
0x2bca   :  { %v1693_v49 = vsub.f32 1.0, %v1692_v25 }
0x2bcc   :  { %v1694_v51 = vmul.f32 %v2915_v21, %v1693_v49 }
0x2bce   :  { %v1695_v34 = vadd.f32 %v2915_v21, %v1694_v51 }
0x2bd0   :  { %v1699_v52 = vsel %vm1698_vm11, %v2915_v21, %v1695_v34 }
0x2bd1   :  { %v1704_v54 = vsel %vm1701_vm12, %v1703_v32, %v1699_v52 }
0x2bd2   :  { %v1707_v15 = vmul.f32 %v1704_v54, %v1634_v36 }
0x2c2f   :  { %v1710_v33 = vpop.permute.xlu0 %1709 }
0x2c30   :  { %v1712_v55 = vmul.f32 %v1710_v33, %v1704_v54 }
0x2c32   :  { %1714 = vrot.lane.b32.xlu1 %v1712_v55, %s3070_s4 }
0x2ca4   :  { %v1715_v56 = vpop.permute.xlu1 %1714 }
0x2ca5   :  { %v1717_v2 = vadd.f32 %v1715_v56, %v1707_v15 }
0x2ca7   :  { %2916 = vtanh.f32 %v1717_v2 }
0x2cad   :  { %v2917_v57 = vpop.eup %2916 }
0x2cae   :  { %1720 = vrot.lane.b32.xlu2 %v2917_v57, %s3069_s3 }
0x2d08   :  { %v1721_v3 = vpop.permute.xlu2 %1720 }
0x2d09   :  { %v1723_v58 = vmul.f32 %v1721_v3, %v1704_v54 }
0x2d0b   :  { %1745 = vrot.lane.b32.xlu0 %v1723_v58, %s3070_s4  ;;  %v2566_v38 = vrot.slane %v1723_v58, 6 }
0x2d0d   :  { %v2591_v13 = vsel %vm2585_vm13, %v3601_v43, %v2566_v38 }
0x2d7d   :  { %v1746_v60 = vpop.permute.xlu0 %1745 }
0x2d7e   :  { %2706 = vmatmul.msk.f32.vlgmr.msrb.gmra.mxu1 %vm129_vm4, %v1746_v60 }
0x2d7f   :  { %2093 = vmatpush.msrb.mxu1 %v3445_v5 }
0x2d81   :  { %2094 = vmatpush.msrb.mxu1 %v3447_v6 }
0x2d83   :  { %2095 = vmatpush.msrb.mxu1 %v3451_v59 }
0x2d85   :  { %2096 = vmatpush.msrb.mxu1 %v3455_v17 }
0x2dfb   :  { %v1766_v0 = vpop.f32.mrf.mxu1 }
0x2dfc   :  { %v1769_v1 = vadd.f32 %v1766_v0, %v1742_v63  ;;  %v3642_v0 = vld [vmem:[#allocation5 + $0x18] sm:$0xff] }
0x2dfe   :  { %2918 = vtanh.f32 %v1769_v1  ;;  %v2707_v7 = vmul.f32 -1.442695, %v1769_v1  ;;  %v3645_v1 = vld [vmem:[#allocation5 + $0x10] sm:$0xff] }
0x2e00   :  { %2920 = vpow2.f32 %v2707_v7  ;;  %v1907_v7 = vpop.f32.mrf.mxu0 }
0x2e04   :  { %v2919_v24 = vpop.eup %2918 }
0x2e05   :  { %1792 = vrot.lane.b32.xlu1 %v2919_v24, %s3069_s3  ;;  %v3648_v24 = vld [vmem:[#allocation5 + $0x8] sm:$0xff] }
0x2e06   :  { %v2921_v4 = vpop.eup %2920 }
0x2e07   :  { %v1773_v8 = vadd.f32 1.0, %v2921_v4  ;;  %v1908_v4 = vadd.f32 %v1907_v7, %v3482_v35 }
0x2e08   :  { %v2073_v7 = vpop.f32.mrf.mxu0 }
0x2e09   :  { %2922 = vrcp.f32 %v1773_v8  ;;  %v1785_v22 = vand.u32 2147483648, %v1773_v8  ;;  %vm1779_vm0 = vweird.f32 %v1773_v8  ;;  %v1783_v23 = vand.u32 2147483647, %v1773_v8 }
0x2e0b   :  { %v1786_v27 = vor.u32 1.1754944e-38, %v1785_v22  ;;  %vm1784_vm2 = vcmp.eq.f32.partialorder %v1783_v23, 8.507059e+37 }
0x2e0f   :  { %v2923_v11 = vpop.eup %2922 }
0x2e10   :  { %v1775_v14 = vmul.f32 %v2923_v11, %v1773_v8  ;;  %vm1780_vm15 = vweird.f32 %v2923_v11 }
0x2e11   :  { %vm1781_vm1 = vmor %vm1779_vm0, %vm1780_vm15 }
0x2e12   :  { %v1776_v16 = vsub.f32 1.0, %v1775_v14 }
0x2e14   :  { %v1777_v18 = vmul.f32 %v2923_v11, %v1776_v16 }
0x2e16   :  { %v1778_v20 = vadd.f32 %v2923_v11, %v1777_v18 }
0x2e18   :  { %v1782_v26 = vsel %vm1781_vm1, %v2923_v11, %v1778_v20 }
0x2e19   :  { %v1787_v40 = vsel %vm1784_vm2, %v1786_v27, %v1782_v26 }
0x2e1a   :  { %v1790_v53 = vmul.f32 %v1787_v40, %v1717_v2 }
0x2e77   :  { %v1793_v28 = vpop.permute.xlu1 %1792 }
0x2e78   :  { %v1795_v41 = vmul.f32 %v1793_v28, %v1787_v40 }
0x2e7a   :  { %1797 = vrot.lane.b32.xlu2 %v1795_v41, %s3070_s4 }
0x2ed4   :  { %v1798_v10 = vpop.permute.xlu2 %1797 }
0x2ed5   :  { %v1800_v37 = vadd.f32 %v1798_v10, %v1790_v53 }
0x2ed7   :  { %2924 = vtanh.f32 %v1800_v37 }
0x2edd   :  { %v2925_v36 = vpop.eup %2924 }
0x2ede   :  { %1803 = vrot.lane.b32.xlu0 %v2925_v36, %s3069_s3 }
0x2f50   :  { %v1804_v42 = vpop.permute.xlu0 %1803 }
0x2f51   :  { %v1806_v44 = vmul.f32 %v1804_v42, %v1787_v40 }
0x2f53   :  { %v2568_v46 = vrot.slane %v1806_v44, 4  ;;  %1828 = vrot.lane.b32.xlu1 %v1806_v44, %s3070_s4 }
0x2f55   :  { %v2592_v47 = vsel %vm2587_vm14, %v2591_v13, %v2568_v46 }
0x2fc5   :  { %v1829_v48 = vpop.permute.xlu1 %1828 }
0x2fc6   :  { %2709 = vmatmul.msk.f32.vlgmr.msrb.gmra.mxu3 %vm129_vm4, %v1829_v48 }
0x2fc7   :  { %2176 = vmatpush.msrb.mxu3 %v3445_v5 }
0x2fc9   :  { %2177 = vmatpush.msrb.mxu3 %v3447_v6 }
0x2fcb   :  { %2178 = vmatpush.msrb.mxu3 %v3451_v59 }
0x2fcd   :  { %2179 = vmatpush.msrb.mxu3 %v3455_v17 }
0x3049   :  { %v1849_v12 = vpop.f32.mrf.mxu3 }
0x304a   :  { %v1852_v19 = vadd.f32 %v1849_v12, %v1825_v9  ;;  %v1990_v9 = vpop.f32.mrf.mxu2 }
0x304b   :  { %v1991_v12 = vadd.f32 %v1990_v9, %v3482_v35 }
0x304c   :  { %2926 = vtanh.f32 %v1852_v19  ;;  %v2710_v21 = vmul.f32 -1.442695, %v1852_v19 }
0x304e   :  { %2928 = vpow2.f32 %v2710_v21 }
0x3052   :  { %v2927_v43 = vpop.eup %2926 }
0x3053   :  { %1875 = vrot.lane.b32.xlu2 %v2927_v43, %s3069_s3 }
0x3054   :  { %v2929_v25 = vpop.eup %2928 }
0x3055   :  { %v1856_v49 = vadd.f32 1.0, %v2929_v25 }
0x3057   :  { %2930 = vrcp.f32 %v1856_v49  ;;  %v1868_v30 = vand.u32 2147483648, %v1856_v49  ;;  %vm1862_vm6 = vweird.f32 %v1856_v49  ;;  %v1866_v31 = vand.u32 2147483647, %v1856_v49 }
0x3059   :  { %v1869_v32 = vor.u32 1.1754944e-38, %v1868_v30  ;;  %vm1867_vm8 = vcmp.eq.f32.partialorder %v1866_v31, 8.507059e+37 }
0x305d   :  { %v2931_v5 = vpop.eup %2930 }
0x305e   :  { %v1858_v6 = vmul.f32 %v2931_v5, %v1856_v49  ;;  %vm1863_vm5 = vweird.f32 %v2931_v5 }
0x305f   :  { %vm1864_vm7 = vmor %vm1862_vm6, %vm1863_vm5 }
0x3060   :  { %v1859_v51 = vsub.f32 1.0, %v1858_v6 }
0x3062   :  { %v1860_v59 = vmul.f32 %v2931_v5, %v1859_v51 }
0x3064   :  { %v1861_v34 = vadd.f32 %v2931_v5, %v1860_v59 }
0x3066   :  { %v1865_v52 = vsel %vm1864_vm7, %v2931_v5, %v1861_v34 }
0x3067   :  { %v1870_v54 = vsel %vm1867_vm8, %v1869_v32, %v1865_v52 }
0x3068   :  { %v1873_v15 = vmul.f32 %v1870_v54, %v1800_v37 }
0x30ad   :  { %v1876_v33 = vpop.permute.xlu2 %1875 }
0x30ae   :  { %v1878_v55 = vmul.f32 %v1876_v33, %v1870_v54 }
0x30b0   :  { %1880 = vrot.lane.b32.xlu0 %v1878_v55, %s3070_s4 }
0x3122   :  { %v1881_v56 = vpop.permute.xlu0 %1880 }
0x3123   :  { %v1883_v2 = vadd.f32 %v1881_v56, %v1873_v15 }
0x3125   :  { %2932 = vtanh.f32 %v1883_v2 }
0x312b   :  { %v2933_v57 = vpop.eup %2932 }
0x312c   :  { %1886 = vrot.lane.b32.xlu1 %v2933_v57, %s3069_s3 }
0x319e   :  { %v1887_v3 = vpop.permute.xlu1 %1886 }
0x319f   :  { %v1889_v58 = vmul.f32 %v1887_v3, %v1870_v54 }
0x31a1   :  { %v2570_v60 = vrot.slane %v1889_v58, 2  ;;  %1911 = vrot.lane.b32.xlu2 %v1889_v58, %s3070_s4 }
0x31a3   :  { %v3639_v62 = vsel %vm2589_vm3, %v2592_v47, %v2570_v60 }
0x31fb   :  { %v1912_v63 = vpop.permute.xlu2 %1911 }
0x31fc   :  { %2712 = vmatmul.msk.f32.vlgmr.msra.gmra.mxu1 %vm129_vm4, %v1912_v63 }
0x31fd   :  { %2259 = vmatpush.msra.mxu1 %v3642_v0 }
0x31ff   :  { %2260 = vmatpush.msra.mxu1 %v3645_v1 }
0x3201   :  { %2261 = vmatpush.msra.mxu1 %v3648_v24 }
0x3203   :  { %2262 = vmatpush.msra.mxu1 %v3455_v17 }
0x3279   :  { %v1932_v8 = vpop.f32.mrf.mxu1 }
0x327a   :  { %v1935_v11 = vadd.f32 %v1932_v8, %v1908_v4  ;;  %v2074_v4 = vadd.f32 %v2073_v7, %v3482_v35 }
0x327c   :  { %2934 = vtanh.f32 %v1935_v11  ;;  %v2713_v16 = vmul.f32 -1.442695, %v1935_v11 }
0x327e   :  { %2936 = vpow2.f32 %v2713_v16 }
0x3282   :  { %v2935_v14 = vpop.eup %2934 }
0x3283   :  { %1958 = vrot.lane.b32.xlu0 %v2935_v14, %s3069_s3 }
0x3284   :  { %v2937_v18 = vpop.eup %2936 }
0x3285   :  { %v1939_v20 = vadd.f32 1.0, %v2937_v18 }
0x3287   :  { %2938 = vrcp.f32 %v1939_v20  ;;  %v1951_v17 = vand.u32 2147483648, %v1939_v20  ;;  %vm1945_vm10 = vweird.f32 %v1939_v20  ;;  %v1949_v40 = vand.u32 2147483647, %v1939_v20 }
0x3289   :  { %v1952_v53 = vor.u32 1.1754944e-38, %v1951_v17  ;;  %vm1950_vm12 = vcmp.eq.f32.partialorder %v1949_v40, 8.507059e+37 }
0x328d   :  { %v2939_v22 = vpop.eup %2938 }
0x328e   :  { %v1941_v23 = vmul.f32 %v2939_v22, %v1939_v20  ;;  %vm1946_vm9 = vweird.f32 %v2939_v22 }
0x328f   :  { %vm1947_vm11 = vmor %vm1945_vm10, %vm1946_vm9 }
0x3290   :  { %v1942_v26 = vsub.f32 1.0, %v1941_v23 }
0x3292   :  { %v1943_v27 = vmul.f32 %v2939_v22, %v1942_v26 }
0x3294   :  { %v1944_v28 = vadd.f32 %v2939_v22, %v1943_v27 }
0x3296   :  { %v1948_v41 = vsel %vm1947_vm11, %v2939_v22, %v1944_v28 }
0x3297   :  { %v1953_v37 = vsel %vm1950_vm12, %v1952_v53, %v1948_v41 }
0x3298   :  { %v1956_v38 = vmul.f32 %v1953_v37, %v1883_v2 }
0x32f5   :  { %v1959_v10 = vpop.permute.xlu0 %1958 }
0x32f6   :  { %v1961_v36 = vmul.f32 %v1959_v10, %v1953_v37 }
0x32f8   :  { %1963 = vrot.lane.b32.xlu1 %v1961_v36, %s3070_s4 }
0x336a   :  { %v1964_v42 = vpop.permute.xlu1 %1963 }
0x336b   :  { %v1966_v44 = vadd.f32 %v1964_v42, %v1956_v38 }
0x336d   :  { %2940 = vtanh.f32 %v1966_v44 }
0x3373   :  { %v2941_v46 = vpop.eup %2940 }
0x3374   :  { %1969 = vrot.lane.b32.xlu2 %v2941_v46, %s3069_s3 }
0x33ce   :  { %v1970_v13 = vpop.permute.xlu2 %1969 }
0x33cf   :  { %v3656_v47 = vmul.f32 %v1970_v13, %v1953_v37 }
0x33d1   :  { %1994 = vrot.lane.b32.xlu0 %v3656_v47, %s3070_s4 }
0x3443   :  { %v1995_v48 = vpop.permute.xlu0 %1994 }
0x3444   :  { %2715 = vmatmul.msk.f32.vlgmr.msra.gmra.mxu3 %vm129_vm4, %v1995_v48 }
0x3445   :  { %2342 = vmatpush.msra.mxu3 %v3642_v0 }
0x3447   :  { %2343 = vmatpush.msra.mxu3 %v3645_v1 }
0x3449   :  { %2344 = vmatpush.msra.mxu3 %v3648_v24 }
0x344b   :  { %2345 = vmatpush.msra.mxu3 %v3664_v45 }
0x34c7   :  { %v2015_v19 = vpop.f32.mrf.mxu3 }
0x34c8   :  { %v2018_v43 = vadd.f32 %v2015_v19, %v1991_v12 }
0x34ca   :  { %2942 = vtanh.f32 %v2018_v43  ;;  %v2716_v25 = vmul.f32 -1.442695, %v2018_v43 }
0x34cc   :  { %2944 = vpow2.f32 %v2716_v25  ;;  %v2156_v25 = vpop.f32.mrf.mxu2 }
0x34d0   :  { %v2943_v21 = vpop.eup %2942 }
0x34d1   :  { %2041 = vrot.lane.b32.xlu1 %v2943_v21, %s3069_s3 }
0x34d2   :  { %v2945_v49 = vpop.eup %2944 }
0x34d3   :  { %v2022_v5 = vadd.f32 1.0, %v2945_v49  ;;  %v2157_v49 = vadd.f32 %v2156_v25, %v3482_v35 }
0x34d5   :  { %2946 = vrcp.f32 %v2022_v5  ;;  %v2034_v31 = vand.u32 2147483648, %v2022_v5  ;;  %vm2028_vm0 = vweird.f32 %v2022_v5  ;;  %v2032_v52 = vand.u32 2147483647, %v2022_v5 }
0x34d7   :  { %v2035_v33 = vor.u32 1.1754944e-38, %v2034_v31  ;;  %vm2033_vm2 = vcmp.eq.f32.partialorder %v2032_v52, 8.507059e+37 }
0x34db   :  { %v2947_v6 = vpop.eup %2946 }
0x34dc   :  { %v2024_v51 = vmul.f32 %v2947_v6, %v2022_v5  ;;  %vm2029_vm15 = vweird.f32 %v2947_v6 }
0x34dd   :  { %vm2030_vm1 = vmor %vm2028_vm0, %vm2029_vm15 }
0x34de   :  { %v2025_v59 = vsub.f32 1.0, %v2024_v51 }
0x34e0   :  { %v2026_v34 = vmul.f32 %v2947_v6, %v2025_v59 }
0x34e2   :  { %v2027_v30 = vadd.f32 %v2947_v6, %v2026_v34 }
0x34e4   :  { %v2031_v32 = vsel %vm2030_vm1, %v2947_v6, %v2027_v30 }
0x34e5   :  { %v2036_v55 = vsel %vm2033_vm2, %v2035_v33, %v2031_v32 }
0x34e6   :  { %v2039_v56 = vmul.f32 %v2036_v55, %v1966_v44 }
0x3543   :  { %v2042_v54 = vpop.permute.xlu1 %2041 }
0x3544   :  { %v2044_v15 = vmul.f32 %v2042_v54, %v2036_v55 }
0x3546   :  { %2046 = vrot.lane.b32.xlu2 %v2044_v15, %s3070_s4 }
0x35a0   :  { %v2047_v2 = vpop.permute.xlu2 %2046 }
0x35a1   :  { %v2049_v57 = vadd.f32 %v2047_v2, %v2039_v56 }
0x35a3   :  { %2948 = vtanh.f32 %v2049_v57 }
0x35a9   :  { %v2949_v3 = vpop.eup %2948 }
0x35aa   :  { %2052 = vrot.lane.b32.xlu0 %v2949_v3, %s3069_s3 }
0x361c   :  { %v2053_v58 = vpop.permute.xlu0 %2052 }
0x361d   :  { %v2055_v60 = vmul.f32 %v2053_v58, %v2036_v55 }
0x361f   :  { %2077 = vrot.lane.b32.xlu1 %v2055_v60, %s3070_s4  ;;  %v2572_v13 = vrot.slane %v2055_v60, 6 }
0x3621   :  { %v2594_v19 = vsel %vm2585_vm13, %v3656_v47, %v2572_v13 }
0x3691   :  { %v2078_v63 = vpop.permute.xlu1 %2077 }
0x3692   :  { %2718 = vmatmul.msk.f32.vlgmr.msrb.gmra.mxu1 %vm129_vm4, %v2078_v63 }
0x3693   :  { %2425 = vmatpush.msrb.mxu1 %v3642_v0 }
0x3695   :  { %2426 = vmatpush.msrb.mxu1 %v3645_v1 }
0x3697   :  { %2427 = vmatpush.msrb.mxu1 %v3648_v24 }
0x3699   :  { %2428 = vmatpush.msrb.mxu1 %v3664_v45 }
0x370f   :  { %v2098_v8 = vpop.f32.mrf.mxu1 }
0x3710   :  { %v2101_v11 = vadd.f32 %v2098_v8, %v2074_v4  ;;  %v2239_v8 = vpop.f32.mrf.mxu0 }
0x3712   :  { %2950 = vtanh.f32 %v2101_v11  ;;  %v2719_v16 = vmul.f32 -1.442695, %v2101_v11  ;;  %v2240_v11 = vadd.f32 %v2239_v8, %v3482_v35 }
0x3714   :  { %2952 = vpow2.f32 %v2719_v16 }
0x3718   :  { %v2951_v14 = vpop.eup %2950 }
0x3719   :  { %2124 = vrot.lane.b32.xlu2 %v2951_v14, %s3069_s3 }
0x371a   :  { %v2953_v18 = vpop.eup %2952 }
0x371b   :  { %v2105_v20 = vadd.f32 1.0, %v2953_v18 }
0x371d   :  { %2954 = vrcp.f32 %v2105_v20  ;;  %v2117_v17 = vand.u32 2147483648, %v2105_v20  ;;  %vm2111_vm6 = vweird.f32 %v2105_v20  ;;  %v2115_v40 = vand.u32 2147483647, %v2105_v20 }
0x371f   :  { %v2118_v53 = vor.u32 1.1754944e-38, %v2117_v17  ;;  %vm2116_vm8 = vcmp.eq.f32.partialorder %v2115_v40, 8.507059e+37 }
0x3723   :  { %v2955_v22 = vpop.eup %2954 }
0x3724   :  { %v2107_v23 = vmul.f32 %v2955_v22, %v2105_v20  ;;  %vm2112_vm5 = vweird.f32 %v2955_v22 }
0x3725   :  { %vm2113_vm7 = vmor %vm2111_vm6, %vm2112_vm5 }
0x3726   :  { %v2108_v26 = vsub.f32 1.0, %v2107_v23 }
0x3728   :  { %v2109_v27 = vmul.f32 %v2955_v22, %v2108_v26 }
0x372a   :  { %v2110_v28 = vadd.f32 %v2955_v22, %v2109_v27 }
0x372c   :  { %v2114_v41 = vsel %vm2113_vm7, %v2955_v22, %v2110_v28 }
0x372d   :  { %v2119_v37 = vsel %vm2116_vm8, %v2118_v53, %v2114_v41 }
0x372e   :  { %v2122_v38 = vmul.f32 %v2119_v37, %v2049_v57 }
0x3773   :  { %v2125_v10 = vpop.permute.xlu2 %2124 }
0x3774   :  { %v2127_v36 = vmul.f32 %v2125_v10, %v2119_v37 }
0x3776   :  { %2129 = vrot.lane.b32.xlu0 %v2127_v36, %s3070_s4 }
0x37e8   :  { %v2130_v42 = vpop.permute.xlu0 %2129 }
0x37e9   :  { %v2132_v44 = vadd.f32 %v2130_v42, %v2122_v38 }
0x37eb   :  { %2956 = vtanh.f32 %v2132_v44 }
0x37f1   :  { %v2957_v46 = vpop.eup %2956 }
0x37f2   :  { %2135 = vrot.lane.b32.xlu1 %v2957_v46, %s3069_s3 }
0x3864   :  { %v2136_v48 = vpop.permute.xlu1 %2135 }
0x3865   :  { %v2138_v9 = vmul.f32 %v2136_v48, %v2119_v37 }
0x3867   :  { %v2574_v12 = vrot.slane %v2138_v9, 4  ;;  %2160 = vrot.lane.b32.xlu2 %v2138_v9, %s3070_s4 }
0x3869   :  { %v2595_v43 = vsel %vm2587_vm14, %v2594_v19, %v2574_v12 }
0x38c1   :  { %v2161_v21 = vpop.permute.xlu2 %2160 }
0x38c2   :  { %2721 = vmatmul.msk.f32.vlgmr.msrb.gmra.mxu3 %vm129_vm4, %v2161_v21 }
0x38c3   :  { %2514 = vmatpush.msrb.mxu3 %v3642_v0 }
0x38c5   :  { %2515 = vmatpush.msrb.mxu3 %v3645_v1 }
0x38c7   :  { %2516 = vmatpush.msrb.mxu3 %v3648_v24 }
0x38c9   :  { %2517 = vmatpush.msrb.mxu3 %v3664_v45 }
0x3945   :  { %v2181_v5 = vpop.f32.mrf.mxu3 }
0x3946   :  { %v2184_v6 = vadd.f32 %v2181_v5, %v2157_v49 }
0x3948   :  { %2958 = vtanh.f32 %v2184_v6  ;;  %v2722_v51 = vmul.f32 -1.442695, %v2184_v6 }
0x394a   :  { %2960 = vpow2.f32 %v2722_v51 }
0x394e   :  { %v2959_v47 = vpop.eup %2958 }
0x394f   :  { %2207 = vrot.lane.b32.xlu0 %v2959_v47, %s3069_s3 }
0x3950   :  { %v2961_v59 = vpop.eup %2960 }
0x3951   :  { %v2188_v34 = vadd.f32 1.0, %v2961_v59 }
0x3953   :  { %2962 = vrcp.f32 %v2188_v34  ;;  %v2200_v45 = vand.u32 2147483648, %v2188_v34  ;;  %vm2194_vm10 = vweird.f32 %v2188_v34  ;;  %v2198_v52 = vand.u32 2147483647, %v2188_v34 }
0x3955   :  { %v2201_v33 = vor.u32 1.1754944e-38, %v2200_v45  ;;  %vm2199_vm12 = vcmp.eq.f32.partialorder %v2198_v52, 8.507059e+37  ;;  %v1185_v45 = vrot.slane %v3559_v39, 2 }
0x3959   :  { %v2963_v0 = vpop.eup %2962 }
0x395a   :  { %v2190_v1 = vmul.f32 %v2963_v0, %v2188_v34  ;;  %vm2195_vm9 = vweird.f32 %v2963_v0 }
0x395b   :  { %vm2196_vm11 = vmor %vm2194_vm10, %vm2195_vm9 }
0x395c   :  { %v2191_v30 = vsub.f32 1.0, %v2190_v1 }
0x395e   :  { %v2192_v24 = vmul.f32 %v2963_v0, %v2191_v30 }
0x3960   :  { %v2193_v31 = vadd.f32 %v2963_v0, %v2192_v24 }
0x3962   :  { %v2197_v32 = vsel %vm2196_vm11, %v2963_v0, %v2193_v31 }
0x3963   :  { %v2202_v55 = vsel %vm2199_vm12, %v2201_v33, %v2197_v32  ;;  %v1187_v33 = vadd.f32 %v1185_v45, %v3434_v50 }
0x3964   :  { %v2205_v56 = vmul.f32 %v2202_v55, %v2132_v44 }
0x39c1   :  { %v2208_v54 = vpop.permute.xlu0 %2207 }
0x39c2   :  { %v2210_v15 = vmul.f32 %v2208_v54, %v2202_v55 }
0x39c4   :  { %2212 = vrot.lane.b32.xlu1 %v2210_v15, %s3070_s4 }
0x3a36   :  { %v2213_v2 = vpop.permute.xlu1 %2212 }
0x3a37   :  { %v2215_v57 = vadd.f32 %v2213_v2, %v2205_v56 }
0x3a39   :  { %2964 = vtanh.f32 %v2215_v57 }
0x3a3f   :  { %v2965_v3 = vpop.eup %2964 }
0x3a40   :  { %2218 = vrot.lane.b32.xlu2 %v2965_v3, %s3069_s3 }
0x3a9a   :  { %v2219_v58 = vpop.permute.xlu2 %2218 }
0x3a9b   :  { %v2221_v60 = vmul.f32 %v2219_v58, %v2202_v55  ;;  %v2687_v58 = vmul.f32 -1.442695, %v1187_v33 }
0x3a9d   :  { %v2576_v63 = vrot.slane %v2221_v60, 2  ;;  %2243 = vrot.lane.b32.xlu0 %v2221_v60, %s3070_s4 }
0x3a9f   :  { %v3696_v7 = vsel %vm2589_vm3, %v2595_v43, %v2576_v63  ;;  %v2322_v43 = vpop.f32.mrf.mxu2 }
0x3aa0   :  { %v2323_v21 = vadd.f32 %v2322_v43, %v3482_v35 }
0x3b0f   :  { %v2244_v4 = vpop.permute.xlu0 %2243 }
0x3b10   :  { %2724 = vmatmul.msk.f32.vlgmr.msra.gmra.mxu1 %vm129_vm4, %v2244_v4 }
0x3b8d   :  { %v2264_v14 = vpop.f32.mrf.mxu1 }
0x3b8e   :  { %v2267_v16 = vadd.f32 %v2264_v14, %v2240_v11 }
0x3b90   :  { %2966 = vtanh.f32 %v2267_v16  ;;  %v2725_v20 = vmul.f32 -1.442695, %v2267_v16 }
0x3b92   :  { %2968 = vpow2.f32 %v2725_v20 }
0x3b96   :  { %v2967_v18 = vpop.eup %2966 }
0x3b97   :  { %2290 = vrot.lane.b32.xlu1 %v2967_v18, %s3069_s3 }
0x3b98   :  { %v2969_v22 = vpop.eup %2968 }
0x3b99   :  { %v2271_v23 = vadd.f32 1.0, %v2969_v22 }
0x3b9b   :  { %2970 = vrcp.f32 %v2271_v23  ;;  %v2283_v41 = vand.u32 2147483648, %v2271_v23  ;;  %vm2277_vm0 = vweird.f32 %v2271_v23  ;;  %v2281_v53 = vand.u32 2147483647, %v2271_v23 }
0x3b9d   :  { %v2284_v37 = vor.u32 1.1754944e-38, %v2283_v41  ;;  %vm2282_vm2 = vcmp.eq.f32.partialorder %v2281_v53, 8.507059e+37  ;;  %v2405_v41 = vpop.f32.mrf.mxu0 }
0x3b9e   :  { %v2406_v53 = vadd.f32 %v2405_v41, %v3482_v35 }
0x3ba1   :  { %v2971_v26 = vpop.eup %2970 }
0x3ba2   :  { %v2273_v27 = vmul.f32 %v2971_v26, %v2271_v23  ;;  %vm2278_vm15 = vweird.f32 %v2971_v26 }
0x3ba3   :  { %vm2279_vm1 = vmor %vm2277_vm0, %vm2278_vm15 }
0x3ba4   :  { %v2274_v28 = vsub.f32 1.0, %v2273_v27 }
0x3ba6   :  { %v2275_v17 = vmul.f32 %v2971_v26, %v2274_v28 }
0x3ba8   :  { %v2276_v40 = vadd.f32 %v2971_v26, %v2275_v17 }
0x3baa   :  { %v2280_v10 = vsel %vm2279_vm1, %v2971_v26, %v2276_v40 }
0x3bab   :  { %v2285_v38 = vsel %vm2282_vm2, %v2284_v37, %v2280_v10 }
0x3bac   :  { %v2288_v44 = vmul.f32 %v2285_v38, %v2215_v57 }
0x3c09   :  { %v2291_v36 = vpop.permute.xlu1 %2290 }
0x3c0a   :  { %v2293_v42 = vmul.f32 %v2291_v36, %v2285_v38  ;;  %v1209_v36 = vrot.slane %v3539_v29, 6 }
0x3c0c   :  { %2295 = vrot.lane.b32.xlu2 %v2293_v42, %s3070_s4 }
0x3c66   :  { %v2296_v46 = vpop.permute.xlu2 %2295 }
0x3c67   :  { %v2298_v13 = vadd.f32 %v2296_v46, %v2288_v44 }
0x3c69   :  { %2972 = vtanh.f32 %v2298_v13 }
0x3c6f   :  { %v2973_v48 = vpop.eup %2972 }
0x3c70   :  { %2301 = vrot.lane.b32.xlu0 %v2973_v48, %s3069_s3 }
0x3ce2   :  { %v2302_v9 = vpop.permute.xlu0 %2301 }
0x3ce3   :  { %v3703_v12 = vmul.f32 %v2302_v9, %v2285_v38 }
0x3ce5   :  { %2326 = vrot.lane.b32.xlu1 %v3703_v12, %s3070_s4 }
0x3d57   :  { %v2327_v19 = vpop.permute.xlu1 %2326 }
0x3d58   :  { %2727 = vmatmul.msk.f32.vlgmr.msra.gmra.mxu3 %vm129_vm4, %v2327_v19 }
0x3ddb   :  { %v2347_v25 = vpop.f32.mrf.mxu3 }
0x3ddc   :  { %v2350_v49 = vadd.f32 %v2347_v25, %v2323_v21 }
0x3dde   :  { %2974 = vtanh.f32 %v2350_v49  ;;  %v2728_v6 = vmul.f32 -1.442695, %v2350_v49 }
0x3de0   :  { %2976 = vpow2.f32 %v2728_v6 }
0x3de4   :  { %v2975_v5 = vpop.eup %2974 }
0x3de5   :  { %2373 = vrot.lane.b32.xlu2 %v2975_v5, %s3069_s3 }
0x3de6   :  { %v2977_v47 = vpop.eup %2976 }
0x3de7   :  { %v2354_v51 = vadd.f32 1.0, %v2977_v47 }
0x3de9   :  { %2978 = vrcp.f32 %v2354_v51  ;;  %v2366_v24 = vand.u32 2147483648, %v2354_v51  ;;  %vm2360_vm6 = vweird.f32 %v2354_v51  ;;  %v2364_v31 = vand.u32 2147483647, %v2354_v51 }
0x3dea   :  { %2980 = vtanh.f32 %v1187_v33 }
0x3deb   :  { %v2367_v32 = vor.u32 1.1754944e-38, %v2366_v24  ;;  %vm2365_vm8 = vcmp.eq.f32.partialorder %v2364_v31, 8.507059e+37 }
0x3def   :  { %v2979_v59 = vpop.eup %2978 }
0x3df0   :  { %v2356_v34 = vmul.f32 %v2979_v59, %v2354_v51  ;;  %vm2361_vm5 = vweird.f32 %v2979_v59  ;;  %v2981_v56 = vpop.eup %2980 }
0x3df1   :  { %vm2362_vm7 = vmor %vm2360_vm6, %vm2361_vm5 }
0x3df2   :  { %v2357_v0 = vsub.f32 1.0, %v2356_v34 }
0x3df4   :  { %v2358_v1 = vmul.f32 %v2979_v59, %v2357_v0 }
0x3df6   :  { %v2359_v30 = vadd.f32 %v2979_v59, %v2358_v1 }
0x3df8   :  { %v2363_v52 = vsel %vm2362_vm7, %v2979_v59, %v2359_v30  ;;  %vm2646_vm7 = vcmask 7168  }
0x3df9   :  { %v2368_v55 = vsel %vm2365_vm8, %v2367_v32, %v2363_v52 }
0x3dfa   :  { %v2371_v2 = vmul.f32 %v2368_v55, %v2298_v13 }
0x3e3f   :  { %v2374_v54 = vpop.permute.xlu2 %2373 }
0x3e40   :  { %v2376_v15 = vmul.f32 %v2374_v54, %v2368_v55 }
0x3e42   :  { %2378 = vrot.lane.b32.xlu0 %v2376_v15, %s3070_s4 }
0x3e4a   :  { %1213 = vrot.lane.b32.xlu0 %v2981_v56, %s3069_s3 }
0x3eb4   :  { %v2379_v57 = vpop.permute.xlu0 %2378 }
0x3eb5   :  { %v3714_v3 = vadd.f32 %v2379_v57, %v2371_v2 }
0x3eb7   :  { %2982 = vtanh.f32 %v3714_v3 }
0x3eb8   :  { %2984 = vpow2.f32 %v2687_v58 }
0x3ebc   :  { %v1214_v27 = vpop.permute.xlu0 %1213 }
0x3ebd   :  { %v2983_v39 = vpop.eup %2982 }
0x3ebe   :  { %2384 = vrot.lane.b32.xlu1 %v2983_v39, %s3069_s3  ;;  %v2985_v50 = vpop.eup %2984 }
0x3ebf   :  { %v1191_v60 = vadd.f32 1.0, %v2985_v50 }
0x3ec1   :  { %2986 = vrcp.f32 %v1191_v60  ;;  %v1203_v20 = vand.u32 2147483648, %v1191_v60  ;;  %vm1197_vm10 = vweird.f32 %v1191_v60  ;;  %v1201_v22 = vand.u32 2147483647, %v1191_v60 }
0x3ec3   :  { %v1204_v26 = vor.u32 1.1754944e-38, %v1203_v20  ;;  %vm1202_vm12 = vcmp.eq.f32.partialorder %v1201_v22, 8.507059e+37 }
0x3ec7   :  { %v2987_v63 = vpop.eup %2986 }
0x3ec8   :  { %v1193_v4 = vmul.f32 %v2987_v63, %v1191_v60  ;;  %vm1198_vm9 = vweird.f32 %v2987_v63 }
0x3ec9   :  { %vm1199_vm11 = vmor %vm1197_vm10, %vm1198_vm9 }
0x3eca   :  { %v1194_v8 = vsub.f32 1.0, %v1193_v4  ;;  %v2748_v4 = vld [vmem:[%s3779_s9] ss:$0 sm:$0xff] }
0x3ecc   :  { %v1195_v11 = vmul.f32 %v2987_v63, %v1194_v8 }
0x3ece   :  { %v1196_v16 = vadd.f32 %v2987_v63, %v1195_v11 }
0x3ed0   :  { %v1200_v23 = vsel %vm1199_vm11, %v2987_v63, %v1196_v16 }
0x3ed1   :  { %v1205_v28 = vsel %vm1202_vm12, %v1204_v26, %v1200_v23 }
0x3ed2   :  { %v1216_v17 = vmul.f32 %v1214_v27, %v1205_v28  ;;  %v1211_v42 = vmul.f32 %v1209_v36, %v1205_v28 }
0x3f30   :  { %v2385_v14 = vpop.permute.xlu1 %2384 }
0x3f31   :  { %v3718_v18 = vmul.f32 %v2385_v14, %v2368_v55 }
0x3f33   :  { %2409 = vrot.lane.b32.xlu2 %v3718_v18, %s3070_s4  ;;  %v2578_v54 = vrot.slane %v3718_v18, 6 }
0x3f35   :  { %v2597_v2 = vsel %vm2585_vm13, %v3703_v12, %v2578_v54 }
0x3f3b   :  { %1218 = vrot.lane.b32.xlu2 %v1216_v17, %s3070_s4 }
0x3f8d   :  { %v2410_v40 = vpop.permute.xlu2 %2409 }
0x3f8e   :  { %2730 = vmatmul.msk.f32.vlgmr.msrb.gmra.mxu1 %vm129_vm4, %v2410_v40 }
0x3f95   :  { %v1219_v38 = vpop.permute.xlu2 %1218 }
0x3f96   :  { %v1221_v44 = vadd.f32 %v1219_v38, %v1211_v42 }
0x400b   :  { %v2430_v10 = vpop.f32.mrf.mxu1 }
0x400c   :  { %v2433_v37 = vadd.f32 %v2430_v10, %v2406_v53 }
0x400e   :  { %2988 = vtanh.f32 %v2433_v37  ;;  %v2731_v48 = vmul.f32 -1.442695, %v2433_v37 }
0x400f   :  { %2990 = vtanh.f32 %v1221_v44 }
0x4010   :  { %2992 = vpow2.f32 %v2731_v48 }
0x4014   :  { %v2989_v46 = vpop.eup %2988 }
0x4015   :  { %2456 = vrot.lane.b32.xlu1 %v2989_v46, %s3069_s3  ;;  %v2991_v13 = vpop.eup %2990 }
0x4016   :  { %v2993_v9 = vpop.eup %2992 }
0x4017   :  { %v2437_v19 = vadd.f32 1.0, %v2993_v9 }
0x4019   :  { %2994 = vrcp.f32 %v2437_v19  ;;  %v2449_v5 = vand.u32 2147483648, %v2437_v19  ;;  %vm2443_vm0 = vweird.f32 %v2437_v19  ;;  %v2447_v6 = vand.u32 2147483647, %v2437_v19 }
0x401b   :  { %v2450_v51 = vor.u32 1.1754944e-38, %v2449_v5  ;;  %vm2448_vm2 = vcmp.eq.f32.partialorder %v2447_v6, 8.507059e+37 }
0x401d   :  { %1224 = vrot.lane.b32.xlu1 %v2991_v13, %s3069_s3 }
0x401f   :  { %v2995_v43 = vpop.eup %2994 }
0x4020   :  { %v2439_v21 = vmul.f32 %v2995_v43, %v2437_v19  ;;  %vm2444_vm15 = vweird.f32 %v2995_v43 }
0x4021   :  { %vm2445_vm1 = vmor %vm2443_vm0, %vm2444_vm15 }
0x4022   :  { %v2440_v25 = vsub.f32 1.0, %v2439_v21 }
0x4024   :  { %v2441_v29 = vmul.f32 %v2995_v43, %v2440_v25 }
0x4026   :  { %v2442_v49 = vadd.f32 %v2995_v43, %v2441_v29 }
0x4028   :  { %v2446_v47 = vsel %vm2445_vm1, %v2995_v43, %v2442_v49 }
0x4029   :  { %v2451_v34 = vsel %vm2448_vm2, %v2450_v51, %v2446_v47 }
0x402a   :  { %v2454_v31 = vmul.f32 %v2451_v34, %v3714_v3 }
0x4087   :  { %v2457_v59 = vpop.permute.xlu1 %2456 }
0x4088   :  { %v2459_v0 = vmul.f32 %v2457_v59, %v2451_v34 }
0x408a   :  { %2461 = vrot.lane.b32.xlu0 %v2459_v0, %s3070_s4 }
0x408f   :  { %v1225_v1 = vpop.permute.xlu1 %1224 }
0x4090   :  { %v1227_v30 = vmul.f32 %v1225_v1, %v1205_v28 }
0x4092   :  { %v2472_v24 = vrot.slane %v1227_v30, 6 }
0x4094   :  { %2473 = vrot.lane.b32.xlu0 %v2472_v24, %s3070_s4 }
0x40fc   :  { %v2462_v45 = vpop.permute.xlu0 %2461 }
0x40fd   :  { %v2464_v52 = vadd.f32 %v2462_v45, %v2454_v31 }
0x40ff   :  { %2996 = vtanh.f32 %v2464_v52 }
0x4105   :  { %v2997_v32 = vpop.eup %2996 }
0x4106   :  { %2467 = vrot.lane.b32.xlu2 %v2997_v32, %s3069_s3  ;;  %v2474_v33 = vpop.permute.xlu0 %2473 }
0x4107   :  { %2732 = vmatmul.msk.f32.vlgmr.msrb.gmra.mxu2 %vm129_vm4, %v2474_v33 }
0x4160   :  { %v2468_v55 = vpop.permute.xlu2 %2467 }
0x4161   :  { %v2470_v15 = vmul.f32 %v2468_v55, %v2451_v34 }
0x4163   :  { %v2580_v56 = vrot.slane %v2470_v15, 4  ;;  %2498 = vrot.lane.b32.xlu1 %v2470_v15, %s3070_s4 }
0x4165   :  { %v2598_v57 = vsel %vm2587_vm14, %v2597_v2, %v2580_v56 }
0x418a   :  { %v2494_v39 = vpop.f32.mrf.mxu2 }
0x418b   :  { %v2495_v58 = vadd.f32 %v2494_v39, %v3482_v35 }
0x41d5   :  { %v2499_v3 = vpop.permute.xlu1 %2498 }
0x41d6   :  { %2733 = vmatmul.msk.f32.vlgmr.msrb.gmra.mxu3 %vm129_vm4, %v2499_v3 }
0x4259   :  { %v2519_v50 = vpop.f32.mrf.mxu3 }
0x425a   :  { %v2522_v60 = vadd.f32 %v2519_v50, %v2495_v58 }
0x425c   :  { %2998 = vtanh.f32 %v2522_v60  ;;  %v2734_v12 = vmul.f32 -1.442695, %v2522_v60 }
0x425e   :  { %3000 = vpow2.f32 %v2734_v12 }
0x4262   :  { %v2999_v63 = vpop.eup %2998 }
0x4263   :  { %2545 = vrot.lane.b32.xlu2 %v2999_v63, %s3069_s3 }
0x4264   :  { %v3001_v8 = vpop.eup %3000 }
0x4265   :  { %v2526_v11 = vadd.f32 1.0, %v3001_v8 }
0x4267   :  { %3002 = vrcp.f32 %v2526_v11  ;;  %v2538_v22 = vand.u32 2147483648, %v2526_v11  ;;  %vm2532_vm14 = vweird.f32 %v2526_v11  ;;  %v2536_v23 = vand.u32 2147483647, %v2526_v11 }
0x4269   :  { %v2539_v27 = vor.u32 1.1754944e-38, %v2538_v22  ;;  %vm2537_vm6 = vcmp.eq.f32.partialorder %v2536_v23, 8.507059e+37 }
0x426b   :  { %2604 = vrot.lane.b32.xlu2 %v2748_v4, %s3071_s12 }
0x426d   :  { %v3003_v14 = vpop.eup %3002 }
0x426e   :  { %v2528_v16 = vmul.f32 %v3003_v14, %v2526_v11  ;;  %vm2533_vm13 = vweird.f32 %v3003_v14 }
0x426f   :  { %vm2534_vm5 = vmor %vm2532_vm14, %vm2533_vm13 }
0x4270   :  { %v2529_v35 = vsub.f32 1.0, %v2528_v16 }
0x4272   :  { %v2530_v18 = vmul.f32 %v3003_v14, %v2529_v35 }
0x4274   :  { %v2531_v20 = vadd.f32 %v3003_v14, %v2530_v18 }
0x4276   :  { %v2535_v26 = vsel %vm2534_vm5, %v3003_v14, %v2531_v20 }
0x4277   :  { %v2540_v17 = vsel %vm2537_vm6, %v2539_v27, %v2535_v26 }
0x4278   :  { %v2543_v37 = vmul.f32 %v2540_v17, %v2464_v52 }
0x42bd   :  { %v2546_v28 = vpop.permute.xlu2 %2545 }
0x42be   :  { %v2548_v40 = vmul.f32 %v2546_v28, %v2540_v17 }
0x42c0   :  { %2550 = vrot.lane.b32.xlu0 %v2548_v40, %s3070_s4 }
0x42c5   :  { %v2605_v41 = vpop.permute.xlu2 %2604 }
0x42c6   :  { %v2609_v53 = vmul.f32 %v2605_v41, %v3696_v7  ;;  %v2607_v10 = vmul.f32 %v2605_v41, %v3590_v61  ;;  %v2608_v44 = vmul.f32 %v2605_v41, %v3639_v62  ;;  %v2749_v62 = vld [vmem:[#allocation2] ss:$0 sm:$0xff] }
0x42c8   :  { %2619 = vrot.lane.b32.xlu2 %v2609_v53, %s3070_s4  ;;  %2615 = vrot.lane.b32.xlu0 %v2607_v10, %s3070_s4 }
0x4322   :  { %v2620_v25 = vpop.permute.xlu2 %2619 }
0x4323   :  { %v2633_v29 = vsel %vm129_vm4, %v2620_v25, 0.0 }
0x4332   :  { %v2551_v36 = vpop.permute.xlu0 %2550 }
0x4333   :  { %v2553_v38 = vadd.f32 %v2551_v36, %v2543_v37 }
0x4335   :  { %3004 = vtanh.f32 %v2553_v38 }
0x433a   :  { %v2616_v46 = vpop.permute.xlu0 %2615 }
0x433b   :  { %v3005_v42 = vpop.eup %3004  ;;  %v2627_v7 = vsel %vm129_vm4, %v2616_v46, 0.0 }
0x433c   :  { %2556 = vrot.lane.b32.xlu1 %v3005_v42, %s3069_s3 }
0x4344   :  { %2617 = vrot.lane.b32.xlu1 %v2608_v44, %s3070_s4 }
0x436e   :  { %2628 = vadd.xlane.f32.xlu1 %v2627_v7 }
0x43ae   :  { %v2557_v61 = vpop.permute.xlu1 %2556 }
0x43af   :  { %v2559_v13 = vmul.f32 %v2557_v61, %v2540_v17 }
0x43b1   :  { %v2583_v48 = vrot.slane %v2559_v13, 2 }
0x43b3   :  { %v2599_v9 = vsel %vm2589_vm3, %v2598_v57, %v2583_v48 }
0x43b4   :  { %v2610_v19 = vmul.f32 %v2605_v41, %v2599_v9 }
0x43b6   :  { %v2618_v43 = vpop.permute.xlu1 %2617  ;;  %2621 = vrot.lane.b32.xlu0 %v2610_v19, %s3070_s4 }
0x43b7   :  { %v2630_v21 = vsel %vm129_vm4, %v2618_v43, 0.0 }
0x43b8   :  { %2631 = vadd.xlane.f32.xlu2 %v2630_v21 }
0x43e0   :  { %2634 = vadd.xlane.f32.xlu0 %v2633_v29 }
0x43e1   :  { %v2629_v49 = vpop.xlane.xlu1 %2628 }
0x43e2   :  { %v2642_v5 = vadd.f32 %v2749_v62, %v2629_v49 }
0x43e4   :  { %2647 = vst.msk [vmem:[%s3781_s11] sm:$0xff] %vm2646_vm7, %v2642_v5 }
0x4428   :  { %v2622_v6 = vpop.permute.xlu0 %2621 }
0x4429   :  { %v2636_v47 = vsel %vm129_vm4, %v2622_v6, 0.0 }
0x442a   :  { %2637 = vadd.xlane.f32.xlu2 %v2636_v47 }
0x442b   :  { %v2632_v51 = vpop.xlane.xlu2 %2631 }
0x442c   :  { %v2643_v59 = vadd.f32 %v2749_v62, %v2632_v51 }
0x442e   :  { %2648 = vst.msk [vmem:[%s3781_s11 + $0x8] sm:$0xff] %vm2646_vm7, %v2643_v59 }
0x4453   :  { %v2635_v34 = vpop.xlane.xlu0 %2634 }
0x4454   :  { %v2644_v0 = vadd.f32 %v2749_v62, %v2635_v34 }
0x4456   :  { %2649 = vst.msk [vmem:[%s3781_s11 + $0x10] sm:$0xff] %vm2646_vm7, %v2644_v0 }
0x449d   :  { %v2638_v1 = vpop.xlane.xlu2 %2637 }
0x449e   :  { %v2645_v30 = vadd.f32 %v2749_v62, %v2638_v1 }
0x44a0   :  { %2650 = vst.msk [vmem:[%s3781_s11 + $0x18] sm:$0xff] %vm2646_vm7, %v2645_v30 }
0x44a1   :  { %2655 = vsyncpa [#allocation4], 1 }
0x44a2   :  { %2656 = vsyncpa [#allocation6], 1 }

</bundles_post_ra>
